<compile_context>
chip_gen: v7x
topology: tpu7x:2x2x1
jax: 0.10.0
libtpu: 0.0.40
codegen_flags: <defaults>
</compile_context>

<pallas_src>
import jax
import jax.numpy as jnp
from jax.experimental import pallas as pl
from jax.experimental.pallas import tpu as pltpu

# ----- problem sizes (small, module-consistent) -----
B   = 16    # independent graphs in the demo batch (weights & mu shared)
BT  = 8     # graphs per grid step -> 256 stacked node rows / 128 edge rows
N   = 32    # nodes per graph (spots)
E   = 16    # edges per graph
F   = 32    # node feature dim (features.shape[1]) == n_class
FE  = 8     # edge feature dim (edge_features.shape[1])
NH  = 32    # hidden dim (nhid)
K   = 8     # number of clusters (rows of mu)
FP  = 128   # lane-dense slab width: x in lanes [0,F), q in lanes [F,F+K)
ALPHA = 0.2
INV_ALPHA = 1.0 / ALPHA

# packed parameter slab row layout (all region starts 8-row aligned)
ROW_W1, ROW_W2, ROW_W3, ROW_MU, ROW_VEC = 0, 32, 40, 72, 200
PROWS = 208   # (PROWS, FP) f32 slab


def spadcn_kernel(x_ref, z_ref, t_ref, tt_ref,
                  avo_ref, avd_ref, aeo_ref, aed_ref,
                  prm_ref, out_ref):
    f32 = jnp.float32
    # batched / block-diag tensors (bf16 or f32 transport) -> f32 for compute
    X   = x_ref[...].astype(f32)      # (BT*N, F)    stacked node features
    Z   = z_ref[...].astype(f32)      # (BT*E, FE)   stacked edge features
    Tb  = t_ref[...].astype(f32)      # (BT*N, BT*E) block-diag incidence
    Tt  = tt_ref[...].astype(f32)     # (BT*E, BT*N) block-diag incidence^T
    AVo = avo_ref[...].astype(f32)    # (BT*N, BT*N) block-diag adj_v, zero diag
    AVd = avd_ref[...].astype(f32)    # (BT*N, BT*N) diagonal part of adj_v
    AEo = aeo_ref[...].astype(f32)    # (BT*E, BT*E)
    AEd = aed_ref[...].astype(f32)    # (BT*E, BT*E)

    # packed parameter slab (single shared input stream), static views
    w1   = prm_ref[ROW_W1:ROW_W1 + F,  :NH]       # (F, NH)
    w2   = prm_ref[ROW_W2:ROW_W2 + FE, :FE]       # (FE, FE)
    w3   = prm_ref[ROW_W3:ROW_W3 + NH, :]         # (NH, FP)  cols F.. are zero
    mu_t = prm_ref[ROW_MU:ROW_MU + FP, :]         # (FP, FP)  2*mu^T at [:F, F:F+K]
    vec  = prm_ref[ROW_VEC:ROW_VEC + 8, :]        # 8 vector params, one per row
    b1, p1 = vec[0:1, :NH], vec[1:2, :FE]
    b2, p2 = vec[2:3, :FE], vec[3:4, :NH]
    b3, p3 = vec[4:5, :],   vec[5:6, :FE]
    mu2, km = vec[6:7, :],  vec[7:8, :]

    # TODO(synk): GraphConvolution source is not shipped with the module; a
    # standard CensNet-style node/edge co-convolution is implemented here (the
    # unused `a` hyper-parameter is ignored).
    def node_layer(Hv, He, W, b, p):
        d = jnp.sum(He * p, axis=-1, keepdims=True)                  # (BT*E, 1)
        mult = jnp.dot(Tb, d * Tt, preferred_element_type=f32)       # (BT*N, BT*N)
        # where(eye, 1, mult) * adj == mult * adj_off + adj_diag  (per graph;
        # off-diagonal blocks are exactly zero, so block-diag == per-graph)
        adjusted = mult * AVo + AVd
        hw = jnp.dot(Hv, W, preferred_element_type=f32)              # (BT*N, out)
        return jnp.dot(adjusted, hw, preferred_element_type=f32) + b

    def edge_layer(Hv, He, W, b, p):
        d = jnp.sum(Hv * p, axis=-1, keepdims=True)                  # (BT*N, 1)
        mult = jnp.dot(Tt, d * Tb, preferred_element_type=f32)       # (BT*E, BT*E)
        adjusted = mult * AEo + AEd
        # column-wise max; with the 1e-12 clamp the block-diag column max is
        # exactly the per-graph column max (off-block entries are exact zeros).
        colmax = jnp.max(adjusted, axis=0, keepdims=True)            # (1, BT*E)
        norm = adjusted * pl.reciprocal(jnp.maximum(colmax, 1e-12), approx=True)
        hw = jnp.dot(He, W, preferred_element_type=f32)              # (BT*E, out)
        return jnp.dot(norm, hw, preferred_element_type=f32) + b

    # GCN: gc1 (node) -> gc2 (edge) -> gc3 (node); gc3 weights are lane-padded.
    X1 = node_layer(X,  Z,  w1, b1, p1)      # (BT*N, NH)
    Z2 = edge_layer(X1, Z,  w2, b2, p2)      # (BT*E, FE)
    X3 = node_layer(X1, Z2, w3, b3, p3)      # (BT*N, FP); lanes F.. exactly zero

    # Student-t soft assignment computed straight into lanes [F, F+K) of the x
    # slab.  Reference: q = 1/(1+||x-mu||^2/alpha+1e-8); q = q**(alpha+1) / 2;
    # row-normalize.  The /2 is a scalar divisor -> cancels -> dropped.  The
    # factor 2 of the cross term is folded into mu_t host-side.
    x2 = jnp.sum(X3 * X3, axis=-1, keepdims=True)                    # (BT*N, 1)
    xm = jnp.dot(X3, mu_t, preferred_element_type=f32)               # 2*x.mu at q lanes
    sq = jnp.maximum(x2 - xm + mu2, 0.0)                             # clamp cancellation
    qb = pl.reciprocal(1.0 + sq * INV_ALPHA + 1e-08, approx=True)
    # km keeps non-cluster lanes exactly zero -> safe to add onto the x slab
    qp = jnp.exp((ALPHA + 1.0) * jnp.log(qb)) * km
    qn = qp * pl.reciprocal(jnp.sum(qp, axis=-1, keepdims=True))     # exact recip
    out_ref[...] = X3 + qn                                           # one fused lane-dense store


def _transport_dtype():
    """bf16 transport on v6e/v7x (native bf16 MXU, half the DMA bytes); keep
    f32 on v5e and older (no bf16 VALU -> extra converts)."""
    try:
        kind = jax.devices()[0].device_kind.lower()
    except Exception:
        return jnp.float32
    return jnp.bfloat16 if ("v6" in kind or "v7" in kind) else jnp.float32


def _block_diag_groups(A, bt):
    """(Bn, r, c) -> (Bn//bt * bt*r, bt*c): per group of bt graphs, one
    block-diagonal slab, flattened along rows (row order == stacked features)."""
    Bn_, r, c = A.shape
    g = Bn_ // bt
    eye = jnp.eye(bt, dtype=A.dtype)
    bd = A.reshape(g, bt, r, c)[:, :, :, None, :] * eye[None, :, None, :, None]
    return bd.reshape(g * bt * r, bt * c)


def spadcn_forward(X, Z, adj_e, adj_v, T, params, mu):
    f32 = jnp.float32
    Bn, n, f = X.shape
    _, e, fe = Z.shape
    assert (n, f, e, fe) == (N, F, E, FE) and Bn % BT == 0
    G = Bn // BT
    tdt = _transport_dtype()

    # ---- host-side precompute (no in-kernel transposes / iota / eye) ----
    Tt = jnp.swapaxes(T, -1, -2)                                   # (Bn, E, N)
    eye_v = jnp.eye(N, dtype=f32)
    eye_e = jnp.eye(E, dtype=f32)
    Xs   = X.reshape(Bn * N, F).astype(tdt)
    Zs   = Z.reshape(Bn * E, FE).astype(tdt)
    Tbd  = _block_diag_groups(T, BT).astype(tdt)                   # (G*BT*N, BT*E)
    Ttbd = _block_diag_groups(Tt, BT).astype(tdt)                  # (G*BT*E, BT*N)
    AVo  = _block_diag_groups(adj_v * (1.0 - eye_v), BT).astype(tdt)
    AVd  = _block_diag_groups(adj_v * eye_v, BT).astype(tdt)
    AEo  = _block_diag_groups(adj_e * (1.0 - eye_e), BT).astype(tdt)
    AEd  = _block_diag_groups(adj_e * eye_e, BT).astype(tdt)

    # single packed parameter slab (one shared DMA stream instead of 12)
    prm = jnp.zeros((PROWS, FP), f32)
    prm = prm.at[ROW_W1:ROW_W1 + F,  :NH].set(params["w1"])
    prm = prm.at[ROW_W2:ROW_W2 + FE, :FE].set(params["w2"])
    prm = prm.at[ROW_W3:ROW_W3 + NH, :F].set(params["w3"])         # lane-padded gc3
    prm = prm.at[ROW_MU:ROW_MU + F, F:F + K].set(2.0 * mu.T)       # 2*mu^T at q lanes
    prm = prm.at[ROW_VEC + 0, :NH].set(params["b1"][0])
    prm = prm.at[ROW_VEC + 1, :FE].set(params["p1"][0])
    prm = prm.at[ROW_VEC + 2, :FE].set(params["b2"][0])
    prm = prm.at[ROW_VEC + 3, :NH].set(params["p2"][0])
    prm = prm.at[ROW_VEC + 4, :F].set(params["b3"][0])
    prm = prm.at[ROW_VEC + 5, :FE].set(params["p3"][0])
    prm = prm.at[ROW_VEC + 6, F:F + K].set(jnp.sum(mu * mu, axis=1))
    prm = prm.at[ROW_VEC + 7, F:F + K].set(1.0)                    # cluster-lane mask

    row_spec = lambda r, c: pl.BlockSpec((r, c), lambda i: (i, 0))
    in_specs = [row_spec(BT * N, F), row_spec(BT * E, FE),
                row_spec(BT * N, BT * E), row_spec(BT * E, BT * N),
                row_spec(BT * N, BT * N), row_spec(BT * N, BT * N),
                row_spec(BT * E, BT * E), row_spec(BT * E, BT * E),
                pl.BlockSpec((PROWS, FP), lambda i: (0, 0))]

    out = pl.pallas_call(
        spadcn_kernel,
        grid=(G,),
        in_specs=in_specs,
        out_specs=pl.BlockSpec((BT * N, FP), lambda i: (i, 0)),
        out_shape=jax.ShapeDtypeStruct((Bn * N, FP), f32),
        compiler_params=pltpu.CompilerParams(dimension_semantics=("parallel",)),
    )(Xs, Zs, Tbd, Ttbd, AVo, AVd, AEo, AEd, prm)

    x = out[:, :F].reshape(Bn, N, F)          # GCN embedding
    q = out[:, F:F + K].reshape(Bn, N, K)     # Student-t soft assignment
    return x, q


def make_inputs():
    key = jax.random.PRNGKey(0)
    ks = jax.random.split(key, 16)
    f32 = jnp.float32

    X = jax.random.normal(ks[0], (B, N, F), f32)
    Z = jax.random.normal(ks[1], (B, E, FE), f32)
    # non-negative adjacencies with unit diagonal (keeps col-max normalization safe)
    adj_v = jax.random.uniform(ks[2], (B, N, N), f32) * 0.5 + jnp.eye(N, dtype=f32)
    adj_e = jax.random.uniform(ks[3], (B, E, E), f32) * 0.5 + jnp.eye(E, dtype=f32)
    T = (jax.random.uniform(ks[4], (B, N, E), f32) > 0.7).astype(f32)  # incidence-like

    params = {
        # gc1: node layer (in_v=F, out_v=NH, p over edge features)
        "w1": jax.random.normal(ks[5], (F, NH), f32) * 0.1,
        "b1": jax.random.normal(ks[6], (1, NH), f32) * 0.01,
        "p1": jax.random.normal(ks[7], (1, FE), f32) * 0.1,
        # gc2: edge layer (in_e=FE, out_e=FE, p over node hidden features)
        "w2": jax.random.normal(ks[8], (FE, FE), f32) * 0.1,
        "b2": jax.random.normal(ks[9], (1, FE), f32) * 0.01,
        "p2": jax.random.normal(ks[10], (1, NH), f32) * 0.1,
        # gc3: node layer (in_v=NH, out_v=F, p over edge features)
        "w3": jax.random.normal(ks[11], (NH, F), f32) * 0.1,
        "b3": jax.random.normal(ks[12], (1, F), f32) * 0.01,
        "p3": jax.random.normal(ks[13], (1, FE), f32) * 0.1,
    }
    mu = jax.random.normal(ks[14], (K, F), f32)   # cluster centers (n_clusters, n_class)
    return X, Z, adj_e, adj_v, T, params, mu


if __name__ == "__main__":
    X, Z, adj_e, adj_v, T, params, mu = make_inputs()
    fwd = jax.jit(spadcn_forward)
    x_emb, q = jax.block_until_ready(fwd(X, Z, adj_e, adj_v, T, params, mu))
    assert x_emb.shape == (B, N, F) and q.shape == (B, N, K)
    assert bool(jnp.all(jnp.isfinite(x_emb))) and bool(jnp.all(jnp.isfinite(q)))
    assert bool(jnp.allclose(jnp.sum(q, axis=-1), 1.0, atol=1e-4))
    print("KERNEL_OK")
</pallas_src>

<mosaic_0001>
module attributes {stable_mosaic.version = 11 : i64} {
  func.func @spadcn_kernel(%arg0: i32, %arg1: memref<256x32xf32, #tpu.memory_space<vmem>>, %arg2: memref<128x8xf32, #tpu.memory_space<vmem>>, %arg3: memref<256x128xf32, #tpu.memory_space<vmem>>, %arg4: memref<128x256xf32, #tpu.memory_space<vmem>>, %arg5: memref<256x256xf32, #tpu.memory_space<vmem>>, %arg6: memref<256x256xf32, #tpu.memory_space<vmem>>, %arg7: memref<128x128xf32, #tpu.memory_space<vmem>>, %arg8: memref<128x128xf32, #tpu.memory_space<vmem>>, %arg9: memref<208x128xf32, #tpu.memory_space<vmem>>, %arg10: memref<256x128xf32, #tpu.memory_space<vmem>>) attributes {dimension_semantics = [#tpu.dimension_semantics<parallel>], iteration_bounds = array<i64: 2>, scalar_prefetch = 0 : i64, scratch_operands = 0 : i64, tpu.core_type = #tpu.core_type<tc>, window_params = [{transform_indices = @transform_0, window_bounds = array<i64: 256, 32>}, {transform_indices = @transform_1, window_bounds = array<i64: 128, 8>}, {transform_indices = @transform_2, window_bounds = array<i64: 256, 128>}, {transform_indices = @transform_3, window_bounds = array<i64: 128, 256>}, {transform_indices = @transform_4, window_bounds = array<i64: 256, 256>}, {transform_indices = @transform_5, window_bounds = array<i64: 256, 256>}, {transform_indices = @transform_6, window_bounds = array<i64: 128, 128>}, {transform_indices = @transform_7, window_bounds = array<i64: 128, 128>}, {pipeline_mode = #tpu.pipeline_mode<synchronous>, transform_indices = @transform_8, window_bounds = array<i64: 208, 128>}, {transform_indices = @transform_9, window_bounds = array<i64: 256, 128>}]} {
    %c0 = arith.constant 0 : index
    %c0_0 = arith.constant 0 : index
    %0 = vector.load %arg1[%c0, %c0_0] : memref<256x32xf32, #tpu.memory_space<vmem>>, vector<256x32xf32>
    %c0_1 = arith.constant 0 : index
    %c0_2 = arith.constant 0 : index
    %1 = vector.load %arg2[%c0_1, %c0_2] : memref<128x8xf32, #tpu.memory_space<vmem>>, vector<128x8xf32>
    %c0_3 = arith.constant 0 : index
    %c0_4 = arith.constant 0 : index
    %2 = vector.load %arg3[%c0_3, %c0_4] : memref<256x128xf32, #tpu.memory_space<vmem>>, vector<256x128xf32>
    %c0_5 = arith.constant 0 : index
    %c0_6 = arith.constant 0 : index
    %3 = vector.load %arg4[%c0_5, %c0_6] : memref<128x256xf32, #tpu.memory_space<vmem>>, vector<128x256xf32>
    %c0_7 = arith.constant 0 : index
    %c0_8 = arith.constant 0 : index
    %4 = vector.load %arg5[%c0_7, %c0_8] : memref<256x256xf32, #tpu.memory_space<vmem>>, vector<256x256xf32>
    %c0_9 = arith.constant 0 : index
    %c0_10 = arith.constant 0 : index
    %5 = vector.load %arg6[%c0_9, %c0_10] : memref<256x256xf32, #tpu.memory_space<vmem>>, vector<256x256xf32>
    %c0_11 = arith.constant 0 : index
    %c0_12 = arith.constant 0 : index
    %6 = vector.load %arg7[%c0_11, %c0_12] : memref<128x128xf32, #tpu.memory_space<vmem>>, vector<128x128xf32>
    %c0_13 = arith.constant 0 : index
    %c0_14 = arith.constant 0 : index
    %7 = vector.load %arg8[%c0_13, %c0_14] : memref<128x128xf32, #tpu.memory_space<vmem>>, vector<128x128xf32>
    %c0_15 = arith.constant 0 : index
    %c0_16 = arith.constant 0 : index
    %8 = vector.load %arg9[%c0_15, %c0_16] : memref<208x128xf32, #tpu.memory_space<vmem>>, vector<32x32xf32>
    %c32 = arith.constant 32 : index
    %c0_17 = arith.constant 0 : index
    %9 = vector.load %arg9[%c32, %c0_17] : memref<208x128xf32, #tpu.memory_space<vmem>>, vector<8x8xf32>
    %c40 = arith.constant 40 : index
    %c0_18 = arith.constant 0 : index
    %10 = vector.load %arg9[%c40, %c0_18] : memref<208x128xf32, #tpu.memory_space<vmem>>, vector<32x128xf32>
    %c72 = arith.constant 72 : index
    %c0_19 = arith.constant 0 : index
    %11 = vector.load %arg9[%c72, %c0_19] : memref<208x128xf32, #tpu.memory_space<vmem>>, vector<128x128xf32>
    %c200 = arith.constant 200 : index
    %c0_20 = arith.constant 0 : index
    %12 = vector.load %arg9[%c200, %c0_20] : memref<208x128xf32, #tpu.memory_space<vmem>>, vector<8x128xf32>
    %13 = vector.extract_strided_slice %12 {offsets = [0, 0], sizes = [1, 32], strides = [1, 1]} : vector<8x128xf32> to vector<1x32xf32>
    %14 = vector.extract_strided_slice %12 {offsets = [1, 0], sizes = [1, 8], strides = [1, 1]} : vector<8x128xf32> to vector<1x8xf32>
    %15 = vector.extract_strided_slice %12 {offsets = [2, 0], sizes = [1, 8], strides = [1, 1]} : vector<8x128xf32> to vector<1x8xf32>
    %16 = vector.extract_strided_slice %12 {offsets = [3, 0], sizes = [1, 32], strides = [1, 1]} : vector<8x128xf32> to vector<1x32xf32>
    %17 = vector.extract_strided_slice %12 {offsets = [4, 0], sizes = [1, 128], strides = [1, 1]} : vector<8x128xf32> to vector<1x128xf32>
    %18 = vector.extract_strided_slice %12 {offsets = [5, 0], sizes = [1, 8], strides = [1, 1]} : vector<8x128xf32> to vector<1x8xf32>
    %19 = vector.extract_strided_slice %12 {offsets = [6, 0], sizes = [1, 128], strides = [1, 1]} : vector<8x128xf32> to vector<1x128xf32>
    %20 = vector.extract_strided_slice %12 {offsets = [7, 0], sizes = [1, 128], strides = [1, 1]} : vector<8x128xf32> to vector<1x128xf32>
    %21 = vector.broadcast %14 : vector<1x8xf32> to vector<128x8xf32>
    %22 = arith.mulf %1, %21 : vector<128x8xf32>
    %cst = arith.constant dense<0.000000e+00> : vector<128xf32>
    %23 = vector.multi_reduction <add>, %22, %cst [1] : vector<128x8xf32> to vector<128xf32>
    %24 = vector.shape_cast %23 : vector<128xf32> to vector<128x1xf32>
    %25 = vector.broadcast %24 : vector<128x1xf32> to vector<128x256xf32>
    %26 = arith.mulf %25, %3 : vector<128x256xf32>
    %cst_21 = arith.constant dense<0.000000e+00> : vector<256x256xf32>
    %27 = tpu.matmul %2, %26, %cst_21 {dimension_numbers = #tpu.dot_dimension_numbers<[1], [0], [0], [1], [0, 0, 1, 1], [], []>} : vector<256x128xf32>, vector<128x256xf32>, vector<256x256xf32> -> vector<256x256xf32>
    %28 = arith.mulf %27, %4 : vector<256x256xf32>
    %29 = arith.addf %28, %5 : vector<256x256xf32>
    %cst_22 = arith.constant dense<0.000000e+00> : vector<256x32xf32>
    %30 = tpu.matmul %0, %8, %cst_22 {dimension_numbers = #tpu.dot_dimension_numbers<[1], [0], [0], [1], [0, 0, 1, 1], [], []>} : vector<256x32xf32>, vector<32x32xf32>, vector<256x32xf32> -> vector<256x32xf32>
    %cst_23 = arith.constant dense<0.000000e+00> : vector<256x32xf32>
    %31 = tpu.matmul %29, %30, %cst_23 {dimension_numbers = #tpu.dot_dimension_numbers<[1], [0], [0], [1], [0, 0, 1, 1], [], []>} : vector<256x256xf32>, vector<256x32xf32>, vector<256x32xf32> -> vector<256x32xf32>
    %32 = vector.broadcast %13 : vector<1x32xf32> to vector<256x32xf32>
    %33 = arith.addf %31, %32 : vector<256x32xf32>
    %34 = vector.broadcast %16 : vector<1x32xf32> to vector<256x32xf32>
    %35 = arith.mulf %33, %34 : vector<256x32xf32>
    %cst_24 = arith.constant dense<0.000000e+00> : vector<256xf32>
    %36 = vector.multi_reduction <add>, %35, %cst_24 [1] : vector<256x32xf32> to vector<256xf32>
    %37 = vector.shape_cast %36 : vector<256xf32> to vector<256x1xf32>
    %38 = vector.broadcast %37 : vector<256x1xf32> to vector<256x128xf32>
    %39 = arith.mulf %38, %2 : vector<256x128xf32>
    %cst_25 = arith.constant dense<0.000000e+00> : vector<128x128xf32>
    %40 = tpu.matmul %3, %39, %cst_25 {dimension_numbers = #tpu.dot_dimension_numbers<[1], [0], [0], [1], [0, 0, 1, 1], [], []>} : vector<128x256xf32>, vector<256x128xf32>, vector<128x128xf32> -> vector<128x128xf32>
    %41 = arith.mulf %40, %6 : vector<128x128xf32>
    %42 = arith.addf %41, %7 : vector<128x128xf32>
    %cst_26 = arith.constant dense<0xFF800000> : vector<128xf32>
    %43 = vector.multi_reduction <maximumf>, %42, %cst_26 [0] : vector<128x128xf32> to vector<128xf32>
    %44 = vector.shape_cast %43 : vector<128xf32> to vector<1x128xf32>
    %cst_27 = arith.constant 9.99999996E-13 : f32
    %45 = vector.broadcast %cst_27 : f32 to vector<1x128xf32>
    %46 = arith.maximumf %44, %45 : vector<1x128xf32>
    %47 = tpu.reciprocal %46 {approx = true} : vector<1x128xf32> -> vector<1x128xf32>
    %48 = vector.broadcast %47 : vector<1x128xf32> to vector<128x128xf32>
    %49 = arith.mulf %42, %48 : vector<128x128xf32>
    %cst_28 = arith.constant dense<0.000000e+00> : vector<128x8xf32>
    %50 = tpu.matmul %1, %9, %cst_28 {dimension_numbers = #tpu.dot_dimension_numbers<[1], [0], [0], [1], [0, 0, 1, 1], [], []>} : vector<128x8xf32>, vector<8x8xf32>, vector<128x8xf32> -> vector<128x8xf32>
    %cst_29 = arith.constant dense<0.000000e+00> : vector<128x8xf32>
    %51 = tpu.matmul %49, %50, %cst_29 {dimension_numbers = #tpu.dot_dimension_numbers<[1], [0], [0], [1], [0, 0, 1, 1], [], []>} : vector<128x128xf32>, vector<128x8xf32>, vector<128x8xf32> -> vector<128x8xf32>
    %52 = vector.broadcast %15 : vector<1x8xf32> to vector<128x8xf32>
    %53 = arith.addf %51, %52 : vector<128x8xf32>
    %54 = vector.broadcast %18 : vector<1x8xf32> to vector<128x8xf32>
    %55 = arith.mulf %53, %54 : vector<128x8xf32>
    %cst_30 = arith.constant dense<0.000000e+00> : vector<128xf32>
    %56 = vector.multi_reduction <add>, %55, %cst_30 [1] : vector<128x8xf32> to vector<128xf32>
    %57 = vector.shape_cast %56 : vector<128xf32> to vector<128x1xf32>
    %58 = vector.broadcast %57 : vector<128x1xf32> to vector<128x256xf32>
    %59 = arith.mulf %58, %3 : vector<128x256xf32>
    %cst_31 = arith.constant dense<0.000000e+00> : vector<256x256xf32>
    %60 = tpu.matmul %2, %59, %cst_31 {dimension_numbers = #tpu.dot_dimension_numbers<[1], [0], [0], [1], [0, 0, 1, 1], [], []>} : vector<256x128xf32>, vector<128x256xf32>, vector<256x256xf32> -> vector<256x256xf32>
    %61 = arith.mulf %60, %4 : vector<256x256xf32>
    %62 = arith.addf %61, %5 : vector<256x256xf32>
    %cst_32 = arith.constant dense<0.000000e+00> : vector<256x128xf32>
    %63 = tpu.matmul %33, %10, %cst_32 {dimension_numbers = #tpu.dot_dimension_numbers<[1], [0], [0], [1], [0, 0, 1, 1], [], []>} : vector<256x32xf32>, vector<32x128xf32>, vector<256x128xf32> -> vector<256x128xf32>
    %cst_33 = arith.constant dense<0.000000e+00> : vector<256x128xf32>
    %64 = tpu.matmul %62, %63, %cst_33 {dimension_numbers = #tpu.dot_dimension_numbers<[1], [0], [0], [1], [0, 0, 1, 1], [], []>} : vector<256x256xf32>, vector<256x128xf32>, vector<256x128xf32> -> vector<256x128xf32>
    %65 = vector.broadcast %17 : vector<1x128xf32> to vector<256x128xf32>
    %66 = arith.addf %64, %65 : vector<256x128xf32>
    %67 = arith.mulf %66, %66 : vector<256x128xf32>
    %cst_34 = arith.constant dense<0.000000e+00> : vector<256xf32>
    %68 = vector.multi_reduction <add>, %67, %cst_34 [1] : vector<256x128xf32> to vector<256xf32>
    %69 = vector.shape_cast %68 : vector<256xf32> to vector<256x1xf32>
    %cst_35 = arith.constant dense<0.000000e+00> : vector<256x128xf32>
    %70 = tpu.matmul %66, %11, %cst_35 {dimension_numbers = #tpu.dot_dimension_numbers<[1], [0], [0], [1], [0, 0, 1, 1], [], []>} : vector<256x128xf32>, vector<128x128xf32>, vector<256x128xf32> -> vector<256x128xf32>
    %71 = vector.broadcast %69 : vector<256x1xf32> to vector<256x128xf32>
    %72 = arith.subf %71, %70 : vector<256x128xf32>
    %73 = vector.broadcast %19 : vector<1x128xf32> to vector<256x128xf32>
    %74 = arith.addf %72, %73 : vector<256x128xf32>
    %cst_36 = arith.constant 0.000000e+00 : f32
    %75 = vector.broadcast %cst_36 : f32 to vector<256x128xf32>
    %76 = arith.maximumf %74, %75 : vector<256x128xf32>
    %cst_37 = arith.constant 5.000000e+00 : f32
    %77 = vector.broadcast %cst_37 : f32 to vector<256x128xf32>
    %78 = arith.mulf %76, %77 : vector<256x128xf32>
    %cst_38 = arith.constant 1.000000e+00 : f32
    %79 = vector.broadcast %cst_38 : f32 to vector<256x128xf32>
    %80 = arith.addf %79, %78 : vector<256x128xf32>
    %cst_39 = arith.constant 9.99999993E-9 : f32
    %81 = vector.broadcast %cst_39 : f32 to vector<256x128xf32>
    %82 = arith.addf %80, %81 : vector<256x128xf32>
    %83 = tpu.reciprocal %82 {approx = true} : vector<256x128xf32> -> vector<256x128xf32>
    %84 = math.log %83 : vector<256x128xf32>
    %cst_40 = arith.constant 1.200000e+00 : f32
    %85 = vector.broadcast %cst_40 : f32 to vector<256x128xf32>
    %86 = arith.mulf %85, %84 : vector<256x128xf32>
    %87 = math.exp %86 : vector<256x128xf32>
    %88 = vector.broadcast %20 : vector<1x128xf32> to vector<256x128xf32>
    %89 = arith.mulf %87, %88 : vector<256x128xf32>
    %cst_41 = arith.constant dense<0.000000e+00> : vector<256xf32>
    %90 = vector.multi_reduction <add>, %89, %cst_41 [1] : vector<256x128xf32> to vector<256xf32>
    %91 = vector.shape_cast %90 : vector<256xf32> to vector<256x1xf32>
    %92 = tpu.reciprocal %91 : vector<256x1xf32> -> vector<256x1xf32>
    %93 = vector.broadcast %92 : vector<256x1xf32> to vector<256x128xf32>
    %94 = arith.mulf %89, %93 : vector<256x128xf32>
    %95 = arith.addf %66, %94 : vector<256x128xf32>
    %c0_42 = arith.constant 0 : index
    %c0_43 = arith.constant 0 : index
    %96 = vector.load %arg10[%c0_42, %c0_43] : memref<256x128xf32, #tpu.memory_space<vmem>>, vector<256x128xf32>
    tpu.vector_store %arg10[%c0_42, %c0_43], %95 {strides = array<i32>} : memref<256x128xf32, #tpu.memory_space<vmem>>, vector<256x128xf32>,
    return
  }
  func.func @transform_0(%arg0: i32) -> (i32, i32) {
    %c0_i32 = arith.constant 0 : i32
    %c0_i32_0 = arith.constant 0 : i32
    return %arg0, %c0_i32 : i32, i32
  }
  func.func @transform_1(%arg0: i32) -> (i32, i32) {
    %c0_i32 = arith.constant 0 : i32
    %c0_i32_0 = arith.constant 0 : i32
    return %arg0, %c0_i32 : i32, i32
  }
  func.func @transform_2(%arg0: i32) -> (i32, i32) {
    %c0_i32 = arith.constant 0 : i32
    %c0_i32_0 = arith.constant 0 : i32
    return %arg0, %c0_i32 : i32, i32
  }
  func.func @transform_3(%arg0: i32) -> (i32, i32) {
    %c0_i32 = arith.constant 0 : i32
    %c0_i32_0 = arith.constant 0 : i32
    return %arg0, %c0_i32 : i32, i32
  }
  func.func @transform_4(%arg0: i32) -> (i32, i32) {
    %c0_i32 = arith.constant 0 : i32
    %c0_i32_0 = arith.constant 0 : i32
    return %arg0, %c0_i32 : i32, i32
  }
  func.func @transform_5(%arg0: i32) -> (i32, i32) {
    %c0_i32 = arith.constant 0 : i32
    %c0_i32_0 = arith.constant 0 : i32
    return %arg0, %c0_i32 : i32, i32
  }
  func.func @transform_6(%arg0: i32) -> (i32, i32) {
    %c0_i32 = arith.constant 0 : i32
    %c0_i32_0 = arith.constant 0 : i32
    return %arg0, %c0_i32 : i32, i32
  }
  func.func @transform_7(%arg0: i32) -> (i32, i32) {
    %c0_i32 = arith.constant 0 : i32
    %c0_i32_0 = arith.constant 0 : i32
    return %arg0, %c0_i32 : i32, i32
  }
  func.func @transform_8(%arg0: i32) -> (i32, i32) {
    %c0_i32 = arith.constant 0 : i32
    %c0_i32_0 = arith.constant 0 : i32
    %c0_i32_1 = arith.constant 0 : i32
    return %c0_i32, %c0_i32_0 : i32, i32
  }
  func.func @transform_9(%arg0: i32) -> (i32, i32) {
    %c0_i32 = arith.constant 0 : i32
    %c0_i32_0 = arith.constant 0 : i32
    return %arg0, %c0_i32 : i32, i32
  }
}

</mosaic_0001>

<bundles_post_ra>
// kernel: spadcn_forward.1
= control target key start
LH: loop header
LB: loop body
LE: loop exit
PB: predicated region body
PF: predicated region fallthrough
CT: control target
= control target key end

     0   :  { %s6167_s30 = smov 0   ;;  %s7998_s0 = inlined_call_operand.vmem [shape: f32[512,32], index: 0, kind: input, shape index: {}]   ;;  %s7999_s1 = inlined_call_operand.vmem [shape: f32[256,8], index: 1, kind: input, shape index: {}]   ;;  %s8000_s2 = inlined_call_operand.vmem [shape: f32[512,128], index: 2, kind: input, shape index: {}]   ;;  %s8001_s3 = inlined_call_operand.vmem [shape: f32[256,256], index: 3, kind: input, shape index: {}]   ;;  %s8002_s4 = inlined_call_operand.vmem [shape: f32[512,256], index: 4, kind: input, shape index: {}]   ;;  %s8003_s5 = inlined_call_operand.vmem [shape: f32[512,256], index: 5, kind: input, shape index: {}]   ;;  %s8004_s6 = inlined_call_operand.vmem [shape: f32[256,128], index: 6, kind: input, shape index: {}]   ;;  %s8005_s7 = inlined_call_operand.vmem [shape: f32[256,128], index: 7, kind: input, shape index: {}]   ;;  %s8006_s8 = inlined_call_operand.vmem [shape: f32[208,128], index: 8, kind: input, shape index: {}]   ;;  %s8007_s9 = inlined_call_operand.vmem [shape: f32[512,128], index: 9, kind: output, shape index: {}]  }
   0x1 LB: > { %s4668_s10 = sadd.s32 4294967295, %s6113_s30   ;;  %p4672_p0 = scmp.ge.s32.totalorder %s6113_s30, 1  ;;  %s6113_s30 = sphi %s6167_s30, %s19_s30  }
   0x2   : > { %p368_p1 = scmp.lt.s32.totalorder %s6113_s30, 3 }
   0x4   : > { %p369_p2 = pnand %p4672_p0, %p368_p1 }
   0x6   : > { %372 = sbr.rel (%p369_p2) target bundleno = 2596 (0xa24), region = 56 }
   0xd   : > { %s4675_s11 = sshll.u32 %s4668_s10, 4  ;;  %v797_v0 = vlaneseq  ;;  %v771_v1 = vld [vmem:[%s8006_s8] sm:$0xff]  ;;  %v772_v2 = vld [vmem:[%s8006_s8 + $0x8] sm:$0xff]  ;;  %s4673_s16 = sshll.u32 %s4668_s10, 5  ;;  %v773_v4 = vld [vmem:[%s8006_s8 + $0x10] sm:$0xff]  ;;  %vm817_vm0 = vcmask 64512  }
   0xe   : > { %p449_p3 = scmp.lt.s32.totalorder %s4675_s11, 31  ;;  %v5334_v3 = vpack.c.bf16 %v772_v2, %v771_v1  ;;  %v774_v5 = vld [vmem:[%s8006_s8 + $0x18] sm:$0xff]  ;;  %p443_p4 = scmp.lt.s32.totalorder %s4673_s16, 63  ;;  %v796_v8 = vld [vmem:[%s8006_s8 + $0xc8] sm:$0xff]  ;;  %vm1283_vm1 = vcmask 261120  }
   0xf   : > { %v6187_v6 = vshrl.u32 %v797_v0, 7  ;;  %v5338_v7 = vpack.c.bf16 %v774_v5, %v773_v4 }
  0x10   : > { %s8166_s11 = smov (!%p449_p3, %s4675_s11), 31  ;;  %5335 = vmatprep.subr.bf16.mxu1 %v5334_v3  ;;  %s8168_s16 = smov (!%p443_p4, %s4673_s16), 63 }
  0x11   : > { %8062 = vst [vmem:[#allocation2_spill] sm:$0xff] %v6187_v6  ;;  %v799_v9 = vsub.s32 1, %v6187_v6  ;;  %5337 = vmatpush3.bf16.msra.mxu1 %v5334_v3  ;;  %s6198_s23 = sshll.u32 %s8166_s11, 3  ;;  %s6212_s27 = sshll.u32 %s8168_s16, 3 }
  0x12   : > { %5339 = vmatprep.subr.bf16.mxu1 %v5338_v7  ;;  %s6204_s26 = scalar_lea.vmem %s7999_s1, %s6198_s23  ;;  %s6225_s10 = scalar_lea.vmem %s7998_s0, %s6212_s27 }
  0x13   : > { %v6206_v10 = vrot.slane %v796_v8, %v799_v9  ;;  %v533_v11 = vld [vmem:[%s6204_s26 + $0x10] sm:$0xff]  ;;  %v531_v12 = vld [vmem:[%s6204_s26] sm:$0xff]  ;;  %v534_v13 = vld [vmem:[%s6204_s26 + $0x18] sm:$0xff]  ;;  %s4776_s12 = sshll.u32 %s8166_s11, 4  ;;  %s6375_s18 = scalar_lea.vmem %s8000_s2, %s6212_s27 }
  0x14   : > { %v532_v17 = vld [vmem:[%s6204_s26 + $0x8] sm:$0xff]  ;;  %v535_v20 = vld [vmem:[%s6204_s26 + $0x20] sm:$0xff]  ;;  %v538_v29 = vld [vmem:[%s6204_s26 + $0x38] sm:$0xff]  ;;  %s6334_s15 = scalar_lea.vmem %s8001_s3, %s4776_s12  ;;  %s4777_s19 = sshll.u32 %s8168_s16, 4 }
  0x15   : > { %v803_v14 = vmul.f32 %v6206_v10, %v533_v11  ;;  %v801_v15 = vmul.f32 %v6206_v10, %v531_v12  ;;  %v804_v16 = vmul.f32 %v6206_v10, %v534_v13  ;;  %5341 = vmatpush3.bf16.msra.mxu1 %v5338_v7  ;;  %v802_v18 = vmul.f32 %v6206_v10, %v532_v17  ;;  %v536_v19 = vld [vmem:[%s6204_s26 + $0x28] sm:$0xff]  ;;  %v499_v27 = vld [vmem:[%s6225_s10] sm:$0xff]  ;;  %v537_v30 = vld [vmem:[%s6204_s26 + $0x30] sm:$0xff]  ;;  %s6461_s22 = scalar_lea.vmem %s8002_s4, %s4777_s19  ;;  %s6466_s28 = scalar_lea.vmem %s8003_s5, %s4777_s19 }
  0x16   : > { %v806_v25 = vmul.f32 %v6206_v10, %v536_v19  ;;  %v805_v26 = vmul.f32 %v6206_v10, %v535_v20  ;;  %v500_v28 = vld [vmem:[%s6225_s10 + $0x8] sm:$0xff]  ;;  %5036 = vmatprep.mubr.msk.f32.mxu1 %vm1283_vm1, %v499_v27  ;;  %v501_v31 = vld [vmem:[%s6225_s10 + $0x10] sm:$0xff]  ;;  %v502_v32 = vld [vmem:[%s6225_s10 + $0x18] sm:$0xff]  ;;  %v808_v35 = vmul.f32 %v6206_v10, %v538_v29  ;;  %v807_v36 = vmul.f32 %v6206_v10, %v537_v30  ;;  %s7008_s14 = scalar_lea.vmem %s8004_s6, %s6198_s23  ;;  %s7015_s19 = scalar_lea.vmem %s8005_s7, %s6198_s23 }
  0x17   : > { %v824_v21 = vsel %vm817_vm0, %v803_v14, 0.0  ;;  %v818_v22 = vsel %vm817_vm0, %v801_v15, 0.0  ;;  %v827_v23 = vsel %vm817_vm0, %v804_v16, 0.0  ;;  %v821_v24 = vsel %vm817_vm0, %v802_v18, 0.0  ;;  %v540_v37 = vld [vmem:[%s6204_s26 + $0x48] sm:$0xff]  ;;  %v539_v38 = vld [vmem:[%s6204_s26 + $0x40] sm:$0xff] }
  0x18   : > { %825 = vadd.xlane.f32.xlu1 %v824_v21  ;;  %819 = vadd.xlane.f32.xlu0 %v818_v22  ;;  %v833_v33 = vsel %vm817_vm0, %v806_v25, 0.0  ;;  %v830_v34 = vsel %vm817_vm0, %v805_v26, 0.0  ;;  %v503_v39 = vld [vmem:[%s6225_s10 + $0x20] sm:$0xff]  ;;  %v504_v40 = vld [vmem:[%s6225_s10 + $0x28] sm:$0xff]  ;;  %v839_v41 = vsel %vm817_vm0, %v808_v35, 0.0  ;;  %v836_v42 = vsel %vm817_vm0, %v807_v36, 0.0 }
  0x19   : > { %5037 = vmatmul.mubr.msk.f32.vlgmr.msra.gmra.mrb[0].mxu1 %vm1283_vm1, %v500_v28  ;;  %v810_v43 = vmul.f32 %v6206_v10, %v540_v37  ;;  %v809_v44 = vmul.f32 %v6206_v10, %v539_v38  ;;  %v542_v45 = vld [vmem:[%s6204_s26 + $0x58] sm:$0xff]  ;;  %v541_v46 = vld [vmem:[%s6204_s26 + $0x50] sm:$0xff]  ;;  %v544_v53 = vld [vmem:[%s6204_s26 + $0x68] sm:$0xff] }
  0x1a   : > { %5039 = vmatprep.mubr.msk.f32.mxu1 %vm1283_vm1, %v501_v31  ;;  %v505_v47 = vld [vmem:[%s6225_s10 + $0x30] sm:$0xff]  ;;  %v506_v48 = vld [vmem:[%s6225_s10 + $0x38] sm:$0xff]  ;;  %v812_v51 = vmul.f32 %v6206_v10, %v542_v45  ;;  %v811_v52 = vmul.f32 %v6206_v10, %v541_v46  ;;  %v543_v54 = vld [vmem:[%s6204_s26 + $0x60] sm:$0xff]  ;;  %v814_v59 = vmul.f32 %v6206_v10, %v544_v53 }
  0x1b   : > { %v845_v49 = vsel %vm817_vm0, %v810_v43, 0.0  ;;  %v842_v50 = vsel %vm817_vm0, %v809_v44, 0.0  ;;  %v507_v55 = vld [vmem:[%s6225_s10 + $0x40] sm:$0xff]  ;;  %v508_v56 = vld [vmem:[%s6225_s10 + $0x48] sm:$0xff]  ;;  %v813_v60 = vmul.f32 %v6206_v10, %v543_v54  ;;  %v546_v61 = vld [vmem:[%s6204_s26 + $0x78] sm:$0xff] }
  0x1c   : > { %828 = vadd.xlane.f32.xlu1 %v827_v23  ;;  %822 = vadd.xlane.f32.xlu0 %v821_v24  ;;  %v851_v57 = vsel %vm817_vm0, %v812_v51, 0.0  ;;  %v848_v58 = vsel %vm817_vm0, %v811_v52, 0.0  ;;  %v545_v62 = vld [vmem:[%s6204_s26 + $0x70] sm:$0xff]  ;;  %v510_v0 = vld [vmem:[%s6225_s10 + $0x58] sm:$0xff]  ;;  %v857_v1 = vsel %vm817_vm0, %v814_v59, 0.0  ;;  %v816_v3 = vmul.f32 %v6206_v10, %v546_v61  ;;  %v511_v5 = vld [vmem:[%s6225_s10 + $0x60] sm:$0xff] }
  0x1d   : > { %5040 = vmatmul.mubr.msk.f32.gmra.mrb[2].mxu1 %vm1283_vm1, %v502_v32  ;;  %v509_v63 = vld [vmem:[%s6225_s10 + $0x50] sm:$0xff]  ;;  %v854_v2 = vsel %vm817_vm0, %v813_v60, 0.0  ;;  %v815_v4 = vmul.f32 %v6206_v10, %v545_v62  ;;  %v512_v7 = vld [vmem:[%s6225_s10 + $0x68] sm:$0xff]  ;;  %v514_v11 = vld [vmem:[%s6225_s10 + $0x78] sm:$0xff]  ;;  %v8011_v24 = vmov 0.0  }
  0x1e   : > { %5042 = vmatprep.mubr.msk.f32.mxu1 %vm1283_vm1, %v503_v39  ;;  %v863_v8 = vsel %vm817_vm0, %v816_v3, 0.0  ;;  %v513_v10 = vld [vmem:[%s6225_s10 + $0x70] sm:$0xff]  ;;  %v515_v12 = vld [vmem:[%s6225_s10 + $0x80] sm:$0xff]  ;;  %v516_v13 = vld [vmem:[%s6225_s10 + $0x88] sm:$0xff]  ;;  %962 = vmatprep.mubr.f32.mxu0 %v8011_v24 }
  0x1f   : > { %v860_v9 = vsel %vm817_vm0, %v815_v4, 0.0  ;;  %v517_v14 = vld [vmem:[%s6225_s10 + $0x90] sm:$0xff]  ;;  %v518_v15 = vld [vmem:[%s6225_s10 + $0x98] sm:$0xff]  ;;  %v519_v16 = vld [vmem:[%s6225_s10 + $0xa0] sm:$0xff] }
  0x20   : > { %834 = vadd.xlane.f32.xlu1 %v833_v33  ;;  %831 = vadd.xlane.f32.xlu0 %v830_v34  ;;  %v520_v17 = vld [vmem:[%s6225_s10 + $0xa8] sm:$0xff]  ;;  %v521_v18 = vld [vmem:[%s6225_s10 + $0xb0] sm:$0xff]  ;;  %v522_v19 = vld [vmem:[%s6225_s10 + $0xb8] sm:$0xff] }
  0x21   : > { %5043 = vmatmul.mubr.msk.f32.gmra.mrb[4].mxu1 %vm1283_vm1, %v504_v40  ;;  %v523_v20 = vld [vmem:[%s6225_s10 + $0xc0] sm:$0xff]  ;;  %v524_v21 = vld [vmem:[%s6225_s10 + $0xc8] sm:$0xff]  ;;  %v525_v22 = vld [vmem:[%s6225_s10 + $0xd0] sm:$0xff] }
  0x22   : > { %5045 = vmatprep.mubr.msk.f32.mxu1 %vm1283_vm1, %v505_v47  ;;  %v526_v23 = vld [vmem:[%s6225_s10 + $0xd8] sm:$0xff]  ;;  %v527_v25 = vld [vmem:[%s6225_s10 + $0xe0] sm:$0xff]  ;;  %v528_v26 = vld [vmem:[%s6225_s10 + $0xe8] sm:$0xff] }
  0x23   : > { %v529_v27 = vld [vmem:[%s6225_s10 + $0xf0] sm:$0xff]  ;;  %v530_v28 = vld [vmem:[%s6225_s10 + $0xf8] sm:$0xff]  ;;  %v584_v31 = vld [vmem:[%s6334_s15 + $0x28] sm:$0xff] }
  0x24   : > { %840 = vadd.xlane.f32.xlu1 %v839_v41  ;;  %837 = vadd.xlane.f32.xlu0 %v836_v42  ;;  %v6338_v32 = vld [vmem:[%s6334_s15 + $0x8] sm:$0xff]  ;;  %v579_v33 = vld [vmem:[%s6334_s15] sm:$0xff]  ;;  %v586_v34 = vld [vmem:[%s6334_s15 + $0x38] sm:$0xff] }
  0x25   : > { %5046 = vmatmul.mubr.msk.f32.gmra.mrb[6].mxu1 %vm1283_vm1, %v506_v48  ;;  %v582_v35 = vld [vmem:[%s6334_s15 + $0x18] sm:$0xff]  ;;  %v581_v36 = vld [vmem:[%s6334_s15 + $0x10] sm:$0xff]  ;;  %v583_v41 = vld [vmem:[%s6334_s15 + $0x20] sm:$0xff] }
  0x26   : > { %5048 = vmatprep.mubr.msk.f32.mxu1 %vm1283_vm1, %v507_v55  ;;  %v585_v42 = vld [vmem:[%s6334_s15 + $0x30] sm:$0xff]  ;;  %v590_v47 = vld [vmem:[%s6334_s15 + $0x58] sm:$0xff]  ;;  %v588_v48 = vld [vmem:[%s6334_s15 + $0x48] sm:$0xff] }
  0x27   : > { %v589_v51 = vld [vmem:[%s6334_s15 + $0x50] sm:$0xff]  ;;  %v587_v52 = vld [vmem:[%s6334_s15 + $0x40] sm:$0xff]  ;;  %v594_v62 = vld [vmem:[%s6334_s15 + $0x78] sm:$0xff] }
  0x28   : > { %846 = vadd.xlane.f32.xlu1 %v845_v49  ;;  %843 = vadd.xlane.f32.xlu0 %v842_v50 }
  0x29   : > { %5049 = vmatmul.mubr.msk.f32.gmra.mrb[8].mxu1 %vm1283_vm1, %v508_v56 }
  0x2a   : > { %5051 = vmatprep.mubr.msk.f32.mxu1 %vm1283_vm1, %v509_v63  ;;  %v592_v63 = vld [vmem:[%s6334_s15 + $0x68] sm:$0xff] }
  0x2c   : > { %852 = vadd.xlane.f32.xlu1 %v851_v57  ;;  %849 = vadd.xlane.f32.xlu0 %v848_v58 }
  0x2d   : > { %5052 = vmatmul.mubr.msk.f32.gmra.mrb[10].mxu1 %vm1283_vm1, %v510_v0  ;;  %v593_v0 = vld [vmem:[%s6334_s15 + $0x70] sm:$0xff] }
  0x2e   : > { %5054 = vmatprep.mubr.msk.f32.mxu1 %vm1283_vm1, %v511_v5 }
  0x30   : > { %858 = vadd.xlane.f32.xlu1 %v857_v1  ;;  %855 = vadd.xlane.f32.xlu0 %v854_v2  ;;  %v591_v1 = vld [vmem:[%s6334_s15 + $0x60] sm:$0xff] }
  0x31   : > { %5055 = vmatmul.mubr.msk.f32.gmra.mrb[12].mxu1 %vm1283_vm1, %v512_v7 }
  0x32   : > { %5057 = vmatprep.mubr.msk.f32.mxu1 %vm1283_vm1, %v513_v10 }
  0x34   : > { %864 = vadd.xlane.f32.xlu1 %v863_v8  ;;  %861 = vadd.xlane.f32.xlu0 %v860_v9 }
  0x35   : > { %5058 = vmatmul.mubr.msk.f32.gmra.mrb[14].mxu1 %vm1283_vm1, %v514_v11 }
  0x36   : > { %5060 = vmatprep.mubr.msk.f32.mxu1 %vm1283_vm1, %v515_v12  ;;  %v598_v12 = vld [vmem:[%s6334_s15 + $0x98] sm:$0xff] }
  0x39   : > { %5061 = vmatmul.mubr.msk.f32.gmra.mrb[16].mxu1 %vm1283_vm1, %v516_v13  ;;  %v596_v13 = vld [vmem:[%s6334_s15 + $0x88] sm:$0xff] }
  0x3a   : > { %5063 = vmatprep.mubr.msk.f32.mxu1 %vm1283_vm1, %v517_v14  ;;  %v597_v14 = vld [vmem:[%s6334_s15 + $0x90] sm:$0xff] }
  0x3d   : > { %5064 = vmatmul.mubr.msk.f32.gmra.mrb[18].mxu1 %vm1283_vm1, %v518_v15  ;;  %v595_v15 = vld [vmem:[%s6334_s15 + $0x80] sm:$0xff] }
  0x3e   : > { %5066 = vmatprep.mubr.msk.f32.mxu1 %vm1283_vm1, %v519_v16 }
  0x41   : > { %5067 = vmatmul.mubr.msk.f32.gmra.mrb[20].mxu1 %vm1283_vm1, %v520_v17 }
  0x42   : > { %5069 = vmatprep.mubr.msk.f32.mxu1 %vm1283_vm1, %v521_v18 }
  0x45   : > { %5070 = vmatmul.mubr.msk.f32.gmra.mrb[22].mxu1 %vm1283_vm1, %v522_v19 }
  0x46   : > { %5072 = vmatprep.mubr.msk.f32.mxu1 %vm1283_vm1, %v523_v20 }
  0x49   : > { %5073 = vmatmul.mubr.msk.f32.gmra.mrb[24].mxu1 %vm1283_vm1, %v524_v21 }
  0x4a   : > { %5075 = vmatprep.mubr.msk.f32.mxu1 %vm1283_vm1, %v525_v22 }
  0x4d   : > { %5076 = vmatmul.mubr.msk.f32.gmra.mrb[26].mxu1 %vm1283_vm1, %v526_v23 }
  0x4e   : > { %5078 = vmatprep.mubr.msk.f32.mxu1 %vm1283_vm1, %v527_v25  ;;  %v602_v25 = vld [vmem:[%s6334_s15 + $0xb8] sm:$0xff] }
  0x51   : > { %5079 = vmatmul.mubr.msk.f32.gmra.mrb[28].mxu1 %vm1283_vm1, %v528_v26  ;;  %v600_v26 = vld [vmem:[%s6334_s15 + $0xa8] sm:$0xff] }
  0x52   : > { %5081 = vmatprep.mubr.msk.f32.mxu1 %vm1283_vm1, %v529_v27  ;;  %v601_v27 = vld [vmem:[%s6334_s15 + $0xb0] sm:$0xff] }
  0x55   : > { %5082 = vmatmul.mubr.msk.f32.gmra.mrb[30].mxu1 %vm1283_vm1, %v530_v28  ;;  %v599_v28 = vld [vmem:[%s6334_s15 + $0xa0] sm:$0xff] }
  0xa5   : > { %v826_v29 = vpop.xlane.xlu1 %825  ;;  %v820_v30 = vpop.xlane.xlu0 %819 }
  0xa6   : > { %v871_v37 = vmul.f32 %v826_v29, %v584_v31  ;;  %v867_v40 = vmul.f32 %v820_v30, %v6338_v32  ;;  %v866_v45 = vmul.f32 %v820_v30, %v579_v33  ;;  %v870_v53 = vmul.f32 %v826_v29, %v583_v41  ;;  %v603_v41 = vld [vmem:[%s6334_s15 + $0xc0] sm:$0xff] }
  0xa9   : > { %v829_v38 = vpop.xlane.xlu1 %828  ;;  %v823_v39 = vpop.xlane.xlu0 %822 }
  0xaa   : > { %v873_v43 = vmul.f32 %v829_v38, %v586_v34  ;;  %v869_v44 = vmul.f32 %v823_v39, %v582_v35  ;;  %v868_v46 = vmul.f32 %v823_v39, %v581_v36  ;;  %v872_v54 = vmul.f32 %v829_v38, %v585_v42  ;;  %v606_v38 = vld [vmem:[%s6334_s15 + $0xd8] sm:$0xff]  ;;  %v604_v39 = vld [vmem:[%s6334_s15 + $0xc8] sm:$0xff] }
  0xac   : > { %v5302_v49 = vpack.c.bf16 %v869_v44, %v867_v40  ;;  %v5304_v50 = vpack.c.bf16 %v868_v46, %v866_v45  ;;  %v5306_v57 = vpack.c.bf16 %v873_v43, %v871_v37  ;;  %v5308_v3 = vpack.c.bf16 %v872_v54, %v870_v53  ;;  %v605_v40 = vld [vmem:[%s6334_s15 + $0xd0] sm:$0xff]  ;;  %v607_v53 = vld [vmem:[%s6334_s15 + $0xe0] sm:$0xff] }
  0xad   : > { %v835_v55 = vpop.xlane.xlu1 %834  ;;  %v832_v56 = vpop.xlane.xlu0 %831 }
  0xae   : > { %5303 = vmatprep.subr.bf16.mxu0 %v5302_v49  ;;  %v877_v58 = vmul.f32 %v835_v55, %v590_v47  ;;  %v875_v59 = vmul.f32 %v832_v56, %v588_v48  ;;  %v876_v60 = vmul.f32 %v835_v55, %v589_v51  ;;  %v874_v61 = vmul.f32 %v832_v56, %v587_v52  ;;  %v608_v51 = vld [vmem:[%s6334_s15 + $0xe8] sm:$0xff]  ;;  %v609_v52 = vld [vmem:[%s6334_s15 + $0xf0] sm:$0xff] }
  0xaf   : > { %5305 = vmatpush1.bf16.msra.mxu0 %v5304_v50  ;;  %v610_v50 = vld [vmem:[%s6334_s15 + $0xf8] sm:$0xff] }
  0xb0   : > { %5307 = vmatprep.subr.bf16.mxu0 %v5306_v57  ;;  %v5310_v2 = vpack.c.bf16 %v877_v58, %v875_v59  ;;  %v5312_v11 = vpack.c.bf16 %v876_v60, %v874_v61 }
  0xb1   : > { %v841_v4 = vpop.xlane.xlu1 %840  ;;  %v838_v5 = vpop.xlane.xlu0 %837 }
  0xb2   : > { %v881_v7 = vmul.f32 %v841_v4, %v594_v62  ;;  %v879_v8 = vmul.f32 %v838_v5, %v592_v63  ;;  %v880_v9 = vmul.f32 %v841_v4, %v593_v0  ;;  %v878_v10 = vmul.f32 %v838_v5, %v591_v1  ;;  %v547_v0 = vld [vmem:[%s6375_s18] sm:$0xff]  ;;  %v550_v4 = vld [vmem:[%s6375_s18 + $0x18] sm:$0xff] }
  0xb3   : > { %5309 = vmatpush1.bf16.msra.mxu0 %v5308_v3  ;;  %v8008_v1 = vmov 0.0|0.0   ;;  %v549_v3 = vld [vmem:[%s6375_s18 + $0x10] sm:$0xff]  ;;  %v551_v5 = vld [vmem:[%s6375_s18 + $0x20] sm:$0xff] }
  0xb4   : > { %5311 = vmatprep.subr.bf16.mxu0 %v5310_v2  ;;  %v5314_v16 = vpack.c.bf16 %v881_v7, %v879_v8  ;;  %v5316_v23 = vpack.c.bf16 %v880_v9, %v878_v10  ;;  %5342 = vmatprep.subr.bf16.mxu1 %v8008_v1  ;;  %v548_v2 = vld [vmem:[%s6375_s18 + $0x8] sm:$0xff]  ;;  %v553_v8 = vld [vmem:[%s6375_s18 + $0x30] sm:$0xff]  ;;  %v554_v9 = vld [vmem:[%s6375_s18 + $0x38] sm:$0xff] }
  0xb5   : > { %v847_v17 = vpop.xlane.xlu1 %846  ;;  %v844_v18 = vpop.xlane.xlu0 %843  ;;  %v552_v7 = vld [vmem:[%s6375_s18 + $0x28] sm:$0xff]  ;;  %v555_v10 = vld [vmem:[%s6375_s18 + $0x40] sm:$0xff] }
  0xb6   : > { %v885_v19 = vmul.f32 %v847_v17, %v598_v12  ;;  %v883_v20 = vmul.f32 %v844_v18, %v596_v13  ;;  %v884_v21 = vmul.f32 %v847_v17, %v597_v14  ;;  %v882_v22 = vmul.f32 %v844_v18, %v595_v15  ;;  %v556_v12 = vld [vmem:[%s6375_s18 + $0x48] sm:$0xff] }
  0xb7   : > { %5313 = vmatpush1.bf16.msra.mxu0 %v5312_v11 }
  0xb8   : > { %5315 = vmatprep.subr.bf16.mxu0 %v5314_v16  ;;  %v5318_v29 = vpack.c.bf16 %v885_v19, %v883_v20  ;;  %v5320_v37 = vpack.c.bf16 %v884_v21, %v882_v22  ;;  %v557_v16 = vld [vmem:[%s6375_s18 + $0x50] sm:$0xff]  ;;  %v558_v20 = vld [vmem:[%s6375_s18 + $0x58] sm:$0xff] }
  0xb9   : > { %v853_v30 = vpop.xlane.xlu1 %852  ;;  %v850_v31 = vpop.xlane.xlu0 %849 }
  0xba   : > { %v889_v33 = vmul.f32 %v853_v30, %v602_v25  ;;  %v887_v34 = vmul.f32 %v850_v31, %v600_v26  ;;  %v888_v35 = vmul.f32 %v853_v30, %v601_v27  ;;  %v886_v36 = vmul.f32 %v850_v31, %v599_v28  ;;  %v559_v25 = vld [vmem:[%s6375_s18 + $0x60] sm:$0xff] }
  0xbb   : > { %5317 = vmatpush1.bf16.msra.mxu0 %v5316_v23 }
  0xbc   : > { %5319 = vmatprep.subr.bf16.mxu0 %v5318_v29  ;;  %v5322_v42 = vpack.c.bf16 %v889_v33, %v887_v34  ;;  %v5324_v49 = vpack.c.bf16 %v888_v35, %v886_v36  ;;  %v560_v29 = vld [vmem:[%s6375_s18 + $0x68] sm:$0xff]  ;;  %v561_v34 = vld [vmem:[%s6375_s18 + $0x70] sm:$0xff] }
  0xbd   : > { %v859_v43 = vpop.xlane.xlu1 %858  ;;  %v856_v44 = vpop.xlane.xlu0 %855 }
  0xbe   : > { %v893_v45 = vmul.f32 %v859_v43, %v606_v38  ;;  %v891_v46 = vmul.f32 %v856_v44, %v604_v39  ;;  %v892_v47 = vmul.f32 %v859_v43, %v605_v40  ;;  %v890_v48 = vmul.f32 %v856_v44, %v603_v41  ;;  %v562_v38 = vld [vmem:[%s6375_s18 + $0x78] sm:$0xff] }
  0xbf   : > { %5321 = vmatpush1.bf16.msra.mxu0 %v5320_v37 }
  0xc0   : > { %5323 = vmatprep.subr.bf16.mxu0 %v5322_v42  ;;  %v5326_v54 = vpack.c.bf16 %v893_v45, %v891_v46  ;;  %v5328_v61 = vpack.c.bf16 %v892_v47, %v890_v48  ;;  %v563_v42 = vld [vmem:[%s6375_s18 + $0x80] sm:$0xff]  ;;  %v564_v46 = vld [vmem:[%s6375_s18 + $0x88] sm:$0xff] }
  0xc1   : > { %v865_v55 = vpop.xlane.xlu1 %864  ;;  %v862_v56 = vpop.xlane.xlu0 %861 }
  0xc2   : > { %v897_v57 = vmul.f32 %v865_v55, %v610_v50  ;;  %v895_v58 = vmul.f32 %v862_v56, %v608_v51  ;;  %v896_v59 = vmul.f32 %v865_v55, %v609_v52  ;;  %v894_v60 = vmul.f32 %v862_v56, %v607_v53  ;;  %v565_v50 = vld [vmem:[%s6375_s18 + $0x90] sm:$0xff] }
  0xc3   : > { %5325 = vmatpush1.bf16.msra.mxu0 %v5324_v49 }
  0xc4   : > { %5327 = vmatprep.subr.bf16.mxu0 %v5326_v54  ;;  %v5330_v62 = vpack.c.bf16 %v897_v57, %v895_v58  ;;  %v5332_v63 = vpack.c.bf16 %v896_v59, %v894_v60  ;;  %v566_v54 = vld [vmem:[%s6375_s18 + $0x98] sm:$0xff]  ;;  %v567_v58 = vld [vmem:[%s6375_s18 + $0xa0] sm:$0xff] }
  0xc7   : > { %5329 = vmatpush1.bf16.msra.mxu0 %v5328_v61 }
  0xc8   : > { %5331 = vmatprep.subr.bf16.mxu0 %v5330_v62  ;;  %v568_v62 = vld [vmem:[%s6375_s18 + $0xa8] sm:$0xff] }
  0xcb   : > { %5333 = vmatpush1.bf16.msra.mxu0 %v5332_v63 }
  0xce   : > { %963 = vmatmul.mubr.f32.vlgmr.msra.gmra.mrb[0].mxu0 %v547_v0 }
  0xcf   : > { %968 = vmatprep.mubr.f32.mxu0 %v8011_v24 }
  0xd2   : > { %969 = vmatmul.mubr.f32.gmra.mrb[2].mxu0 %v548_v2 }
  0xd3   : > { %974 = vmatprep.mubr.f32.mxu0 %v8011_v24 }
  0xd6   : > { %975 = vmatmul.mubr.f32.gmra.mrb[4].mxu0 %v549_v3  ;;  %v569_v3 = vld [vmem:[%s6375_s18 + $0xb0] sm:$0xff] }
  0xd7   : > { %980 = vmatprep.mubr.f32.mxu0 %v8011_v24 }
  0xda   : > { %981 = vmatmul.mubr.f32.gmra.mrb[6].mxu0 %v550_v4 }
  0xdb   : > { %986 = vmatprep.mubr.f32.mxu0 %v8011_v24 }
  0xde   : > { %987 = vmatmul.mubr.f32.gmra.mrb[8].mxu0 %v551_v5 }
  0xdf   : > { %992 = vmatprep.mubr.f32.mxu0 %v8011_v24 }
  0xe2   : > { %993 = vmatmul.mubr.f32.gmra.mrb[10].mxu0 %v552_v7 }
  0xe3   : > { %998 = vmatprep.mubr.f32.mxu0 %v8011_v24 }
  0xe6   : > { %999 = vmatmul.mubr.f32.gmra.mrb[12].mxu0 %v553_v8  ;;  %v570_v8 = vld [vmem:[%s6375_s18 + $0xb8] sm:$0xff] }
  0xe7   : > { %1004 = vmatprep.mubr.f32.mxu0 %v8011_v24 }
  0xea   : > { %1005 = vmatmul.mubr.f32.gmra.mrb[14].mxu0 %v554_v9 }
  0xeb   : > { %1010 = vmatprep.mubr.f32.mxu0 %v8011_v24 }
  0xec   : > { %v5038_v11 = vpop.f32.mrb[0].mxu1 }
  0xed   : > { %v1446_v13 = vpop.f32.mrb[1].mxu1 }
  0xee   : > { %1011 = vmatmul.mubr.f32.gmra.mrb[16].mxu0 %v555_v10  ;;  %v5343_v14 = vpack.c.bf16 %v5038_v11, %v1446_v13 }
  0xef   : > { %1016 = vmatprep.mubr.f32.mxu0 %v8011_v24 }
  0xf0   : > { %v5041_v15 = vpop.f32.mrb[2].mxu1  ;;  %5344 = vmatpush1.bf16.msra.mxu1 %v5343_v14 }
  0xf1   : > { %v1456_v17 = vpop.f32.mrb[3].mxu1  ;;  %5345 = vmatprep.subr.bf16.mxu1 %v8008_v1 }
  0xf2   : > { %1017 = vmatmul.mubr.f32.gmra.mrb[18].mxu0 %v556_v12  ;;  %v5346_v18 = vpack.c.bf16 %v5041_v15, %v1456_v17  ;;  %v571_v12 = vld [vmem:[%s6375_s18 + $0xc0] sm:$0xff]  ;;  %v572_v15 = vld [vmem:[%s6375_s18 + $0xc8] sm:$0xff]  ;;  %v574_v17 = vld [vmem:[%s6375_s18 + $0xd8] sm:$0xff] }
  0xf3   : > { %1022 = vmatprep.mubr.f32.mxu0 %v8011_v24 }
  0xf4   : > { %v5044_v19 = vpop.f32.mrb[4].mxu1  ;;  %5347 = vmatpush1.bf16.msra.mxu1 %v5346_v18  ;;  %v575_v18 = vld [vmem:[%s6375_s18 + $0xe0] sm:$0xff] }
  0xf5   : > { %v1466_v21 = vpop.f32.mrb[5].mxu1  ;;  %5348 = vmatprep.subr.bf16.mxu1 %v8008_v1 }
  0xf6   : > { %1023 = vmatmul.mubr.f32.gmra.mrb[20].mxu0 %v557_v16  ;;  %v5349_v22 = vpack.c.bf16 %v5044_v19, %v1466_v21  ;;  %v573_v16 = vld [vmem:[%s6375_s18 + $0xd0] sm:$0xff]  ;;  %v576_v19 = vld [vmem:[%s6375_s18 + $0xe8] sm:$0xff]  ;;  %v578_v21 = vld [vmem:[%s6375_s18 + $0xf8] sm:$0xff] }
  0xf7   : > { %1028 = vmatprep.mubr.f32.mxu0 %v8011_v24 }
  0xf8   : > { %v5047_v23 = vpop.f32.mrb[6].mxu1  ;;  %5350 = vmatpush1.bf16.msra.mxu1 %v5349_v22  ;;  %v611_v22 = vld [vmem:[%s6461_s22] sm:$0xff] }
  0xf9   : > { %v1476_v26 = vpop.f32.mrb[7].mxu1  ;;  %5351 = vmatprep.subr.bf16.mxu1 %v8008_v1 }
  0xfa   : > { %1029 = vmatmul.mubr.f32.gmra.mrb[22].mxu0 %v558_v20  ;;  %v5352_v27 = vpack.c.bf16 %v5047_v23, %v1476_v26  ;;  %v577_v20 = vld [vmem:[%s6375_s18 + $0xf0] sm:$0xff]  ;;  %v676_v26 = vld [vmem:[%s6466_s28 + $0x8] sm:$0xff] }
  0xfb   : > { %1034 = vmatprep.mubr.f32.mxu0 %v8011_v24 }
  0xfc   : > { %v5050_v28 = vpop.f32.mrb[8].mxu1  ;;  %5353 = vmatpush1.bf16.msra.mxu1 %v5352_v27 }
  0xfd   : > { %v1486_v30 = vpop.f32.mrb[9].mxu1  ;;  %5354 = vmatprep.subr.bf16.mxu1 %v8008_v1 }
  0xfe   : > { %1035 = vmatmul.mubr.f32.gmra.mrb[24].mxu0 %v559_v25  ;;  %v5355_v31 = vpack.c.bf16 %v5050_v28, %v1486_v30  ;;  %v675_v28 = vld [vmem:[%s6466_s28] sm:$0xff]  ;;  %v613_v30 = vld [vmem:[%s6461_s22 + $0x10] sm:$0xff] }
  0xff   : > { %1040 = vmatprep.mubr.f32.mxu0 %v8011_v24 }
 0x100   : > { %v5053_v33 = vpop.f32.mrb[10].mxu1  ;;  %5356 = vmatpush1.bf16.msra.mxu1 %v5355_v31  ;;  %v614_v31 = vld [vmem:[%s6461_s22 + $0x18] sm:$0xff] }
 0x101   : > { %v1496_v35 = vpop.f32.mrb[11].mxu1  ;;  %5357 = vmatprep.subr.bf16.mxu1 %v8008_v1 }
 0x102   : > { %1041 = vmatmul.mubr.f32.gmra.mrb[26].mxu0 %v560_v29  ;;  %v5358_v36 = vpack.c.bf16 %v5053_v33, %v1496_v35 }
 0x103   : > { %1046 = vmatprep.mubr.f32.mxu0 %v8011_v24 }
 0x104   : > { %v5056_v37 = vpop.f32.mrb[12].mxu1  ;;  %5359 = vmatpush1.bf16.msra.mxu1 %v5358_v36 }
 0x105   : > { %v1506_v39 = vpop.f32.mrb[13].mxu1  ;;  %5360 = vmatprep.subr.bf16.mxu1 %v8008_v1 }
 0x106   : > { %1047 = vmatmul.mubr.f32.gmra.mrb[28].mxu0 %v561_v34  ;;  %v5361_v40 = vpack.c.bf16 %v5056_v37, %v1506_v39  ;;  %v678_v37 = vld [vmem:[%s6466_s28 + $0x18] sm:$0xff]  ;;  %v677_v39 = vld [vmem:[%s6466_s28 + $0x10] sm:$0xff] }
 0x107   : > { %1052 = vmatprep.mubr.f32.mxu0 %v8011_v24 }
 0x108   : > { %v5059_v41 = vpop.f32.mrb[14].mxu1  ;;  %5362 = vmatpush1.bf16.msra.mxu1 %v5361_v40 }
 0x109   : > { %v1516_v43 = vpop.f32.mrb[15].mxu1  ;;  %5363 = vmatprep.subr.bf16.mxu1 %v8008_v1 }
 0x10a   : > { %1053 = vmatmul.mubr.f32.gmra.mrb[30].mxu0 %v562_v38  ;;  %v5364_v44 = vpack.c.bf16 %v5059_v41, %v1516_v43  ;;  %v615_v41 = vld [vmem:[%s6461_s22 + $0x20] sm:$0xff] }
 0x10b   : > { %1058 = vmatprep.mubr.f32.mxu0 %v8011_v24 }
 0x10c   : > { %v5062_v45 = vpop.f32.mrb[16].mxu1  ;;  %5365 = vmatpush1.bf16.msra.mxu1 %v5364_v44 }
 0x10d   : > { %v1526_v47 = vpop.f32.mrb[17].mxu1  ;;  %5366 = vmatprep.subr.bf16.mxu1 %v8008_v1 }
 0x10e   : > { %1059 = vmatmul.mubr.f32.gmra.mrb[32].mxu0 %v563_v42  ;;  %v5367_v48 = vpack.c.bf16 %v5062_v45, %v1526_v47  ;;  %v616_v42 = vld [vmem:[%s6461_s22 + $0x28] sm:$0xff] }
 0x10f   : > { %1064 = vmatprep.mubr.f32.mxu0 %v8011_v24  ;;  %v680_v47 = vld [vmem:[%s6466_s28 + $0x28] sm:$0xff] }
 0x110   : > { %v5065_v49 = vpop.f32.mrb[18].mxu1  ;;  %5368 = vmatpush1.bf16.msra.mxu1 %v5367_v48 }
 0x111   : > { %v1536_v51 = vpop.f32.mrb[19].mxu1  ;;  %5369 = vmatprep.subr.bf16.mxu1 %v8008_v1 }
 0x112   : > { %1065 = vmatmul.mubr.f32.gmra.mrb[34].mxu0 %v564_v46  ;;  %v5370_v52 = vpack.c.bf16 %v5065_v49, %v1536_v51  ;;  %v679_v49 = vld [vmem:[%s6466_s28 + $0x20] sm:$0xff]  ;;  %v617_v51 = vld [vmem:[%s6461_s22 + $0x30] sm:$0xff] }
 0x113   : > { %1070 = vmatprep.mubr.f32.mxu0 %v8011_v24 }
 0x114   : > { %v5068_v53 = vpop.f32.mrb[20].mxu1  ;;  %5371 = vmatpush1.bf16.msra.mxu1 %v5370_v52  ;;  %v618_v52 = vld [vmem:[%s6461_s22 + $0x38] sm:$0xff] }
 0x115   : > { %v1546_v55 = vpop.f32.mrb[21].mxu1  ;;  %5372 = vmatprep.subr.bf16.mxu1 %v8008_v1 }
 0x116   : > { %1071 = vmatmul.mubr.f32.gmra.mrb[36].mxu0 %v565_v50  ;;  %v5373_v56 = vpack.c.bf16 %v5068_v53, %v1546_v55 }
 0x117   : > { %1076 = vmatprep.mubr.f32.mxu0 %v8011_v24 }
 0x118   : > { %v5071_v57 = vpop.f32.mrb[22].mxu1  ;;  %5374 = vmatpush1.bf16.msra.mxu1 %v5373_v56 }
 0x119   : > { %v1556_v59 = vpop.f32.mrb[23].mxu1  ;;  %5375 = vmatprep.subr.bf16.mxu1 %v8008_v1 }
 0x11a   : > { %1077 = vmatmul.mubr.f32.gmra.mrb[38].mxu0 %v566_v54  ;;  %v5376_v60 = vpack.c.bf16 %v5071_v57, %v1556_v59  ;;  %v682_v57 = vld [vmem:[%s6466_s28 + $0x38] sm:$0xff]  ;;  %v681_v59 = vld [vmem:[%s6466_s28 + $0x30] sm:$0xff] }
 0x11b   : > { %1082 = vmatprep.mubr.f32.mxu0 %v8011_v24 }
 0x11c   : > { %v5074_v61 = vpop.f32.mrb[24].mxu1  ;;  %5377 = vmatpush1.bf16.msra.mxu1 %v5376_v60 }
 0x11d   : > { %v1566_v63 = vpop.f32.mrb[25].mxu1  ;;  %5378 = vmatprep.subr.bf16.mxu1 %v8008_v1 }
 0x11e   : > { %1083 = vmatmul.mubr.f32.gmra.mrb[40].mxu0 %v567_v58  ;;  %v5379_v0 = vpack.c.bf16 %v5074_v61, %v1566_v63  ;;  %v619_v61 = vld [vmem:[%s6461_s22 + $0x40] sm:$0xff] }
 0x11f   : > { %1088 = vmatprep.mubr.f32.mxu0 %v8011_v24 }
 0x120   : > { %v5077_v2 = vpop.f32.mrb[26].mxu1  ;;  %5380 = vmatpush1.bf16.msra.mxu1 %v5379_v0 }
 0x121   : > { %v1576_v4 = vpop.f32.mrb[27].mxu1  ;;  %5381 = vmatprep.subr.bf16.mxu1 %v8008_v1 }
 0x122   : > { %1089 = vmatmul.mubr.f32.gmra.mrb[42].mxu0 %v568_v62  ;;  %v5382_v5 = vpack.c.bf16 %v5077_v2, %v1576_v4  ;;  %v620_v62 = vld [vmem:[%s6461_s22 + $0x48] sm:$0xff] }
 0x123   : > { %1094 = vmatprep.mubr.f32.mxu0 %v8011_v24  ;;  %v684_v4 = vld [vmem:[%s6466_s28 + $0x48] sm:$0xff] }
 0x124   : > { %v5080_v7 = vpop.f32.mrb[28].mxu1  ;;  %5383 = vmatpush1.bf16.msra.mxu1 %v5382_v5 }
 0x125   : > { %v1586_v9 = vpop.f32.mrb[29].mxu1  ;;  %5384 = vmatprep.subr.bf16.mxu1 %v8008_v1 }
 0x126   : > { %1095 = vmatmul.mubr.f32.gmra.mrb[44].mxu0 %v569_v3  ;;  %v5385_v10 = vpack.c.bf16 %v5080_v7, %v1586_v9  ;;  %v683_v7 = vld [vmem:[%s6466_s28 + $0x40] sm:$0xff]  ;;  %v621_v9 = vld [vmem:[%s6461_s22 + $0x50] sm:$0xff] }
 0x127   : > { %1100 = vmatprep.mubr.f32.mxu0 %v8011_v24 }
 0x128   : > { %v5083_v11 = vpop.f32.mrb[30].mxu1  ;;  %5386 = vmatpush1.bf16.msra.mxu1 %v5385_v10  ;;  %v622_v10 = vld [vmem:[%s6461_s22 + $0x58] sm:$0xff] }
 0x129   : > { %v1596_v13 = vpop.f32.mrb[31].mxu1  ;;  %5387 = vmatprep.subr.bf16.mxu1 %v8008_v1 }
 0x12a   : > { %1101 = vmatmul.mubr.f32.gmra.mrb[46].mxu0 %v570_v8  ;;  %v5388_v14 = vpack.c.bf16 %v5083_v11, %v1596_v13 }
 0x12b   : > { %1106 = vmatprep.mubr.f32.mxu0 %v8011_v24 }
 0x12c   : > { %5389 = vmatpush1.bf16.msra.mxu1 %v5388_v14 }
 0x12e   : > { %1107 = vmatmul.mubr.f32.gmra.mrb[48].mxu0 %v571_v12 }
 0x12f   : > { %1112 = vmatprep.mubr.f32.mxu0 %v8011_v24 }
 0x132   : > { %1113 = vmatmul.mubr.f32.gmra.mrb[50].mxu0 %v572_v15  ;;  %v686_v15 = vld [vmem:[%s6466_s28 + $0x58] sm:$0xff] }
 0x133   : > { %1118 = vmatprep.mubr.f32.mxu0 %v8011_v24 }
 0x136   : > { %1119 = vmatmul.mubr.f32.gmra.mrb[52].mxu0 %v573_v16 }
 0x137   : > { %1124 = vmatprep.mubr.f32.mxu0 %v8011_v24 }
 0x13a   : > { %1125 = vmatmul.mubr.f32.gmra.mrb[54].mxu0 %v574_v17  ;;  %v685_v17 = vld [vmem:[%s6466_s28 + $0x50] sm:$0xff] }
 0x13b   : > { %1130 = vmatprep.mubr.f32.mxu0 %v8011_v24 }
 0x13e   : > { %1131 = vmatmul.mubr.f32.gmra.mrb[56].mxu0 %v575_v18 }
 0x13f   : > { %1136 = vmatprep.mubr.f32.mxu0 %v8011_v24 }
 0x142   : > { %1137 = vmatmul.mubr.f32.gmra.mrb[58].mxu0 %v576_v19  ;;  %v623_v19 = vld [vmem:[%s6461_s22 + $0x60] sm:$0xff] }
 0x143   : > { %1142 = vmatprep.mubr.f32.mxu0 %v8011_v24 }
 0x146   : > { %1143 = vmatmul.mubr.f32.gmra.mrb[60].mxu0 %v577_v20  ;;  %v624_v20 = vld [vmem:[%s6461_s22 + $0x68] sm:$0xff] }
 0x147   : > { %1148 = vmatprep.mubr.f32.mxu0 %v8011_v24 }
 0x14a   : > { %1149 = vmatmul.mubr.f32.gmra.mrb[62].mxu0 %v578_v21 }
 0x14b   : > { %2062 = vmatprep.mubr.f32.mxu0 %v6338_v32  ;;  %v612_v32 = vld [vmem:[%s6461_s22 + $0x8] sm:$0xff] }
 0x1a1   : > { %v964_v23 = vpop.f32.mrb[0].mxu0 }
 0x1a2   : > { %v1155_v25 = vmul.f32 %v964_v23, %v611_v22  ;;  %v966_v27 = vpop.f32.mrb[1].mxu0 }
 0x1a3   : > { %v1156_v29 = vmul.f32 %v966_v27, %v612_v32  ;;  %v687_v27 = vld [vmem:[%s6466_s28 + $0x60] sm:$0xff] }
 0x1a4   : > { %v1219_v35 = vadd.f32 %v1155_v25, %v675_v28  ;;  %v688_v25 = vld [vmem:[%s6466_s28 + $0x68] sm:$0xff] }
 0x1a5   : > { %v1220_v33 = vadd.f32 %v1156_v29, %v676_v26  ;;  %v970_v34 = vpop.f32.mrb[2].mxu0  ;;  %v625_v29 = vld [vmem:[%s6461_s22 + $0x70] sm:$0xff] }
 0x1a6   : > { %v1157_v36 = vmul.f32 %v970_v34, %v613_v30  ;;  %v972_v38 = vpop.f32.mrb[3].mxu0  ;;  %v626_v30 = vld [vmem:[%s6461_s22 + $0x78] sm:$0xff] }
 0x1a7   : > { %v1158_v40 = vmul.f32 %v972_v38, %v614_v31  ;;  %1673 = vmatprep.mubr.f32.mxu1 %v1220_v33  ;;  %v689_v38 = vld [vmem:[%s6466_s28 + $0x70] sm:$0xff] }
 0x1a8   : > { %1674 = vmatmul.mubr.f32.vlgmr.msra.gmra.mrb[32].mxu1 %v1219_v35  ;;  %v1221_v45 = vadd.f32 %v1157_v36, %v677_v39  ;;  %v690_v36 = vld [vmem:[%s6466_s28 + $0x78] sm:$0xff] }
 0x1a9   : > { %v1222_v43 = vadd.f32 %v1158_v40, %v678_v37  ;;  %v976_v44 = vpop.f32.mrb[4].mxu0  ;;  %v627_v40 = vld [vmem:[%s6461_s22 + $0x80] sm:$0xff] }
 0x1aa   : > { %v1159_v46 = vmul.f32 %v976_v44, %v615_v41  ;;  %v978_v48 = vpop.f32.mrb[5].mxu0  ;;  %v628_v41 = vld [vmem:[%s6461_s22 + $0x88] sm:$0xff] }
 0x1ab   : > { %v1160_v50 = vmul.f32 %v978_v48, %v616_v42  ;;  %1678 = vmatprep.mubr.f32.mxu1 %v1222_v43  ;;  %v691_v48 = vld [vmem:[%s6466_s28 + $0x80] sm:$0xff] }
 0x1ac   : > { %1679 = vmatmul.mubr.f32.gmra.mrb[34].mxu1 %v1221_v45  ;;  %v1223_v55 = vadd.f32 %v1159_v46, %v679_v49  ;;  %v692_v46 = vld [vmem:[%s6466_s28 + $0x88] sm:$0xff] }
 0x1ad   : > { %v1224_v53 = vadd.f32 %v1160_v50, %v680_v47  ;;  %v982_v54 = vpop.f32.mrb[6].mxu0  ;;  %v629_v50 = vld [vmem:[%s6461_s22 + $0x90] sm:$0xff] }
 0x1ae   : > { %v1161_v56 = vmul.f32 %v982_v54, %v617_v51  ;;  %v984_v58 = vpop.f32.mrb[7].mxu0  ;;  %v630_v51 = vld [vmem:[%s6461_s22 + $0x98] sm:$0xff] }
 0x1af   : > { %v1162_v60 = vmul.f32 %v984_v58, %v618_v52  ;;  %1683 = vmatprep.mubr.f32.mxu1 %v1224_v53  ;;  %v693_v58 = vld [vmem:[%s6466_s28 + $0x90] sm:$0xff] }
 0x1b0   : > { %1684 = vmatmul.mubr.f32.gmra.mrb[36].mxu1 %v1223_v55  ;;  %v1225_v2 = vadd.f32 %v1161_v56, %v681_v59  ;;  %v694_v56 = vld [vmem:[%s6466_s28 + $0x98] sm:$0xff] }
 0x1b1   : > { %v1226_v63 = vadd.f32 %v1162_v60, %v682_v57  ;;  %v988_v0 = vpop.f32.mrb[8].mxu0  ;;  %v631_v60 = vld [vmem:[%s6461_s22 + $0xa0] sm:$0xff] }
 0x1b2   : > { %v1163_v3 = vmul.f32 %v988_v0, %v619_v61  ;;  %v990_v5 = vpop.f32.mrb[9].mxu0  ;;  %v632_v61 = vld [vmem:[%s6461_s22 + $0xa8] sm:$0xff] }
 0x1b3   : > { %v1164_v8 = vmul.f32 %v990_v5, %v620_v62  ;;  %1688 = vmatprep.mubr.f32.mxu1 %v1226_v63  ;;  %v695_v5 = vld [vmem:[%s6466_s28 + $0xa0] sm:$0xff] }
 0x1b4   : > { %1689 = vmatmul.mubr.f32.gmra.mrb[38].mxu1 %v1225_v2  ;;  %v1227_v13 = vadd.f32 %v1163_v3, %v683_v7  ;;  %v696_v3 = vld [vmem:[%s6466_s28 + $0xa8] sm:$0xff] }
 0x1b5   : > { %v1228_v11 = vadd.f32 %v1164_v8, %v684_v4  ;;  %v994_v12 = vpop.f32.mrb[10].mxu0  ;;  %v633_v8 = vld [vmem:[%s6461_s22 + $0xb0] sm:$0xff] }
 0x1b6   : > { %v1165_v14 = vmul.f32 %v994_v12, %v621_v9  ;;  %v996_v16 = vpop.f32.mrb[11].mxu0  ;;  %v634_v9 = vld [vmem:[%s6461_s22 + $0xb8] sm:$0xff] }
 0x1b7   : > { %v1166_v18 = vmul.f32 %v996_v16, %v622_v10  ;;  %1693 = vmatprep.mubr.f32.mxu1 %v1228_v11  ;;  %v697_v16 = vld [vmem:[%s6466_s28 + $0xb0] sm:$0xff] }
 0x1b8   : > { %1694 = vmatmul.mubr.f32.gmra.mrb[40].mxu1 %v1227_v13  ;;  %v1229_v32 = vadd.f32 %v1165_v14, %v685_v17  ;;  %v698_v14 = vld [vmem:[%s6466_s28 + $0xb8] sm:$0xff] }
 0x1b9   : > { %v1230_v21 = vadd.f32 %v1166_v18, %v686_v15  ;;  %v1000_v22 = vpop.f32.mrb[12].mxu0  ;;  %v635_v18 = vld [vmem:[%s6461_s22 + $0xc0] sm:$0xff] }
 0x1ba   : > { %v1167_v23 = vmul.f32 %v1000_v22, %v623_v19  ;;  %v1002_v26 = vpop.f32.mrb[13].mxu0  ;;  %v636_v19 = vld [vmem:[%s6461_s22 + $0xc8] sm:$0xff] }
 0x1bb   : > { %v1168_v28 = vmul.f32 %v1002_v26, %v624_v20  ;;  %1698 = vmatprep.mubr.f32.mxu1 %v1230_v21  ;;  %v699_v26 = vld [vmem:[%s6466_s28 + $0xc0] sm:$0xff] }
 0x1bc   : > { %1699 = vmatmul.mubr.f32.gmra.mrb[42].mxu1 %v1229_v32  ;;  %v1231_v34 = vadd.f32 %v1167_v23, %v687_v27  ;;  %v700_v23 = vld [vmem:[%s6466_s28 + $0xc8] sm:$0xff] }
 0x1bd   : > { %v1232_v31 = vadd.f32 %v1168_v28, %v688_v25  ;;  %v1006_v33 = vpop.f32.mrb[14].mxu0  ;;  %v637_v28 = vld [vmem:[%s6461_s22 + $0xd0] sm:$0xff] }
 0x1be   : > { %v1169_v35 = vmul.f32 %v1006_v33, %v625_v29  ;;  %v1008_v37 = vpop.f32.mrb[15].mxu0  ;;  %v638_v29 = vld [vmem:[%s6461_s22 + $0xd8] sm:$0xff] }
 0x1bf   : > { %v1170_v39 = vmul.f32 %v1008_v37, %v626_v30  ;;  %1703 = vmatprep.mubr.f32.mxu1 %v1232_v31  ;;  %v701_v37 = vld [vmem:[%s6466_s28 + $0xd0] sm:$0xff] }
 0x1c0   : > { %1704 = vmatmul.mubr.f32.gmra.mrb[44].mxu1 %v1231_v34  ;;  %v1233_v44 = vadd.f32 %v1169_v35, %v689_v38  ;;  %v702_v35 = vld [vmem:[%s6466_s28 + $0xd8] sm:$0xff] }
 0x1c1   : > { %v1234_v42 = vadd.f32 %v1170_v39, %v690_v36  ;;  %v1012_v43 = vpop.f32.mrb[16].mxu0  ;;  %v639_v39 = vld [vmem:[%s6461_s22 + $0xe0] sm:$0xff] }
 0x1c2   : > { %v1171_v45 = vmul.f32 %v1012_v43, %v627_v40  ;;  %v1014_v47 = vpop.f32.mrb[17].mxu0  ;;  %v640_v40 = vld [vmem:[%s6461_s22 + $0xe8] sm:$0xff] }
 0x1c3   : > { %v1172_v49 = vmul.f32 %v1014_v47, %v628_v41  ;;  %1708 = vmatprep.mubr.f32.mxu1 %v1234_v42  ;;  %v703_v47 = vld [vmem:[%s6466_s28 + $0xe0] sm:$0xff] }
 0x1c4   : > { %1709 = vmatmul.mubr.f32.gmra.mrb[46].mxu1 %v1233_v44  ;;  %v1235_v54 = vadd.f32 %v1171_v45, %v691_v48  ;;  %v704_v45 = vld [vmem:[%s6466_s28 + $0xe8] sm:$0xff] }
 0x1c5   : > { %v1236_v52 = vadd.f32 %v1172_v49, %v692_v46  ;;  %v1018_v53 = vpop.f32.mrb[18].mxu0  ;;  %v641_v49 = vld [vmem:[%s6461_s22 + $0xf0] sm:$0xff] }
 0x1c6   : > { %v1173_v55 = vmul.f32 %v1018_v53, %v629_v50  ;;  %v1020_v57 = vpop.f32.mrb[19].mxu0  ;;  %v642_v50 = vld [vmem:[%s6461_s22 + $0xf8] sm:$0xff] }
 0x1c7   : > { %v1174_v59 = vmul.f32 %v1020_v57, %v630_v51  ;;  %1713 = vmatprep.mubr.f32.mxu1 %v1236_v52  ;;  %v705_v57 = vld [vmem:[%s6466_s28 + $0xf0] sm:$0xff] }
 0x1c8   : > { %1714 = vmatmul.mubr.f32.gmra.mrb[48].mxu1 %v1235_v54  ;;  %v1237_v0 = vadd.f32 %v1173_v55, %v693_v58  ;;  %v706_v55 = vld [vmem:[%s6466_s28 + $0xf8] sm:$0xff] }
 0x1c9   : > { %v1238_v62 = vadd.f32 %v1174_v59, %v694_v56  ;;  %v1024_v63 = vpop.f32.mrb[20].mxu0  ;;  %v643_v59 = vld [vmem:[%s6461_s22 + $0x100] sm:$0xff] }
 0x1ca   : > { %v1175_v2 = vmul.f32 %v1024_v63, %v631_v60  ;;  %v1026_v4 = vpop.f32.mrb[21].mxu0  ;;  %v644_v60 = vld [vmem:[%s6461_s22 + $0x108] sm:$0xff] }
 0x1cb   : > { %v1176_v7 = vmul.f32 %v1026_v4, %v632_v61  ;;  %1718 = vmatprep.mubr.f32.mxu1 %v1238_v62  ;;  %v707_v4 = vld [vmem:[%s6466_s28 + $0x100] sm:$0xff] }
 0x1cc   : > { %1719 = vmatmul.mubr.f32.gmra.mrb[50].mxu1 %v1237_v0  ;;  %v1239_v12 = vadd.f32 %v1175_v2, %v695_v5  ;;  %v708_v2 = vld [vmem:[%s6466_s28 + $0x108] sm:$0xff] }
 0x1cd   : > { %v1240_v10 = vadd.f32 %v1176_v7, %v696_v3  ;;  %v1030_v11 = vpop.f32.mrb[22].mxu0  ;;  %v645_v7 = vld [vmem:[%s6461_s22 + $0x110] sm:$0xff] }
 0x1ce   : > { %v1177_v13 = vmul.f32 %v1030_v11, %v633_v8  ;;  %v1032_v15 = vpop.f32.mrb[23].mxu0  ;;  %v646_v8 = vld [vmem:[%s6461_s22 + $0x118] sm:$0xff] }
 0x1cf   : > { %v1178_v17 = vmul.f32 %v1032_v15, %v634_v9  ;;  %1723 = vmatprep.mubr.f32.mxu1 %v1240_v10  ;;  %v709_v15 = vld [vmem:[%s6466_s28 + $0x110] sm:$0xff] }
 0x1d0   : > { %1724 = vmatmul.mubr.f32.gmra.mrb[52].mxu1 %v1239_v12  ;;  %v1241_v22 = vadd.f32 %v1177_v13, %v697_v16  ;;  %v710_v13 = vld [vmem:[%s6466_s28 + $0x118] sm:$0xff] }
 0x1d1   : > { %v1242_v20 = vadd.f32 %v1178_v17, %v698_v14  ;;  %v1036_v21 = vpop.f32.mrb[24].mxu0  ;;  %v647_v17 = vld [vmem:[%s6461_s22 + $0x120] sm:$0xff] }
 0x1d2   : > { %v1179_v32 = vmul.f32 %v1036_v21, %v635_v18  ;;  %v1038_v25 = vpop.f32.mrb[25].mxu0  ;;  %v648_v18 = vld [vmem:[%s6461_s22 + $0x128] sm:$0xff] }
 0x1d3   : > { %v1180_v27 = vmul.f32 %v1038_v25, %v636_v19  ;;  %1728 = vmatprep.mubr.f32.mxu1 %v1242_v20  ;;  %v711_v25 = vld [vmem:[%s6466_s28 + $0x120] sm:$0xff] }
 0x1d4   : > { %1729 = vmatmul.mubr.f32.gmra.mrb[54].mxu1 %v1241_v22  ;;  %v1243_v33 = vadd.f32 %v1179_v32, %v699_v26  ;;  %v712_v32 = vld [vmem:[%s6466_s28 + $0x128] sm:$0xff] }
 0x1d5   : > { %v1244_v30 = vadd.f32 %v1180_v27, %v700_v23  ;;  %v1042_v31 = vpop.f32.mrb[26].mxu0  ;;  %v649_v27 = vld [vmem:[%s6461_s22 + $0x130] sm:$0xff] }
 0x1d6   : > { %v1181_v34 = vmul.f32 %v1042_v31, %v637_v28  ;;  %v1044_v36 = vpop.f32.mrb[27].mxu0  ;;  %v650_v28 = vld [vmem:[%s6461_s22 + $0x138] sm:$0xff] }
 0x1d7   : > { %v1182_v38 = vmul.f32 %v1044_v36, %v638_v29  ;;  %1733 = vmatprep.mubr.f32.mxu1 %v1244_v30  ;;  %v713_v36 = vld [vmem:[%s6466_s28 + $0x130] sm:$0xff] }
 0x1d8   : > { %1734 = vmatmul.mubr.f32.gmra.mrb[56].mxu1 %v1243_v33  ;;  %v1245_v43 = vadd.f32 %v1181_v34, %v701_v37  ;;  %v714_v34 = vld [vmem:[%s6466_s28 + $0x138] sm:$0xff] }
 0x1d9   : > { %v1246_v41 = vadd.f32 %v1182_v38, %v702_v35  ;;  %v1048_v42 = vpop.f32.mrb[28].mxu0  ;;  %v651_v38 = vld [vmem:[%s6461_s22 + $0x140] sm:$0xff] }
 0x1da   : > { %v1183_v44 = vmul.f32 %v1048_v42, %v639_v39  ;;  %v1050_v46 = vpop.f32.mrb[29].mxu0  ;;  %v652_v39 = vld [vmem:[%s6461_s22 + $0x148] sm:$0xff] }
 0x1db   : > { %v1184_v48 = vmul.f32 %v1050_v46, %v640_v40  ;;  %1738 = vmatprep.mubr.f32.mxu1 %v1246_v41  ;;  %v715_v46 = vld [vmem:[%s6466_s28 + $0x140] sm:$0xff] }
 0x1dc   : > { %1739 = vmatmul.mubr.f32.gmra.mrb[58].mxu1 %v1245_v43  ;;  %v1247_v53 = vadd.f32 %v1183_v44, %v703_v47  ;;  %v716_v44 = vld [vmem:[%s6466_s28 + $0x148] sm:$0xff] }
 0x1dd   : > { %v1248_v51 = vadd.f32 %v1184_v48, %v704_v45  ;;  %v1054_v52 = vpop.f32.mrb[30].mxu0  ;;  %v653_v48 = vld [vmem:[%s6461_s22 + $0x150] sm:$0xff] }
 0x1de   : > { %v1185_v54 = vmul.f32 %v1054_v52, %v641_v49  ;;  %v1056_v56 = vpop.f32.mrb[31].mxu0  ;;  %v654_v49 = vld [vmem:[%s6461_s22 + $0x158] sm:$0xff] }
 0x1df   : > { %v1186_v58 = vmul.f32 %v1056_v56, %v642_v50  ;;  %1743 = vmatprep.mubr.f32.mxu1 %v1248_v51  ;;  %v717_v56 = vld [vmem:[%s6466_s28 + $0x150] sm:$0xff] }
 0x1e0   : > { %1744 = vmatmul.mubr.f32.gmra.mrb[60].mxu1 %v1247_v53  ;;  %v1249_v63 = vadd.f32 %v1185_v54, %v705_v57  ;;  %v718_v54 = vld [vmem:[%s6466_s28 + $0x158] sm:$0xff] }
 0x1e1   : > { %v1250_v61 = vadd.f32 %v1186_v58, %v706_v55  ;;  %v1060_v62 = vpop.f32.mrb[32].mxu0  ;;  %v655_v58 = vld [vmem:[%s6461_s22 + $0x160] sm:$0xff] }
 0x1e2   : > { %v1187_v0 = vmul.f32 %v1060_v62, %v643_v59  ;;  %v1062_v3 = vpop.f32.mrb[33].mxu0  ;;  %v656_v59 = vld [vmem:[%s6461_s22 + $0x168] sm:$0xff] }
 0x1e3   : > { %v1188_v5 = vmul.f32 %v1062_v3, %v644_v60  ;;  %1748 = vmatprep.mubr.f32.mxu1 %v1250_v61  ;;  %v719_v3 = vld [vmem:[%s6466_s28 + $0x160] sm:$0xff] }
 0x1e4   : > { %1749 = vmatmul.mubr.f32.gmra.mrb[62].mxu1 %v1249_v63  ;;  %v1251_v11 = vadd.f32 %v1187_v0, %v707_v4  ;;  %v720_v0 = vld [vmem:[%s6466_s28 + $0x168] sm:$0xff] }
 0x1e5   : > { %v1252_v9 = vadd.f32 %v1188_v5, %v708_v2  ;;  %v1066_v10 = vpop.f32.mrb[34].mxu0  ;;  %v657_v5 = vld [vmem:[%s6461_s22 + $0x170] sm:$0xff] }
 0x1e6   : > { %v1189_v12 = vmul.f32 %v1066_v10, %v645_v7  ;;  %v1068_v14 = vpop.f32.mrb[35].mxu0  ;;  %v658_v7 = vld [vmem:[%s6461_s22 + $0x178] sm:$0xff] }
 0x1e7   : > { %v1190_v16 = vmul.f32 %v1068_v14, %v646_v8  ;;  %1753 = vmatprep.mubr.f32.mxu1 %v1252_v9  ;;  %v721_v14 = vld [vmem:[%s6466_s28 + $0x170] sm:$0xff] }
 0x1e8   : > { %1754 = vmatmul.mubr.f32.gmra.mrb[64].mxu1 %v1251_v11  ;;  %v1253_v21 = vadd.f32 %v1189_v12, %v709_v15  ;;  %v722_v12 = vld [vmem:[%s6466_s28 + $0x178] sm:$0xff] }
 0x1e9   : > { %v1254_v19 = vadd.f32 %v1190_v16, %v710_v13  ;;  %v1072_v20 = vpop.f32.mrb[36].mxu0  ;;  %v659_v16 = vld [vmem:[%s6461_s22 + $0x180] sm:$0xff] }
 0x1ea   : > { %v1191_v22 = vmul.f32 %v1072_v20, %v647_v17  ;;  %v1074_v23 = vpop.f32.mrb[37].mxu0  ;;  %v660_v17 = vld [vmem:[%s6461_s22 + $0x188] sm:$0xff] }
 0x1eb   : > { %v1192_v26 = vmul.f32 %v1074_v23, %v648_v18  ;;  %1758 = vmatprep.mubr.f32.mxu1 %v1254_v19  ;;  %v723_v23 = vld [vmem:[%s6466_s28 + $0x180] sm:$0xff] }
 0x1ec   : > { %1759 = vmatmul.mubr.f32.gmra.mrb[66].mxu1 %v1253_v21  ;;  %v1255_v31 = vadd.f32 %v1191_v22, %v711_v25  ;;  %v724_v22 = vld [vmem:[%s6466_s28 + $0x188] sm:$0xff] }
 0x1ed   : > { %v1256_v29 = vadd.f32 %v1192_v26, %v712_v32  ;;  %v1078_v30 = vpop.f32.mrb[38].mxu0  ;;  %v661_v26 = vld [vmem:[%s6461_s22 + $0x190] sm:$0xff] }
 0x1ee   : > { %v1193_v33 = vmul.f32 %v1078_v30, %v649_v27  ;;  %v1080_v35 = vpop.f32.mrb[39].mxu0  ;;  %v662_v27 = vld [vmem:[%s6461_s22 + $0x198] sm:$0xff] }
 0x1ef   : > { %v1194_v37 = vmul.f32 %v1080_v35, %v650_v28  ;;  %1763 = vmatprep.mubr.f32.mxu1 %v1256_v29  ;;  %v725_v35 = vld [vmem:[%s6466_s28 + $0x190] sm:$0xff] }
 0x1f0   : > { %1764 = vmatmul.mubr.f32.gmra.mrb[68].mxu1 %v1255_v31  ;;  %v1257_v42 = vadd.f32 %v1193_v33, %v713_v36  ;;  %v726_v33 = vld [vmem:[%s6466_s28 + $0x198] sm:$0xff] }
 0x1f1   : > { %v1258_v40 = vadd.f32 %v1194_v37, %v714_v34  ;;  %v1084_v41 = vpop.f32.mrb[40].mxu0  ;;  %v663_v37 = vld [vmem:[%s6461_s22 + $0x1a0] sm:$0xff] }
 0x1f2   : > { %v1195_v43 = vmul.f32 %v1084_v41, %v651_v38  ;;  %v1086_v45 = vpop.f32.mrb[41].mxu0  ;;  %v664_v38 = vld [vmem:[%s6461_s22 + $0x1a8] sm:$0xff] }
 0x1f3   : > { %v1196_v47 = vmul.f32 %v1086_v45, %v652_v39  ;;  %1768 = vmatprep.mubr.f32.mxu1 %v1258_v40  ;;  %v727_v45 = vld [vmem:[%s6466_s28 + $0x1a0] sm:$0xff] }
 0x1f4   : > { %1769 = vmatmul.mubr.f32.gmra.mrb[70].mxu1 %v1257_v42  ;;  %v1259_v52 = vadd.f32 %v1195_v43, %v715_v46  ;;  %v728_v43 = vld [vmem:[%s6466_s28 + $0x1a8] sm:$0xff] }
 0x1f5   : > { %v1260_v50 = vadd.f32 %v1196_v47, %v716_v44  ;;  %v1090_v51 = vpop.f32.mrb[42].mxu0  ;;  %v665_v47 = vld [vmem:[%s6461_s22 + $0x1b0] sm:$0xff] }
 0x1f6   : > { %v1197_v53 = vmul.f32 %v1090_v51, %v653_v48  ;;  %v1092_v55 = vpop.f32.mrb[43].mxu0  ;;  %v666_v48 = vld [vmem:[%s6461_s22 + $0x1b8] sm:$0xff] }
 0x1f7   : > { %v1198_v57 = vmul.f32 %v1092_v55, %v654_v49  ;;  %1773 = vmatprep.mubr.f32.mxu1 %v1260_v50  ;;  %v729_v55 = vld [vmem:[%s6466_s28 + $0x1b0] sm:$0xff] }
 0x1f8   : > { %1774 = vmatmul.mubr.f32.gmra.mrb[72].mxu1 %v1259_v52  ;;  %v1261_v62 = vadd.f32 %v1197_v53, %v717_v56  ;;  %v730_v53 = vld [vmem:[%s6466_s28 + $0x1b8] sm:$0xff] }
 0x1f9   : > { %v1262_v60 = vadd.f32 %v1198_v57, %v718_v54  ;;  %v1096_v61 = vpop.f32.mrb[44].mxu0  ;;  %v667_v57 = vld [vmem:[%s6461_s22 + $0x1c0] sm:$0xff] }
 0x1fa   : > { %v1199_v63 = vmul.f32 %v1096_v61, %v655_v58  ;;  %v1098_v2 = vpop.f32.mrb[45].mxu0  ;;  %v668_v58 = vld [vmem:[%s6461_s22 + $0x1c8] sm:$0xff] }
 0x1fb   : > { %v1200_v4 = vmul.f32 %v1098_v2, %v656_v59  ;;  %1778 = vmatprep.mubr.f32.mxu1 %v1262_v60  ;;  %v731_v2 = vld [vmem:[%s6466_s28 + $0x1c0] sm:$0xff] }
 0x1fc   : > { %1779 = vmatmul.mubr.f32.gmra.mrb[74].mxu1 %v1261_v62  ;;  %v1263_v10 = vadd.f32 %v1199_v63, %v719_v3  ;;  %v732_v63 = vld [vmem:[%s6466_s28 + $0x1c8] sm:$0xff] }
 0x1fd   : > { %v1264_v8 = vadd.f32 %v1200_v4, %v720_v0  ;;  %v1102_v9 = vpop.f32.mrb[46].mxu0  ;;  %v669_v4 = vld [vmem:[%s6461_s22 + $0x1d0] sm:$0xff] }
 0x1fe   : > { %v1201_v11 = vmul.f32 %v1102_v9, %v657_v5  ;;  %v1104_v13 = vpop.f32.mrb[47].mxu0  ;;  %v670_v5 = vld [vmem:[%s6461_s22 + $0x1d8] sm:$0xff] }
 0x1ff   : > { %v1202_v15 = vmul.f32 %v1104_v13, %v658_v7  ;;  %1783 = vmatprep.mubr.f32.mxu1 %v1264_v8  ;;  %v733_v13 = vld [vmem:[%s6466_s28 + $0x1d0] sm:$0xff] }
 0x200   : > { %1784 = vmatmul.mubr.f32.gmra.mrb[76].mxu1 %v1263_v10  ;;  %v1265_v20 = vadd.f32 %v1201_v11, %v721_v14  ;;  %v734_v11 = vld [vmem:[%s6466_s28 + $0x1d8] sm:$0xff] }
 0x201   : > { %v1266_v18 = vadd.f32 %v1202_v15, %v722_v12  ;;  %v1108_v19 = vpop.f32.mrb[48].mxu0  ;;  %v671_v15 = vld [vmem:[%s6461_s22 + $0x1e0] sm:$0xff] }
 0x202   : > { %v1203_v21 = vmul.f32 %v1108_v19, %v659_v16  ;;  %v1110_v32 = vpop.f32.mrb[49].mxu0  ;;  %v672_v16 = vld [vmem:[%s6461_s22 + $0x1e8] sm:$0xff] }
 0x203   : > { %v1204_v25 = vmul.f32 %v1110_v32, %v660_v17  ;;  %1788 = vmatprep.mubr.f32.mxu1 %v1266_v18  ;;  %v735_v32 = vld [vmem:[%s6466_s28 + $0x1e0] sm:$0xff] }
 0x204   : > { %1789 = vmatmul.mubr.f32.gmra.mrb[78].mxu1 %v1265_v20  ;;  %v1267_v30 = vadd.f32 %v1203_v21, %v723_v23  ;;  %v736_v21 = vld [vmem:[%s6466_s28 + $0x1e8] sm:$0xff] }
 0x205   : > { %v1268_v28 = vadd.f32 %v1204_v25, %v724_v22  ;;  %v1114_v29 = vpop.f32.mrb[50].mxu0  ;;  %v673_v25 = vld [vmem:[%s6461_s22 + $0x1f0] sm:$0xff] }
 0x206   : > { %v1205_v31 = vmul.f32 %v1114_v29, %v661_v26  ;;  %v1116_v34 = vpop.f32.mrb[51].mxu0  ;;  %v674_v26 = vld [vmem:[%s6461_s22 + $0x1f8] sm:$0xff] }
 0x207   : > { %v1206_v36 = vmul.f32 %v1116_v34, %v662_v27  ;;  %1793 = vmatprep.mubr.f32.mxu1 %v1268_v28  ;;  %v737_v34 = vld [vmem:[%s6466_s28 + $0x1f0] sm:$0xff] }
 0x208   : > { %1794 = vmatmul.mubr.f32.gmra.mrb[80].mxu1 %v1267_v30  ;;  %v1269_v41 = vadd.f32 %v1205_v31, %v725_v35  ;;  %v738_v31 = vld [vmem:[%s6466_s28 + $0x1f8] sm:$0xff] }
 0x209   : > { %v1270_v39 = vadd.f32 %v1206_v36, %v726_v33  ;;  %v1120_v40 = vpop.f32.mrb[52].mxu0 }
 0x20a   : > { %v1207_v42 = vmul.f32 %v1120_v40, %v663_v37  ;;  %v1122_v44 = vpop.f32.mrb[53].mxu0  ;;  %v1836_v40 = vsub.s32 3, %v6187_v6 }
 0x20b   : > { %v1208_v46 = vmul.f32 %v1122_v44, %v664_v38  ;;  %1798 = vmatprep.mubr.f32.mxu1 %v1270_v39  ;;  %v5858_v38 = vld [vmem:[%s6334_s15 + $0xd8] sm:$0xff]  ;;  %v1607_v39 = vsub.s32 0, %v6187_v6 }
 0x20c   : > { %1799 = vmatmul.mubr.f32.gmra.mrb[82].mxu1 %v1269_v41  ;;  %v1271_v51 = vadd.f32 %v1207_v42, %v727_v45  ;;  %v5859_v41 = vld [vmem:[%s8006_s8 + $0xc8] sm:$0xff] }
 0x20d   : > { %v1272_v49 = vadd.f32 %v1208_v46, %v728_v43  ;;  %v1126_v50 = vpop.f32.mrb[54].mxu0  ;;  %v6602_v42 = vrot.slane %v5859_v41, %v1607_v39  ;;  %v6604_v43 = vrot.slane %v5859_v41, %v1836_v40 }
 0x20e   : > { %v1209_v52 = vmul.f32 %v1126_v50, %v665_v47  ;;  %v1128_v54 = vpop.f32.mrb[55].mxu0 }
 0x20f   : > { %v1210_v56 = vmul.f32 %v1128_v54, %v666_v48  ;;  %1803 = vmatprep.mubr.f32.mxu1 %v1272_v49 }
 0x210   : > { %1804 = vmatmul.mubr.f32.gmra.mrb[84].mxu1 %v1271_v51  ;;  %v1273_v61 = vadd.f32 %v1209_v52, %v729_v55 }
 0x211   : > { %v1274_v59 = vadd.f32 %v1210_v56, %v730_v53  ;;  %v1132_v60 = vpop.f32.mrb[56].mxu0 }
 0x212   : > { %v1211_v62 = vmul.f32 %v1132_v60, %v667_v57  ;;  %v1134_v0 = vpop.f32.mrb[57].mxu0 }
 0x213   : > { %v1212_v3 = vmul.f32 %v1134_v0, %v668_v58  ;;  %1808 = vmatprep.mubr.f32.mxu1 %v1274_v59 }
 0x214   : > { %1809 = vmatmul.mubr.f32.gmra.mrb[86].mxu1 %v1273_v61  ;;  %v1275_v9 = vadd.f32 %v1211_v62, %v731_v2 }
 0x215   : > { %v1276_v7 = vadd.f32 %v1212_v3, %v732_v63  ;;  %v1138_v8 = vpop.f32.mrb[58].mxu0 }
 0x216   : > { %v1213_v10 = vmul.f32 %v1138_v8, %v669_v4  ;;  %v1140_v12 = vpop.f32.mrb[59].mxu0 }
 0x217   : > { %v1214_v14 = vmul.f32 %v1140_v12, %v670_v5  ;;  %1813 = vmatprep.mubr.f32.mxu1 %v1276_v7 }
 0x218   : > { %1814 = vmatmul.mubr.f32.gmra.mrb[88].mxu1 %v1275_v9  ;;  %v1277_v19 = vadd.f32 %v1213_v10, %v733_v13 }
 0x219   : > { %v1278_v17 = vadd.f32 %v1214_v14, %v734_v11  ;;  %v1144_v18 = vpop.f32.mrb[60].mxu0 }
 0x21a   : > { %v1215_v20 = vmul.f32 %v1144_v18, %v671_v15  ;;  %v1146_v22 = vpop.f32.mrb[61].mxu0 }
 0x21b   : > { %v1216_v23 = vmul.f32 %v1146_v22, %v672_v16  ;;  %1818 = vmatprep.mubr.f32.mxu1 %v1278_v17 }
 0x21c   : > { %1819 = vmatmul.mubr.f32.gmra.mrb[90].mxu1 %v1277_v19  ;;  %v1279_v29 = vadd.f32 %v1215_v20, %v735_v32 }
 0x21d   : > { %v1280_v27 = vadd.f32 %v1216_v23, %v736_v21  ;;  %v1150_v28 = vpop.f32.mrb[62].mxu0 }
 0x21e   : > { %v1217_v30 = vmul.f32 %v1150_v28, %v673_v25  ;;  %v1152_v33 = vpop.f32.mrb[63].mxu0 }
 0x21f   : > { %v1218_v35 = vmul.f32 %v1152_v33, %v674_v26  ;;  %1823 = vmatprep.mubr.f32.mxu1 %v1280_v27 }
 0x220   : > { %1824 = vmatmul.mubr.f32.gmra.mrb[92].mxu1 %v1279_v29  ;;  %v1281_v37 = vadd.f32 %v1217_v30, %v737_v34 }
 0x221   : > { %v1282_v36 = vadd.f32 %v1218_v35, %v738_v31 }
 0x223   : > { %1828 = vmatprep.mubr.f32.mxu1 %v1282_v36 }
 0x224   : > { %1829 = vmatmul.mubr.f32.gmra.mrb[94].mxu1 %v1281_v37 }
 0x225   : > { %2127 = vmatprep.mubr.f32.mxu1 %v5858_v38 }
 0x27b   : > { %v1675_v44 = vpop.f32.mrb[32].mxu1 }
 0x27c   : > { %v6607_v45 = vadd.f32 %v1675_v44, %v6602_v42  ;;  %v1677_v46 = vpop.f32.mrb[33].mxu1 }
 0x27e   : > { %v1838_v47 = vmul.f32 %v6604_v43, %v6607_v45 }
 0x27f   : > { %v1680_v48 = vpop.f32.mrb[34].mxu1 }
 0x280   : > { %v6612_v49 = vadd.f32 %v1680_v48, %v6602_v42  ;;  %v1682_v50 = vpop.f32.mrb[35].mxu1  ;;  %v1870_v51 = vsel %vm1283_vm1, %v1838_v47, 0.0 }
 0x281   : > { %1871 = vadd.xlane.f32.xlu0 %v1870_v51 }
 0x282   : > { %v1839_v52 = vmul.f32 %v6604_v43, %v6612_v49 }
 0x283   : > { %v1685_v53 = vpop.f32.mrb[36].mxu1 }
 0x284   : > { %v6618_v54 = vadd.f32 %v1685_v53, %v6602_v42  ;;  %v1687_v55 = vpop.f32.mrb[37].mxu1  ;;  %v1873_v56 = vsel %vm1283_vm1, %v1839_v52, 0.0 }
 0x285   : > { %1874 = vadd.xlane.f32.xlu1 %v1873_v56 }
 0x286   : > { %v1840_v57 = vmul.f32 %v6604_v43, %v6618_v54 }
 0x287   : > { %v1690_v58 = vpop.f32.mrb[38].mxu1 }
 0x288   : > { %v6624_v59 = vadd.f32 %v1690_v58, %v6602_v42  ;;  %v1692_v60 = vpop.f32.mrb[39].mxu1  ;;  %v1876_v61 = vsel %vm1283_vm1, %v1840_v57, 0.0 }
 0x289   : > { %1877 = vadd.xlane.f32.xlu0 %v1876_v61 }
 0x28a   : > { %v1841_v62 = vmul.f32 %v6604_v43, %v6624_v59 }
 0x28b   : > { %v1695_v63 = vpop.f32.mrb[40].mxu1 }
 0x28c   : > { %v6630_v0 = vadd.f32 %v1695_v63, %v6602_v42  ;;  %v1697_v2 = vpop.f32.mrb[41].mxu1  ;;  %v1879_v3 = vsel %vm1283_vm1, %v1841_v62, 0.0 }
 0x28d   : > { %1880 = vadd.xlane.f32.xlu1 %v1879_v3 }
 0x28e   : > { %v1842_v4 = vmul.f32 %v6604_v43, %v6630_v0 }
 0x28f   : > { %v1700_v5 = vpop.f32.mrb[42].mxu1 }
 0x290   : > { %v6636_v7 = vadd.f32 %v1700_v5, %v6602_v42  ;;  %v1702_v8 = vpop.f32.mrb[43].mxu1  ;;  %v1882_v9 = vsel %vm1283_vm1, %v1842_v4, 0.0 }
 0x291   : > { %1883 = vadd.xlane.f32.xlu0 %v1882_v9 }
 0x292   : > { %v1843_v10 = vmul.f32 %v6604_v43, %v6636_v7 }
 0x293   : > { %v1705_v11 = vpop.f32.mrb[44].mxu1 }
 0x294   : > { %v6642_v12 = vadd.f32 %v1705_v11, %v6602_v42  ;;  %v1707_v13 = vpop.f32.mrb[45].mxu1  ;;  %v1885_v14 = vsel %vm1283_vm1, %v1843_v10, 0.0 }
 0x295   : > { %1886 = vadd.xlane.f32.xlu1 %v1885_v14 }
 0x296   : > { %v1844_v15 = vmul.f32 %v6604_v43, %v6642_v12 }
 0x297   : > { %v1710_v16 = vpop.f32.mrb[46].mxu1 }
 0x298   : > { %v6648_v17 = vadd.f32 %v1710_v16, %v6602_v42  ;;  %v1712_v18 = vpop.f32.mrb[47].mxu1  ;;  %v1888_v19 = vsel %vm1283_vm1, %v1844_v15, 0.0 }
 0x299   : > { %1889 = vadd.xlane.f32.xlu0 %v1888_v19 }
 0x29a   : > { %v1845_v20 = vmul.f32 %v6604_v43, %v6648_v17 }
 0x29b   : > { %v1715_v21 = vpop.f32.mrb[48].mxu1 }
 0x29c   : > { %v6654_v22 = vadd.f32 %v1715_v21, %v6602_v42  ;;  %v1717_v32 = vpop.f32.mrb[49].mxu1  ;;  %v1891_v23 = vsel %vm1283_vm1, %v1845_v20, 0.0 }
 0x29d   : > { %1892 = vadd.xlane.f32.xlu1 %v1891_v23 }
 0x29e   : > { %v1846_v25 = vmul.f32 %v6604_v43, %v6654_v22 }
 0x29f   : > { %v1720_v26 = vpop.f32.mrb[50].mxu1 }
 0x2a0   : > { %v6660_v27 = vadd.f32 %v1720_v26, %v6602_v42  ;;  %v1722_v28 = vpop.f32.mrb[51].mxu1  ;;  %v1894_v29 = vsel %vm1283_vm1, %v1846_v25, 0.0 }
 0x2a1   : > { %1895 = vadd.xlane.f32.xlu0 %v1894_v29 }
 0x2a2   : > { %v1847_v30 = vmul.f32 %v6604_v43, %v6660_v27 }
 0x2a3   : > { %v1725_v31 = vpop.f32.mrb[52].mxu1 }
 0x2a4   : > { %v6666_v33 = vadd.f32 %v1725_v31, %v6602_v42  ;;  %v1727_v34 = vpop.f32.mrb[53].mxu1  ;;  %v1897_v35 = vsel %vm1283_vm1, %v1847_v30, 0.0 }
 0x2a5   : > { %1898 = vadd.xlane.f32.xlu1 %v1897_v35 }
 0x2a6   : > { %v1848_v36 = vmul.f32 %v6604_v43, %v6666_v33 }
 0x2a7   : > { %v1730_v37 = vpop.f32.mrb[54].mxu1 }
 0x2a8   : > { %v6672_v38 = vadd.f32 %v1730_v37, %v6602_v42  ;;  %v1732_v39 = vpop.f32.mrb[55].mxu1  ;;  %v1900_v40 = vsel %vm1283_vm1, %v1848_v36, 0.0 }
 0x2a9   : > { %1901 = vadd.xlane.f32.xlu0 %v1900_v40 }
 0x2aa   : > { %v1849_v41 = vmul.f32 %v6604_v43, %v6672_v38 }
 0x2ab   : > { %v1735_v44 = vpop.f32.mrb[56].mxu1 }
 0x2ac   : > { %v6678_v46 = vadd.f32 %v1735_v44, %v6602_v42  ;;  %v1737_v47 = vpop.f32.mrb[57].mxu1  ;;  %v1903_v48 = vsel %vm1283_vm1, %v1849_v41, 0.0 }
 0x2ad   : > { %1904 = vadd.xlane.f32.xlu1 %v1903_v48 }
 0x2ae   : > { %v1850_v50 = vmul.f32 %v6604_v43, %v6678_v46 }
 0x2af   : > { %v1740_v51 = vpop.f32.mrb[58].mxu1 }
 0x2b0   : > { %v6684_v52 = vadd.f32 %v1740_v51, %v6602_v42  ;;  %v1742_v53 = vpop.f32.mrb[59].mxu1  ;;  %v1906_v55 = vsel %vm1283_vm1, %v1850_v50, 0.0 }
 0x2b1   : > { %1907 = vadd.xlane.f32.xlu0 %v1906_v55 }
 0x2b2   : > { %v1851_v56 = vmul.f32 %v6604_v43, %v6684_v52 }
 0x2b3   : > { %v6689_v57 = vpop.f32.mrb[60].mxu1 }
 0x2b4   : > { %v1747_v58 = vpop.f32.mrb[61].mxu1  ;;  %v1909_v60 = vsel %vm1283_vm1, %v1851_v56, 0.0 }
 0x2b5   : > { %1910 = vadd.xlane.f32.xlu1 %v1909_v60 }
 0x2b7   : > { %v6692_v61 = vpop.f32.mrb[62].mxu1 }
 0x2b8   : > { %v1752_v62 = vpop.f32.mrb[63].mxu1 }
 0x2bb   : > { %v1755_v63 = vpop.f32.mrb[64].mxu1 }
 0x2bc   : > { %v6695_v2 = vadd.f32 %v1755_v63, %v6602_v42  ;;  %v1757_v3 = vpop.f32.mrb[65].mxu1 }
 0x2be   : > { %v1854_v4 = vmul.f32 %v6604_v43, %v6695_v2 }
 0x2bf   : > { %v1760_v5 = vpop.f32.mrb[66].mxu1 }
 0x2c0   : > { %v6700_v8 = vadd.f32 %v1760_v5, %v6602_v42  ;;  %v1762_v9 = vpop.f32.mrb[67].mxu1  ;;  %v1918_v10 = vsel %vm1283_vm1, %v1854_v4, 0.0 }
 0x2c1   : > { %1919 = vadd.xlane.f32.xlu0 %v1918_v10 }
 0x2c2   : > { %v1855_v11 = vmul.f32 %v6604_v43, %v6700_v8 }
 0x2c3   : > { %v1765_v13 = vpop.f32.mrb[68].mxu1 }
 0x2c4   : > { %v6706_v14 = vadd.f32 %v1765_v13, %v6602_v42  ;;  %v1921_v15 = vsel %vm1283_vm1, %v1855_v11, 0.0  ;;  %v1767_v16 = vpop.f32.mrb[69].mxu1 }
 0x2c5   : > { %1922 = vadd.xlane.f32.xlu1 %v1921_v15 }
 0x2c6   : > { %v1856_v18 = vmul.f32 %v6604_v43, %v6706_v14 }
 0x2c7   : > { %v1770_v19 = vpop.f32.mrb[70].mxu1 }
 0x2c8   : > { %v6712_v20 = vadd.f32 %v1770_v19, %v6602_v42  ;;  %v1772_v21 = vpop.f32.mrb[71].mxu1  ;;  %v1924_v32 = vsel %vm1283_vm1, %v1856_v18, 0.0 }
 0x2c9   : > { %1925 = vadd.xlane.f32.xlu0 %v1924_v32 }
 0x2ca   : > { %8063 = vst [vmem:[#allocation3_spill] sm:$0xff] %v6712_v20  ;;  %v1857_v23 = vmul.f32 %v6604_v43, %v6712_v20 }
 0x2cb   : > { %v1775_v25 = vpop.f32.mrb[72].mxu1 }
 0x2cc   : > { %v6718_v26 = vadd.f32 %v1775_v25, %v6602_v42  ;;  %v1927_v28 = vsel %vm1283_vm1, %v1857_v23, 0.0  ;;  %v1777_v29 = vpop.f32.mrb[73].mxu1 }
 0x2cd   : > { %1928 = vadd.xlane.f32.xlu1 %v1927_v28 }
 0x2ce   : > { %8064 = vst [vmem:[#allocation4_spill] sm:$0xff] %v6718_v26  ;;  %v1858_v30 = vmul.f32 %v6604_v43, %v6718_v26 }
 0x2cf   : > { %v1780_v31 = vpop.f32.mrb[74].mxu1 }
 0x2d0   : > { %v6724_v34 = vadd.f32 %v1780_v31, %v6602_v42  ;;  %v1782_v35 = vpop.f32.mrb[75].mxu1  ;;  %v1930_v36 = vsel %vm1283_vm1, %v1858_v30, 0.0 }
 0x2d1   : > { %1931 = vadd.xlane.f32.xlu0 %v1930_v36 }
 0x2d2   : > { %8065 = vst [vmem:[#allocation5_spill] sm:$0xff] %v6724_v34  ;;  %v1859_v37 = vmul.f32 %v6604_v43, %v6724_v34 }
 0x2d3   : > { %v1785_v39 = vpop.f32.mrb[76].mxu1 }
 0x2d4   : > { %v6730_v40 = vadd.f32 %v1785_v39, %v6602_v42  ;;  %v1933_v41 = vsel %vm1283_vm1, %v1859_v37, 0.0  ;;  %v1787_v44 = vpop.f32.mrb[77].mxu1 }
 0x2d5   : > { %1934 = vadd.xlane.f32.xlu1 %v1933_v41 }
 0x2d6   : > { %8066 = vst [vmem:[#allocation6_spill] sm:$0xff] %v6730_v40  ;;  %v1860_v47 = vmul.f32 %v6604_v43, %v6730_v40 }
 0x2d7   : > { %v1790_v48 = vpop.f32.mrb[78].mxu1 }
 0x2d8   : > { %v6736_v50 = vadd.f32 %v1790_v48, %v6602_v42  ;;  %v1792_v51 = vpop.f32.mrb[79].mxu1  ;;  %v1936_v53 = vsel %vm1283_vm1, %v1860_v47, 0.0  ;;  %v6779_v48 = vadd.f32 %v6689_v57, %v6602_v42 }
 0x2d9   : > { %1937 = vadd.xlane.f32.xlu0 %v1936_v53 }
 0x2da   : > { %8067 = vst [vmem:[#allocation7_spill] sm:$0xff] %v6736_v50  ;;  %v1861_v55 = vmul.f32 %v6604_v43, %v6736_v50 }
 0x2db   : > { %v1795_v56 = vpop.f32.mrb[80].mxu1 }
 0x2dc   : > { %v6742_v58 = vadd.f32 %v1795_v56, %v6602_v42  ;;  %v1939_v60 = vsel %vm1283_vm1, %v1861_v55, 0.0  ;;  %v1797_v62 = vpop.f32.mrb[81].mxu1 }
 0x2dd   : > { %1940 = vadd.xlane.f32.xlu1 %v1939_v60  ;;  %v6789_v62 = vadd.f32 %v6692_v61, %v6602_v42 }
 0x2de   : > { %8068 = vst [vmem:[#allocation8_spill] sm:$0xff] %v6742_v58  ;;  %v1862_v63 = vmul.f32 %v6604_v43, %v6742_v58 }
 0x2df   : > { %v1800_v3 = vpop.f32.mrb[82].mxu1  ;;  %v1853_v61 = vmul.f32 %v6604_v43, %v6789_v62 }
 0x2e0   : > { %v6748_v4 = vadd.f32 %v1800_v3, %v6602_v42  ;;  %v1802_v5 = vpop.f32.mrb[83].mxu1  ;;  %v1942_v9 = vsel %vm1283_vm1, %v1862_v63, 0.0  ;;  %v1852_v3 = vmul.f32 %v6604_v43, %v6779_v48 }
 0x2e1   : > { %1943 = vadd.xlane.f32.xlu0 %v1942_v9 }
 0x2e2   : > { %8069 = vst [vmem:[#allocation9_spill] sm:$0xff] %v6748_v4  ;;  %v1863_v10 = vmul.f32 %v6604_v43, %v6748_v4 }
 0x2e3   : > { %v1805_v11 = vpop.f32.mrb[84].mxu1 }
 0x2e4   : > { %v6754_v13 = vadd.f32 %v1805_v11, %v6602_v42  ;;  %v1945_v15 = vsel %vm1283_vm1, %v1863_v10, 0.0  ;;  %v1807_v16 = vpop.f32.mrb[85].mxu1  ;;  %v1912_v11 = vsel %vm1283_vm1, %v1852_v3, 0.0  ;;  %v5863_v3 = vld [vmem:[%s6375_s18] sm:$0xff] }
 0x2e5   : > { %1946 = vadd.xlane.f32.xlu1 %v1945_v15 }
 0x2e6   : > { %8070 = vst [vmem:[#allocation10_spill] sm:$0xff] %v6754_v13  ;;  %v1864_v18 = vmul.f32 %v6604_v43, %v6754_v13 }
 0x2e7   : > { %v1810_v19 = vpop.f32.mrb[86].mxu1 }
 0x2e8   : > { %v6760_v21 = vadd.f32 %v1810_v19, %v6602_v42  ;;  %v1812_v32 = vpop.f32.mrb[87].mxu1  ;;  %v1948_v23 = vsel %vm1283_vm1, %v1864_v18, 0.0 }
 0x2e9   : > { %1949 = vadd.xlane.f32.xlu0 %v1948_v23 }
 0x2ea   : > { %8071 = vst [vmem:[#allocation11_spill] sm:$0xff] %v6760_v21  ;;  %v1865_v25 = vmul.f32 %v6604_v43, %v6760_v21 }
 0x2eb   : > { %v1815_v28 = vpop.f32.mrb[88].mxu1 }
 0x2ec   : > { %v6766_v29 = vadd.f32 %v1815_v28, %v6602_v42  ;;  %v1951_v30 = vsel %vm1283_vm1, %v1865_v25, 0.0  ;;  %v1817_v31 = vpop.f32.mrb[89].mxu1 }
 0x2ed   : > { %1952 = vadd.xlane.f32.xlu1 %v1951_v30 }
 0x2ee   : > { %8072 = vst [vmem:[#allocation12_spill] sm:$0xff] %v6766_v29  ;;  %v1866_v35 = vmul.f32 %v6604_v43, %v6766_v29 }
 0x2ef   : > { %v1820_v36 = vpop.f32.mrb[90].mxu1 }
 0x2f0   : > { %v6772_v37 = vadd.f32 %v1820_v36, %v6602_v42  ;;  %v1822_v39 = vpop.f32.mrb[91].mxu1  ;;  %v1954_v41 = vsel %vm1283_vm1, %v1866_v35, 0.0 }
 0x2f1   : > { %1955 = vadd.xlane.f32.xlu0 %v1954_v41 }
 0x2f2   : > { %8073 = vst [vmem:[#allocation13_spill] sm:$0xff] %v6772_v37  ;;  %v1867_v44 = vmul.f32 %v6604_v43, %v6772_v37 }
 0x2f3   : > { %v1825_v47 = vpop.f32.mrb[92].mxu1 }
 0x2f4   : > { %v6782_v51 = vadd.f32 %v1825_v47, %v6602_v42  ;;  %v1957_v53 = vsel %vm1283_vm1, %v1867_v44, 0.0  ;;  %v1827_v55 = vpop.f32.mrb[93].mxu1  ;;  %v5860_v44 = vld [vmem:[%s6375_s18 + $0x8] sm:$0xff] }
 0x2f5   : > { %1958 = vadd.xlane.f32.xlu1 %v1957_v53  ;;  %v5861_v55 = vld [vmem:[%s6375_s18 + $0x80] sm:$0xff] }
 0x2f6   : > { %8074 = vst [vmem:[#allocation14_spill] sm:$0xff] %v6782_v51  ;;  %v1868_v56 = vmul.f32 %v6604_v43, %v6782_v51 }
 0x2f7   : > { %v1830_v60 = vpop.f32.mrb[94].mxu1 }
 0x2f8   : > { %v6792_v63 = vadd.f32 %v1830_v60, %v6602_v42  ;;  %v1960_v57 = vsel %vm1283_vm1, %v1868_v56, 0.0  ;;  %v1832_v5 = vpop.f32.mrb[95].mxu1  ;;  %v1915_v42 = vsel %vm1283_vm1, %v1853_v61, 0.0  ;;  %v5862_v60 = vld [vmem:[%s6375_s18 + $0x88] sm:$0xff]  ;;  %v5864_v61 = vld [vmem:[%s6375_s18 + $0x18] sm:$0xff] }
 0x2f9   : > { %1961 = vadd.xlane.f32.xlu0 %v1960_v57 }
 0x2fa   : > { %8075 = vst [vmem:[#allocation15_spill] sm:$0xff] %v6792_v63  ;;  %v1869_v9 = vmul.f32 %v6604_v43, %v6792_v63 }
 0x2fc   : > { %v1963_v10 = vsel %vm1283_vm1, %v1869_v9, 0.0 }
 0x2fd   : > { %1964 = vadd.xlane.f32.xlu1 %v1963_v10  ;;  %1913 = vadd.xlane.f32.xlu0 %v1912_v11 }
 0x301   : > { %1916 = vadd.xlane.f32.xlu1 %v1915_v42 }
 0x30e   : > { %v1872_v15 = vpop.xlane.xlu0 %1871 }
 0x30f   : > { %v1966_v5 = vmul.f32 %v5863_v3, %v1872_v15  ;;  %v5868_v3 = vld [vmem:[%s6375_s18 + $0x28] sm:$0xff] }
 0x312   : > { %v1875_v16 = vpop.xlane.xlu1 %1874 }
 0x313   : > { %v1967_v47 = vmul.f32 %v5860_v44, %v1875_v16  ;;  %v5865_v44 = vld [vmem:[%s6375_s18 + $0x98] sm:$0xff] }
 0x315   : > { %v5392_v10 = vpack.c.bf16 %v1967_v47, %v1966_v5 }
 0x316   : > { %v1878_v18 = vpop.xlane.xlu0 %1877 }
 0x31a   : > { %v1881_v19 = vpop.xlane.xlu1 %1880 }
 0x31b   : > { %v1969_v42 = vmul.f32 %v5864_v61, %v1881_v19  ;;  %v5870_v61 = vld [vmem:[%s6375_s18 + $0xa0] sm:$0xff] }
 0x31e   : > { %v1884_v32 = vpop.xlane.xlu0 %1883 }
 0x322   : > { %v1887_v23 = vpop.xlane.xlu1 %1886 }
 0x323   : > { %v1971_v19 = vmul.f32 %v5868_v3, %v1887_v23 }
 0x326   : > { %v6804_v25 = vpop.xlane.xlu0 %1889 }
 0x32a   : > { %v1893_v28 = vpop.xlane.xlu1 %1892 }
 0x32e   : > { %v6806_v30 = vpop.xlane.xlu0 %1895 }
 0x332   : > { %v6808_v43 = vpop.xlane.xlu1 %1898 }
 0x336   : > { %v6810_v31 = vpop.xlane.xlu0 %1901 }
 0x33a   : > { %v6812_v35 = vpop.xlane.xlu1 %1904 }
 0x33e   : > { %v6814_v36 = vpop.xlane.xlu0 %1907 }
 0x342   : > { %v6816_v39 = vpop.xlane.xlu1 %1910 }
 0x34e   : > { %v1920_v41 = vpop.xlane.xlu0 %1919 }
 0x34f   : > { %v1982_v56 = vmul.f32 %v5861_v55, %v1920_v41  ;;  %v5866_v55 = vld [vmem:[%s6375_s18 + $0x90] sm:$0xff] }
 0x352   : > { %v1923_v53 = vpop.xlane.xlu1 %1922 }
 0x353   : > { %v1983_v57 = vmul.f32 %v5862_v60, %v1923_v53  ;;  %v5867_v60 = vld [vmem:[%s6375_s18 + $0x10] sm:$0xff] }
 0x354   : > { %v1968_v15 = vmul.f32 %v5867_v60, %v1878_v18  ;;  %v5873_v60 = vld [vmem:[%s6375_s18 + $0xb8] sm:$0xff] }
 0x355   : > { %v5390_v9 = vpack.c.bf16 %v1983_v57, %v1982_v56 }
 0x356   : > { %v1926_v11 = vpop.xlane.xlu0 %1925  ;;  %v5396_v47 = vpack.c.bf16 %v1969_v42, %v1968_v15 }
 0x357   : > { %5391 = vmatprep.subr.bf16.mxu0 %v5390_v9  ;;  %5574 = vmatprep.subr.bf16.mxu1 %v5390_v9  ;;  %v1984_v53 = vmul.f32 %v5866_v55, %v1926_v11  ;;  %v5869_v9 = vld [vmem:[%s6375_s18 + $0xa8] sm:$0xff]  ;;  %v5872_v55 = vld [vmem:[%s6375_s18 + $0x38] sm:$0xff] }
 0x358   : > { %5393 = vmatpush3.bf16.msra.mxu0 %v5392_v10  ;;  %5582 = vmatpush3.bf16.msra.mxu1 %v5392_v10  ;;  %v1973_v23 = vmul.f32 %v5872_v55, %v1893_v28 }
 0x35a   : > { %v1929_v16 = vpop.xlane.xlu1 %1928 }
 0x35b   : > { %v1985_v41 = vmul.f32 %v5865_v44, %v1929_v16  ;;  %v5871_v16 = vld [vmem:[%s6375_s18 + $0x20] sm:$0xff] }
 0x35c   : > { %v1970_v18 = vmul.f32 %v5871_v16, %v1884_v32  ;;  %v5878_v16 = vld [vmem:[%s6375_s18 + $0xc0] sm:$0xff] }
 0x35d   : > { %v5394_v56 = vpack.c.bf16 %v1985_v41, %v1984_v53 }
 0x35e   : > { %v1932_v57 = vpop.xlane.xlu0 %1931  ;;  %v5400_v42 = vpack.c.bf16 %v1971_v19, %v1970_v18 }
 0x35f   : > { %5395 = vmatprep.subr.bf16.mxu0 %v5394_v56  ;;  %5575 = vmatprep.subr.bf16.mxu1 %v5394_v56  ;;  %v1986_v11 = vmul.f32 %v5870_v61, %v1932_v57  ;;  %v5874_v56 = vld [vmem:[%s6375_s18 + $0xb0] sm:$0xff]  ;;  %v5877_v61 = vld [vmem:[%s6375_s18 + $0xc8] sm:$0xff] }
 0x360   : > { %5397 = vmatpush3.bf16.msra.mxu0 %v5396_v47  ;;  %5583 = vmatpush3.bf16.msra.mxu1 %v5396_v47  ;;  %v5875_v57 = vld [vmem:[%s6375_s18 + $0x30] sm:$0xff] }
 0x361   : > { %v1972_v32 = vmul.f32 %v5875_v57, %v6804_v25  ;;  %v5883_v57 = vld [vmem:[%s6375_s18 + $0x50] sm:$0xff] }
 0x362   : > { %v1935_v5 = vpop.xlane.xlu1 %1934 }
 0x363   : > { %v1987_v10 = vmul.f32 %v5869_v9, %v1935_v5  ;;  %v5404_v19 = vpack.c.bf16 %v1973_v23, %v1972_v32  ;;  %v5876_v9 = vld [vmem:[%s6375_s18 + $0x48] sm:$0xff]  ;;  %v5880_v23 = vld [vmem:[%s6375_s18 + $0x58] sm:$0xff] }
 0x364   : > { %v1975_v28 = vmul.f32 %v5876_v9, %v6808_v43  ;;  %v1977_v43 = vmul.f32 %v5880_v23, %v6812_v35 }
 0x365   : > { %v5398_v44 = vpack.c.bf16 %v1987_v10, %v1986_v11 }
 0x366   : > { %v1938_v41 = vpop.xlane.xlu0 %1937 }
 0x367   : > { %5399 = vmatprep.subr.bf16.mxu0 %v5398_v44  ;;  %5576 = vmatprep.subr.bf16.mxu1 %v5398_v44  ;;  %v1988_v47 = vmul.f32 %v5874_v56, %v1938_v41  ;;  %v5879_v44 = vld [vmem:[%s6375_s18 + $0x40] sm:$0xff]  ;;  %v5882_v56 = vld [vmem:[%s6375_s18 + $0xd0] sm:$0xff] }
 0x368   : > { %5401 = vmatpush3.bf16.msra.mxu0 %v5400_v42  ;;  %5584 = vmatpush3.bf16.msra.mxu1 %v5400_v42  ;;  %v1974_v25 = vmul.f32 %v5879_v44, %v6806_v30  ;;  %v1976_v30 = vmul.f32 %v5883_v57, %v6810_v31 }
 0x36a   : > { %v1941_v53 = vpop.xlane.xlu1 %1940  ;;  %v5408_v41 = vpack.c.bf16 %v1975_v28, %v1974_v25  ;;  %v5885_v28 = vld [vmem:[%s6375_s18 + $0xe8] sm:$0xff] }
 0x36b   : > { %v1989_v15 = vmul.f32 %v5873_v60, %v1941_v53  ;;  %v5881_v60 = vld [vmem:[%s6375_s18 + $0xd8] sm:$0xff] }
 0x36d   : > { %v5402_v3 = vpack.c.bf16 %v1989_v15, %v1988_v47 }
 0x36e   : > { %v1944_v5 = vpop.xlane.xlu0 %1943 }
 0x36f   : > { %5403 = vmatprep.subr.bf16.mxu0 %v5402_v3  ;;  %5577 = vmatprep.subr.bf16.mxu1 %v5402_v3  ;;  %v1990_v18 = vmul.f32 %v5878_v16, %v1944_v5  ;;  %v5412_v3 = vpack.c.bf16 %v1977_v43, %v1976_v30  ;;  %v5884_v5 = vld [vmem:[%s6375_s18 + $0x68] sm:$0xff]  ;;  %v5887_v16 = vld [vmem:[%s6375_s18 + $0x60] sm:$0xff] }
 0x370   : > { %5405 = vmatpush3.bf16.msra.mxu0 %v5404_v19  ;;  %5585 = vmatpush3.bf16.msra.mxu1 %v5404_v19  ;;  %v1979_v35 = vmul.f32 %v5884_v5, %v6816_v39  ;;  %v1978_v31 = vmul.f32 %v5887_v16, %v6814_v36  ;;  %v5890_v36 = vld [vmem:[%s6375_s18 + $0x70] sm:$0xff]  ;;  %v775_v30 = vld [vmem:[%s8006_s8 + $0x20] sm:$0xff]  ;;  %v5895_v5 = vld [vmem:[%s6334_s15 + $0xe8] sm:$0xff] }
 0x371   : > { %v6886_v16 = vld [vmem:[%s6334_s15 + $0x38] sm:$0xff] }
 0x372   : > { %v1947_v10 = vpop.xlane.xlu1 %1946  ;;  %v5416_v44 = vpack.c.bf16 %v1979_v35, %v1978_v31  ;;  %v6871_v35 = vld [vmem:[%s6334_s15 + $0x10] sm:$0xff]  ;;  %8081 = vst [vmem:[#allocation21_spill] sm:$0xff] %v6886_v16  ;;  %v5903_v31 = vld [vmem:[%s6204_s26] sm:$0xff] }
 0x373   : > { %v1991_v11 = vmul.f32 %v5877_v61, %v1947_v10  ;;  %v5886_v61 = vld [vmem:[%s6375_s18 + $0xe0] sm:$0xff]  ;;  %8078 = vst [vmem:[#allocation18_spill] sm:$0xff] %v6871_v35 }
 0x375   : > { %v5406_v42 = vpack.c.bf16 %v1991_v11, %v1990_v18 }
 0x376   : > { %v1950_v55 = vpop.xlane.xlu0 %1949 }
 0x377   : > { %5407 = vmatprep.subr.bf16.mxu0 %v5406_v42  ;;  %5578 = vmatprep.subr.bf16.mxu1 %v5406_v42  ;;  %v1992_v47 = vmul.f32 %v5882_v56, %v1950_v55  ;;  %v5888_v42 = vld [vmem:[%s6375_s18 + $0xf0] sm:$0xff]  ;;  %v5889_v55 = vld [vmem:[%s6375_s18 + $0xf8] sm:$0xff] }
 0x378   : > { %5409 = vmatpush3.bf16.msra.mxu0 %v5408_v41  ;;  %5586 = vmatpush3.bf16.msra.mxu1 %v5408_v41  ;;  %v5891_v56 = vld [vmem:[%s6375_s18 + $0x78] sm:$0xff] }
 0x37a   : > { %v1953_v53 = vpop.xlane.xlu1 %1952 }
 0x37b   : > { %v1993_v15 = vmul.f32 %v5881_v60, %v1953_v53 }
 0x37d   : > { %v5410_v32 = vpack.c.bf16 %v1993_v15, %v1992_v47 }
 0x37e   : > { %v1956_v19 = vpop.xlane.xlu0 %1955 }
 0x37f   : > { %5411 = vmatprep.subr.bf16.mxu0 %v5410_v32  ;;  %5579 = vmatprep.subr.bf16.mxu1 %v5410_v32  ;;  %v1994_v11 = vmul.f32 %v5886_v61, %v1956_v19  ;;  %v6861_v32 = vld [vmem:[%s6334_s15] sm:$0xff]  ;;  %v6866_v19 = vld [vmem:[%s6334_s15 + $0x18] sm:$0xff] }
 0x380   : > { %5413 = vmatpush3.bf16.msra.mxu0 %v5412_v3  ;;  %5587 = vmatpush3.bf16.msra.mxu1 %v5412_v3  ;;  %8076 = vst [vmem:[#allocation16_spill] sm:$0xff] %v6861_v32  ;;  %v5893_v3 = vld [vmem:[%s6334_s15 + $0xd0] sm:$0xff]  ;;  %8077 = vst [vmem:[#allocation17_spill] sm:$0xff] %v6866_v19  ;;  %v6881_v61 = vld [vmem:[%s6334_s15 + $0x20] sm:$0xff] }
 0x381   : > { %8080 = vst [vmem:[#allocation20_spill] sm:$0xff] %v6881_v61 }
 0x382   : > { %v1959_v9 = vpop.xlane.xlu1 %1958 }
 0x383   : > { %v1995_v10 = vmul.f32 %v5885_v28, %v1959_v9  ;;  %v5897_v9 = vld [vmem:[%s6334_s15 + $0xe0] sm:$0xff]  ;;  %v6876_v28 = vld [vmem:[%s6334_s15 + $0x28] sm:$0xff] }
 0x384   : > { %8079 = vst [vmem:[#allocation19_spill] sm:$0xff] %v6876_v28 }
 0x385   : > { %v5414_v18 = vpack.c.bf16 %v1995_v10, %v1994_v11  ;;  %v5899_v10 = vld [vmem:[%s6334_s15 + $0xf8] sm:$0xff]  ;;  %v5901_v11 = vld [vmem:[%s6334_s15 + $0xf0] sm:$0xff] }
 0x386   : > { %v1962_v25 = vpop.xlane.xlu0 %1961 }
 0x387   : > { %5415 = vmatprep.subr.bf16.mxu0 %v5414_v18  ;;  %5580 = vmatprep.subr.bf16.mxu1 %v5414_v18  ;;  %v1996_v41 = vmul.f32 %v5888_v42, %v1962_v25  ;;  %v6892_v18 = vld [vmem:[%s6334_s15 + $0x30] sm:$0xff]  ;;  %v6898_v25 = vld [vmem:[%s6334_s15 + $0x48] sm:$0xff]  ;;  %v6904_v42 = vld [vmem:[%s6334_s15 + $0x40] sm:$0xff] }
 0x388   : > { %5417 = vmatpush3.bf16.msra.mxu0 %v5416_v44  ;;  %5588 = vmatpush3.bf16.msra.mxu1 %v5416_v44  ;;  %8082 = vst [vmem:[#allocation22_spill] sm:$0xff] %v6892_v18  ;;  %v5905_v44 = vld [vmem:[%s6204_s26 + $0x8] sm:$0xff]  ;;  %8083 = vst [vmem:[#allocation23_spill] sm:$0xff] %v6898_v25 }
 0x389   : > { %8084 = vst [vmem:[#allocation24_spill] sm:$0xff] %v6904_v42 }
 0x38a   : > { %v1965_v39 = vpop.xlane.xlu1 %1964  ;;  %v1914_v43 = vpop.xlane.xlu0 %1913 }
 0x38b   : > { %v1997_v23 = vmul.f32 %v5889_v55, %v1965_v39  ;;  %v1980_v15 = vmul.f32 %v5890_v36, %v1914_v43  ;;  %v5907_v39 = vld [vmem:[%s6204_s26 + $0x10] sm:$0xff]  ;;  %v6910_v55 = vld [vmem:[%s6334_s15 + $0x58] sm:$0xff] }
 0x38c   : > { %8085 = vst [vmem:[#allocation25_spill] sm:$0xff] %v6910_v55  ;;  %v6916_v43 = vld [vmem:[%s6334_s15 + $0x50] sm:$0xff] }
 0x38d   : > { %v5418_v53 = vpack.c.bf16 %v1997_v23, %v1996_v41  ;;  %v5909_v41 = vld [vmem:[%s6204_s26 + $0x18] sm:$0xff]  ;;  %v5911_v23 = vld [vmem:[%s6204_s26 + $0x20] sm:$0xff]  ;;  %8086 = vst [vmem:[#allocation26_spill] sm:$0xff] %v6916_v43  ;;  %v5915_v36 = vld [vmem:[%s6204_s26 + $0x30] sm:$0xff] }
 0x38e   : > { %v1917_v60 = vpop.xlane.xlu1 %1916 }
 0x38f   : > { %v1981_v47 = vmul.f32 %v5891_v56, %v1917_v60  ;;  %5419 = vmatprep.subr.bf16.mxu0 %v5418_v53  ;;  %5581 = vmatprep.subr.bf16.mxu1 %v5418_v53  ;;  %v5913_v53 = vld [vmem:[%s6204_s26 + $0x28] sm:$0xff]  ;;  %v5917_v56 = vld [vmem:[%s6204_s26 + $0x38] sm:$0xff] }
 0x390   : > { %v6922_v60 = vld [vmem:[%s6334_s15 + $0x68] sm:$0xff] }
 0x391   : > { %v5420_v57 = vpack.c.bf16 %v1981_v47, %v1980_v15  ;;  %8087 = vst [vmem:[#allocation27_spill] sm:$0xff] %v6922_v60  ;;  %v6928_v15 = vld [vmem:[%s6334_s15 + $0x60] sm:$0xff]  ;;  %v6934_v47 = vld [vmem:[%s6334_s15 + $0x78] sm:$0xff] }
 0x392   : > { %8088 = vst [vmem:[#allocation28_spill] sm:$0xff] %v6928_v15  ;;  %8089 = vst [vmem:[#allocation29_spill] sm:$0xff] %v6934_v47 }
 0x393   : > { %5421 = vmatpush3.bf16.msra.mxu0 %v5420_v57  ;;  %5589 = vmatpush3.bf16.msra.mxu1 %v5420_v57  ;;  %v5919_v57 = vld [vmem:[%s6204_s26 + $0x40] sm:$0xff] }
 0x394   : > { %5084 = vmatprep.subr.mxu1 %v775_v30 }
 0x396   : > { %2063 = vmatmul.mubr.f32.vlgmr.msra.gmra.mrb[64].mxu0 %v6861_v32  ;;  %2128 = vmatmul.mubr.f32.vlgmr.msra.gmra.mrb[96].mxu1 %v5893_v3  ;;  %v5921_v3 = vld [vmem:[%s6204_s26 + $0x48] sm:$0xff] }
 0x397   : > { %2067 = vmatprep.mubr.f32.mxu0 %v6866_v19  ;;  %2132 = vmatprep.mubr.f32.mxu1 %v5895_v5  ;;  %v6946_v5 = vld [vmem:[%s6334_s15 + $0x88] sm:$0xff] }
 0x398   : > { %5085 = vmatpush3.msra.mxu1 %v775_v30  ;;  %v6940_v30 = vld [vmem:[%s6334_s15 + $0x70] sm:$0xff]  ;;  %8091 = vst [vmem:[#allocation31_spill] sm:$0xff] %v6946_v5 }
 0x399   : > { %8090 = vst [vmem:[#allocation30_spill] sm:$0xff] %v6940_v30 }
 0x39a   : > { %2068 = vmatmul.mubr.f32.gmra.mrb[66].mxu0 %v6871_v35  ;;  %2133 = vmatmul.mubr.f32.gmra.mrb[98].mxu1 %v5897_v9  ;;  %v5923_v9 = vld [vmem:[%s6204_s26 + $0x50] sm:$0xff] }
 0x39b   : > { %2072 = vmatprep.mubr.f32.mxu0 %v6876_v28  ;;  %2137 = vmatprep.mubr.f32.mxu1 %v5899_v10  ;;  %v6952_v10 = vld [vmem:[%s6334_s15 + $0x80] sm:$0xff]  ;;  %v744_v28 = vld [vmem:[%s7008_s14 + $0x28] sm:$0xff] }
 0x39c   : > { %8092 = vst [vmem:[#allocation32_spill] sm:$0xff] %v6952_v10 }
 0x39e   : > { %2073 = vmatmul.mubr.f32.gmra.mrb[68].mxu0 %v6881_v61  ;;  %2138 = vmatmul.mubr.f32.gmra.mrb[100].mxu1 %v5901_v11  ;;  %v5925_v11 = vld [vmem:[%s6204_s26 + $0x58] sm:$0xff]  ;;  %v741_v61 = vld [vmem:[%s7008_s14 + $0x10] sm:$0xff] }
 0x39f   : > { %2077 = vmatprep.mubr.f32.mxu0 %v6886_v16  ;;  %5086 = vmatprep.mubr.msk.f32.mxu1 %vm817_vm0, %v5903_v31  ;;  %v6958_v31 = vld [vmem:[%s6334_s15 + $0x98] sm:$0xff] }
 0x3a0   : > { %8093 = vst [vmem:[#allocation33_spill] sm:$0xff] %v6958_v31 }
 0x3a2   : > { %2078 = vmatmul.mubr.f32.gmra.mrb[70].mxu0 %v6892_v18  ;;  %5087 = vmatmul.mubr.msk.f32.vlgmr.msra.gmra.mrb[102].mxu1 %vm817_vm0, %v5905_v44  ;;  %v5927_v44 = vld [vmem:[%s6204_s26 + $0x60] sm:$0xff] }
 0x3a3   : > { %2082 = vmatprep.mubr.f32.mxu0 %v6898_v25  ;;  %5089 = vmatprep.mubr.msk.f32.mxu1 %vm817_vm0, %v5907_v39  ;;  %v6964_v39 = vld [vmem:[%s6334_s15 + $0x90] sm:$0xff] }
 0x3a4   : > { %8094 = vst [vmem:[#allocation34_spill] sm:$0xff] %v6964_v39 }
 0x3a6   : > { %2083 = vmatmul.mubr.f32.gmra.mrb[72].mxu0 %v6904_v42  ;;  %5090 = vmatmul.mubr.msk.f32.gmra.mrb[104].mxu1 %vm817_vm0, %v5909_v41  ;;  %v5929_v41 = vld [vmem:[%s6204_s26 + $0x68] sm:$0xff] }
 0x3a7   : > { %2087 = vmatprep.mubr.f32.mxu0 %v6910_v55  ;;  %5092 = vmatprep.mubr.msk.f32.mxu1 %vm817_vm0, %v5911_v23  ;;  %v6970_v23 = vld [vmem:[%s6334_s15 + $0xa8] sm:$0xff] }
 0x3a8   : > { %8095 = vst [vmem:[#allocation35_spill] sm:$0xff] %v6970_v23 }
 0x3aa   : > { %2088 = vmatmul.mubr.f32.gmra.mrb[74].mxu0 %v6916_v43  ;;  %5093 = vmatmul.mubr.msk.f32.gmra.mrb[106].mxu1 %vm817_vm0, %v5913_v53  ;;  %v5931_v53 = vld [vmem:[%s6204_s26 + $0x70] sm:$0xff] }
 0x3ab   : > { %2092 = vmatprep.mubr.f32.mxu0 %v6922_v60  ;;  %5095 = vmatprep.mubr.msk.f32.mxu1 %vm817_vm0, %v5915_v36  ;;  %v6976_v36 = vld [vmem:[%s6334_s15 + $0xa0] sm:$0xff] }
 0x3ac   : > { %8096 = vst [vmem:[#allocation36_spill] sm:$0xff] %v6976_v36 }
 0x3ae   : > { %2093 = vmatmul.mubr.f32.gmra.mrb[76].mxu0 %v6928_v15  ;;  %5096 = vmatmul.mubr.msk.f32.gmra.mrb[108].mxu1 %vm817_vm0, %v5917_v56  ;;  %v5933_v56 = vld [vmem:[%s6204_s26 + $0x78] sm:$0xff] }
 0x3af   : > { %2097 = vmatprep.mubr.f32.mxu0 %v6934_v47  ;;  %5098 = vmatprep.mubr.msk.f32.mxu1 %vm817_vm0, %v5919_v57  ;;  %v6982_v57 = vld [vmem:[%s6334_s15 + $0xb8] sm:$0xff] }
 0x3b0   : > { %8097 = vst [vmem:[#allocation37_spill] sm:$0xff] %v6982_v57 }
 0x3b2   : > { %2098 = vmatmul.mubr.f32.gmra.mrb[78].mxu0 %v6940_v30  ;;  %5099 = vmatmul.mubr.msk.f32.gmra.mrb[110].mxu1 %vm817_vm0, %v5921_v3  ;;  %v6987_v3 = vld [vmem:[%s6334_s15 + $0xb0] sm:$0xff]  ;;  %v755_v30 = vld [vmem:[%s7015_s19] sm:$0xff] }
 0x3b3   : > { %2102 = vmatprep.mubr.f32.mxu0 %v6946_v5  ;;  %5101 = vmatprep.mubr.msk.f32.mxu1 %vm817_vm0, %v5923_v9  ;;  %8098 = vst [vmem:[#allocation38_spill] sm:$0xff] %v6987_v3  ;;  %v6991_v9 = vld [vmem:[%s6334_s15 + $0xc8] sm:$0xff] }
 0x3b4   : > { %8099 = vst [vmem:[#allocation39_spill] sm:$0xff] %v6991_v9 }
 0x3b6   : > { %2103 = vmatmul.mubr.f32.gmra.mrb[80].mxu0 %v6952_v10  ;;  %5102 = vmatmul.mubr.msk.f32.gmra.mrb[112].mxu1 %vm817_vm0, %v5925_v11  ;;  %v6995_v11 = vld [vmem:[%s6334_s15 + $0xc0] sm:$0xff] }
 0x3b7   : > { %2107 = vmatprep.mubr.f32.mxu0 %v6958_v31  ;;  %5104 = vmatprep.mubr.msk.f32.mxu1 %vm817_vm0, %v5927_v44  ;;  %8100 = vst [vmem:[#allocation40_spill] sm:$0xff] %v6995_v11 }
 0x3ba   : > { %2108 = vmatmul.mubr.f32.gmra.mrb[82].mxu0 %v6964_v39  ;;  %5105 = vmatmul.mubr.msk.f32.gmra.mrb[114].mxu1 %vm817_vm0, %v5929_v41 }
 0x3bb   : > { %2112 = vmatprep.mubr.f32.mxu0 %v6970_v23  ;;  %5107 = vmatprep.mubr.msk.f32.mxu1 %vm817_vm0, %v5931_v53 }
 0x3be   : > { %2113 = vmatmul.mubr.f32.gmra.mrb[84].mxu0 %v6976_v36  ;;  %5108 = vmatmul.mubr.msk.f32.gmra.mrb[116].mxu1 %vm817_vm0, %v5933_v56 }
 0x3bf   : > { %2117 = vmatprep.mubr.f32.mxu0 %v6982_v57  ;;  %2720 = vmatprep.mubr.f32.mxu1 %v8011_v24 }
 0x3c2   : > { %2118 = vmatmul.mubr.f32.gmra.mrb[86].mxu0 %v6987_v3 }
 0x3c3   : > { %2122 = vmatprep.mubr.f32.mxu0 %v6991_v9 }
 0x3c6   : > { %2123 = vmatmul.mubr.f32.gmra.mrb[88].mxu0 %v6995_v11 }
 0x469   : > { %v4847_v44 = vpop.f32.mrb[64].mxu0  ;;  %v4886_v41 = vpop.f32.mrb[96].mxu1 }
 0x46a   : > { %v4848_v53 = vpop.f32.mrb[65].mxu0  ;;  %v4887_v56 = vpop.f32.mrb[97].mxu1 }
 0x46b   : > { %v4849_v1 = vadd.f32 %v4848_v53, %v4847_v44  ;;  %v6998_v23 = vadd.f32 %v4887_v56, %v4886_v41 }
 0x46d   : > { %v4850_v24 = vpop.f32.mrb[66].mxu0  ;;  %v4889_v36 = vpop.f32.mrb[98].mxu1 }
 0x46e   : > { %v4851_v57 = vpop.f32.mrb[67].mxu0  ;;  %v4890_v3 = vpop.f32.mrb[99].mxu1 }
 0x46f   : > { %v4852_v5 = vadd.f32 %v4851_v57, %v4850_v24  ;;  %v7000_v10 = vadd.f32 %v4890_v3, %v4889_v36  ;;  %v739_v36 = vld [vmem:[%s7008_s14] sm:$0xff] }
 0x471   : > { %v4853_v9 = vpop.f32.mrb[68].mxu0  ;;  %v4892_v31 = vpop.f32.mrb[100].mxu1 }
 0x472   : > { %v4854_v39 = vpop.f32.mrb[69].mxu0  ;;  %v4893_v11 = vpop.f32.mrb[101].mxu1 }
 0x473   : > { %v4855_v60 = vadd.f32 %v4854_v39, %v4853_v9  ;;  %v7002_v15 = vadd.f32 %v4893_v11, %v4892_v31  ;;  %v2143_v9 = vmul.f32 %v4849_v1, %v739_v36  ;;  %v743_v11 = vld [vmem:[%s7008_s14 + $0x20] sm:$0xff] }
 0x475   : > { %v4856_v44 = vpop.f32.mrb[70].mxu0  ;;  %v5088_v41 = vpop.f32.mrb[102].mxu1  ;;  %v7021_v43 = vadd.f32 %v2143_v9, %v755_v30  ;;  %v2145_v18 = vmul.f32 %v4855_v60, %v741_v61 }
 0x476   : > { %v4857_v24 = vpop.f32.mrb[71].mxu0  ;;  %v2328_v57 = vpop.f32.mrb[103].mxu1 }
 0x477   : > { %v4858_v3 = vadd.f32 %v4857_v24, %v4856_v44  ;;  %v5422_v53 = vpack.c.bf16 %v5088_v41, %v2328_v57  ;;  %v740_v24 = vld [vmem:[%s7008_s14 + $0x8] sm:$0xff]  ;;  %v759_v57 = vld [vmem:[%s7015_s19 + $0x20] sm:$0xff] }
 0x479   : > { %v4859_v31 = vpop.f32.mrb[72].mxu0  ;;  %v5091_v39 = vpop.f32.mrb[104].mxu1  ;;  %5423 = vmatprep.subr.bf16.mxu0 %v5422_v53 }
 0x47a   : > { %v4860_v56 = vpop.f32.mrb[73].mxu0  ;;  %v2338_v47 = vpop.f32.mrb[105].mxu1  ;;  %5425 = vmatpush3.bf16.msra.mxu0 %v5422_v53  ;;  %v2144_v53 = vmul.f32 %v4852_v5, %v740_v24 }
 0x47b   : > { %v4861_v44 = vadd.f32 %v4860_v56, %v4859_v31  ;;  %v5426_v41 = vpack.c.bf16 %v5091_v39, %v2338_v47  ;;  %v756_v39 = vld [vmem:[%s7015_s19 + $0x8] sm:$0xff] }
 0x47c   : > { %v760_v56 = vld [vmem:[%s7015_s19 + $0x28] sm:$0xff]  ;;  %v7032_v24 = vadd.f32 %v2144_v53, %v756_v39  ;;  %v746_v53 = vld [vmem:[%s7008_s14 + $0x38] sm:$0xff] }
 0x47d   : > { %v2147_v25 = vmul.f32 %v4861_v44, %v743_v11  ;;  %v4862_v42 = vpop.f32.mrb[74].mxu0  ;;  %v5094_v55 = vpop.f32.mrb[106].mxu1  ;;  %5427 = vmatprep.subr.bf16.mxu0 %v5426_v41  ;;  %v761_v11 = vld [vmem:[%s7015_s19 + $0x30] sm:$0xff] }
 0x47e   : > { %v4863_v1 = vpop.f32.mrb[75].mxu0  ;;  %v2348_v36 = vpop.f32.mrb[107].mxu1  ;;  %5429 = vmatpush3.bf16.msra.mxu0 %v5426_v41  ;;  %v745_v41 = vld [vmem:[%s7008_s14 + $0x30] sm:$0xff] }
 0x47f   : > { %v7025_v16 = vadd.f32 %v2147_v25, %v759_v57  ;;  %v4864_v47 = vadd.f32 %v4863_v1, %v4862_v42  ;;  %v5430_v31 = vpack.c.bf16 %v5094_v55, %v2348_v36  ;;  %v757_v42 = vld [vmem:[%s7015_s19 + $0x10] sm:$0xff]  ;;  %v742_v36 = vld [vmem:[%s7008_s14 + $0x18] sm:$0xff] }
 0x480   : > { %v7041_v32 = vadd.f32 %v2145_v18, %v757_v42 }
 0x481   : > { %v2148_v30 = vmul.f32 %v4864_v47, %v744_v28  ;;  %v4865_v9 = vpop.f32.mrb[76].mxu0  ;;  %v5097_v44 = vpop.f32.mrb[108].mxu1  ;;  %5431 = vmatprep.subr.bf16.mxu0 %v5430_v31  ;;  %v747_v28 = vld [vmem:[%s7008_s14 + $0x40] sm:$0xff] }
 0x482   : > { %v4866_v5 = vpop.f32.mrb[77].mxu0  ;;  %v2358_v25 = vpop.f32.mrb[109].mxu1  ;;  %5433 = vmatpush3.bf16.msra.mxu0 %v5430_v31 }
 0x483   : > { %v7035_v55 = vadd.f32 %v2148_v30, %v760_v56  ;;  %v4867_v57 = vadd.f32 %v4866_v5, %v4865_v9  ;;  %v5434_v1 = vpack.c.bf16 %v5097_v44, %v2358_v25  ;;  %v2146_v56 = vmul.f32 %v4858_v3, %v742_v36  ;;  %v758_v5 = vld [vmem:[%s7015_s19 + $0x18] sm:$0xff] }
 0x484   : > { %v762_v25 = vld [vmem:[%s7015_s19 + $0x38] sm:$0xff] }
 0x485   : > { %v2149_v61 = vmul.f32 %v4867_v57, %v745_v41  ;;  %v4868_v60 = vpop.f32.mrb[78].mxu0  ;;  %v5100_v47 = vpop.f32.mrb[110].mxu1  ;;  %5435 = vmatprep.subr.bf16.mxu0 %v5434_v1  ;;  %v7051_v3 = vadd.f32 %v2146_v56, %v758_v5  ;;  %v748_v41 = vld [vmem:[%s7008_s14 + $0x48] sm:$0xff]  ;;  %v8102_v29 = vmax.f32 %v7032_v24, %v7035_v55 }
 0x486   : > { %v4869_v31 = vpop.f32.mrb[79].mxu0  ;;  %v2368_v39 = vpop.f32.mrb[111].mxu1  ;;  %5437 = vmatpush3.bf16.msra.mxu0 %v5434_v1 }
 0x487   : > { %v7044_v30 = vadd.f32 %v2149_v61, %v761_v11  ;;  %v4870_v9 = vadd.f32 %v4869_v31, %v4868_v60  ;;  %v5438_v44 = vpack.c.bf16 %v5100_v47, %v2368_v39  ;;  %v763_v60 = vld [vmem:[%s7015_s19 + $0x40] sm:$0xff]  ;;  %v752_v47 = vld [vmem:[%s7008_s14 + $0x68] sm:$0xff] }
 0x489   : > { %v2150_v57 = vmul.f32 %v4870_v9, %v746_v53  ;;  %v4871_v18 = vpop.f32.mrb[80].mxu0  ;;  %v5103_v42 = vpop.f32.mrb[112].mxu1  ;;  %5439 = vmatprep.subr.bf16.mxu0 %v5438_v44 }
 0x48a   : > { %v4872_v19 = vpop.f32.mrb[81].mxu0  ;;  %v2378_v1 = vpop.f32.mrb[113].mxu1  ;;  %5441 = vmatpush3.bf16.msra.mxu0 %v5438_v44 }
 0x48b   : > { %v7053_v11 = vadd.f32 %v2150_v57, %v762_v25  ;;  %v4873_v36 = vadd.f32 %v4872_v19, %v4871_v18  ;;  %v5442_v61 = vpack.c.bf16 %v5103_v42, %v2378_v1  ;;  %v2156_v25 = vmul.f32 %v6998_v23, %v752_v47  ;;  %v753_v57 = vld [vmem:[%s7008_s14 + $0x70] sm:$0xff]  ;;  %v764_v1 = vld [vmem:[%s7015_s19 + $0x48] sm:$0xff] }
 0x48c   : > { %v777_v42 = vld [vmem:[%s8006_s8 + $0x30] sm:$0xff] }
 0x48d   : > { %v2178_v53 = vmax.f32 %v7051_v3, %v7053_v11  ;;  %v2151_v31 = vmul.f32 %v4873_v36, %v747_v28  ;;  %v4874_v39 = vpop.f32.mrb[82].mxu0  ;;  %v5106_v9 = vpop.f32.mrb[114].mxu1  ;;  %5443 = vmatprep.subr.bf16.mxu0 %v5442_v61  ;;  %v776_v28 = vld [vmem:[%s8006_s8 + $0x28] sm:$0xff] }
 0x48e   : > { %v4875_v44 = vpop.f32.mrb[83].mxu0  ;;  %v2388_v56 = vpop.f32.mrb[115].mxu1  ;;  %5445 = vmatpush3.bf16.msra.mxu0 %v5442_v61  ;;  %v768_v36 = vld [vmem:[%s7015_s19 + $0x68] sm:$0xff]  ;;  %v8101_v61 = vmax.f32 %v7021_v43, %v7025_v16  ;;  %v7078_v35 = vpack.c.bf16 %v777_v42, %v776_v28 }
 0x48f   : > { %v7060_v5 = vadd.f32 %v2151_v31, %v763_v60  ;;  %v4876_v19 = vadd.f32 %v4875_v44, %v4874_v39  ;;  %v5446_v18 = vpack.c.bf16 %v5106_v9, %v2388_v56  ;;  %v749_v39 = vld [vmem:[%s7008_s14 + $0x50] sm:$0xff]  ;;  %v2157_v44 = vmul.f32 %v7000_v10, %v753_v57  ;;  %v750_v57 = vld [vmem:[%s7008_s14 + $0x58] sm:$0xff] }
 0x490   : > { %v7080_v51 = vadd.f32 %v2156_v25, %v768_v36 }
 0x491   : > { %v2179_v60 = vmax.f32 %v8101_v61, %v7060_v5  ;;  %v2152_v23 = vmul.f32 %v4876_v19, %v748_v41  ;;  %v4877_v47 = vpop.f32.mrb[84].mxu0  ;;  %v5109_v31 = vpop.f32.mrb[116].mxu1  ;;  %5447 = vmatprep.subr.bf16.mxu0 %v5446_v18  ;;  %v769_v61 = vld [vmem:[%s7015_s19 + $0x70] sm:$0xff]  ;;  %v754_v19 = vld [vmem:[%s7008_s14 + $0x78] sm:$0xff] }
 0x492   : > { %v4878_v9 = vpop.f32.mrb[85].mxu0  ;;  %v2398_v56 = vpop.f32.mrb[117].mxu1  ;;  %5449 = vmatpush3.bf16.msra.mxu0 %v5446_v18  ;;  %v765_v41 = vld [vmem:[%s7015_s19 + $0x50] sm:$0xff]  ;;  %v2173_v28 = vadd.f32 %v2157_v44, %v769_v61  ;;  %v2158_v36 = vmul.f32 %v7002_v15, %v754_v19 }
 0x493   : > { %v2168_v6 = vadd.f32 %v2152_v23, %v764_v1  ;;  %v4879_v63 = vadd.f32 %v4878_v9, %v4877_v47  ;;  %v5450_v37 = vpack.c.bf16 %v5109_v31, %v2398_v56  ;;  %v766_v23 = vld [vmem:[%s7015_s19 + $0x58] sm:$0xff]  ;;  %v751_v9 = vld [vmem:[%s7008_s14 + $0x60] sm:$0xff] }
 0x494   : > { %v770_v47 = vld [vmem:[%s7015_s19 + $0x78] sm:$0xff] }
 0x495   : > { %v2180_v21 = vmax.f32 %v8102_v29, %v2168_v6  ;;  %v2153_v13 = vmul.f32 %v4879_v63, %v749_v39  ;;  %v4880_v10 = vpop.f32.mrb[86].mxu0  ;;  %5451 = vmatprep.subr.bf16.mxu0 %v5450_v37  ;;  %v8103_v29 = vmax.f32 %v7041_v32, %v7044_v30  ;;  %v2174_v61 = vadd.f32 %v2158_v36, %v770_v47  ;;  %v778_v36 = vld [vmem:[%s8006_s8 + $0x38] sm:$0xff] }
 0x496   : > { %v4881_v18 = vpop.f32.mrb[87].mxu0  ;;  %5453 = vmatpush3.bf16.msra.mxu0 %v5450_v37 }
 0x497   : > { %v2169_v25 = vadd.f32 %v2153_v13, %v765_v41  ;;  %v2184_v42 = vmax.f32 %v2180_v21, %v7080_v51  ;;  %v4882_v1 = vadd.f32 %v4881_v18, %v4880_v10  ;;  %5487 = vmatprep.subr.bf16.mxu0 %v7078_v35  ;;  %v767_v21 = vld [vmem:[%s7015_s19 + $0x60] sm:$0xff] }
 0x499   : > { %v2181_v63 = vmax.f32 %v8103_v29, %v2169_v25  ;;  %v2154_v31 = vmul.f32 %v4882_v1, %v750_v57  ;;  %v4883_v39 = vpop.f32.mrb[88].mxu0 }
 0x49a   : > { %v4884_v44 = vpop.f32.mrb[89].mxu0 }
 0x49b   : > { %v2170_v37 = vadd.f32 %v2154_v31, %v766_v23  ;;  %v2185_v13 = vmax.f32 %v2181_v63, %v2173_v28  ;;  %v4885_v56 = vadd.f32 %v4884_v44, %v4883_v39 }
 0x49d   : > { %v2182_v41 = vmax.f32 %v2178_v53, %v2170_v37  ;;  %v2155_v10 = vmul.f32 %v4885_v56, %v751_v9  ;;  %v779_v53 = vld [vmem:[%s8006_s8 + $0x40] sm:$0xff] }
 0x49e   : > { %v5490_v23 = vpack.c.bf16 %v779_v53, %v778_v36 }
 0x49f   : > { %v2171_v15 = vadd.f32 %v2155_v10, %v767_v21  ;;  %v2186_v19 = vmax.f32 %v2182_v41, %v2174_v61 }
 0x4a1   : > { %v2183_v18 = vmax.f32 %v2179_v60, %v2171_v15  ;;  %v2188_v4 = vmax.f32 %v2185_v13, %v2186_v19 }
 0x4a3   : > { %v2187_v58 = vmax.f32 %v2183_v18, %v2184_v42 }
 0x4a5   : > { %v2189_v50 = vmax.f32 %v2187_v58, %v2188_v4 }
 0x4a7   : > { %v2190_v40 = vrot.slane %v2189_v50, 4 }
 0x4a9   : > { %v2191_v34 = vmax.f32 %v2189_v50, %v2190_v40 }
 0x4ab   : > { %v2192_v29 = vrot.slane %v2191_v34, 2 }
 0x4ad   : > { %v2193_v57 = vmax.f32 %v2191_v34, %v2192_v29 }
 0x4af   : > { %v2194_v1 = vrot.slane %v2193_v57, 1 }
 0x4b1   : > { %v2195_v26 = vmax.f32 %v2193_v57, %v2194_v1 }
 0x4b3   : > { %v2196_v20 = vmax.f32 %v2195_v26, 1e-12 }
 0x4b5   : > { %5600 = vrcp.f32 %v2196_v20 }
 0x4bf   : > { %v5601_v60 = vpop.eup %5600 }
 0x4c0   : > { %v2198_v58 = vmul.f32 %v5601_v60, %v7021_v43  ;;  %v2199_v40 = vmul.f32 %v5601_v60, %v7032_v24  ;;  %v2200_v34 = vmul.f32 %v5601_v60, %v7041_v32  ;;  %v2201_v50 = vmul.f32 %v5601_v60, %v7051_v3 }
 0x4c1   : > { %v2202_v20 = vmul.f32 %v5601_v60, %v7025_v16  ;;  %v2203_v26 = vmul.f32 %v5601_v60, %v7035_v55  ;;  %v2204_v4 = vmul.f32 %v5601_v60, %v7044_v30  ;;  %v2205_v42 = vmul.f32 %v5601_v60, %v7053_v11 }
 0x4c2   : > { %5142 = vmatprep.mubr.f32.mxu0 %v2198_v58  ;;  %v2206_v47 = vmul.f32 %v5601_v60, %v7060_v5  ;;  %v2207_v63 = vmul.f32 %v5601_v60, %v2168_v6  ;;  %v2208_v31 = vmul.f32 %v5601_v60, %v2169_v25  ;;  %v2209_v43 = vmul.f32 %v5601_v60, %v2170_v37  ;;  %v8105_v6 = vld [vmem:[#allocation3_spill] sm:$0xff] }
 0x4c3   : > { %5143 = vmatmul.mubr.f32.vlgmr.msra.gmra.mrb[90].mxu0 %v2199_v40  ;;  %v2210_v24 = vmul.f32 %v5601_v60, %v2171_v15  ;;  %v2211_v32 = vmul.f32 %v5601_v60, %v7080_v51  ;;  %v2212_v39 = vmul.f32 %v5601_v60, %v2173_v28  ;;  %v2213_v3 = vmul.f32 %v5601_v60, %v2174_v61 }
 0x4c4   : > { %5145 = vmatprep.mubr.f32.mxu0 %v2200_v34  ;;  %5489 = vmatpush3.bf16.msra.mxu0 %v7078_v35  ;;  %v8104_v16 = vmov 0.0|0.0  }
 0x4c5   : > { %5491 = vmatprep.subr.bf16.mxu0 %v5490_v23 }
 0x4c7   : > { %5146 = vmatmul.mubr.f32.gmra.mrb[92].mxu0 %v2201_v50 }
 0x4c8   : > { %5148 = vmatprep.mubr.f32.mxu0 %v2202_v20  ;;  %5493 = vmatpush3.bf16.msra.mxu0 %v5490_v23 }
 0x4c9   : > { %5494 = vmatprep.subr.bf16.mxu0 %v8104_v16 }
 0x4cb   : > { %5149 = vmatmul.mubr.f32.gmra.mrb[94].mxu0 %v2203_v26 }
 0x4cc   : > { %5151 = vmatprep.mubr.f32.mxu0 %v2204_v4 }
 0x4cf   : > { %5152 = vmatmul.mubr.f32.gmra.mrb[96].mxu0 %v2205_v42 }
 0x4d0   : > { %5154 = vmatprep.mubr.f32.mxu0 %v2206_v47 }
 0x4d3   : > { %5155 = vmatmul.mubr.f32.gmra.mrb[98].mxu0 %v2207_v63 }
 0x4d4   : > { %5157 = vmatprep.mubr.f32.mxu0 %v2208_v31 }
 0x4d7   : > { %5158 = vmatmul.mubr.f32.gmra.mrb[100].mxu0 %v2209_v43 }
 0x4d8   : > { %5160 = vmatprep.mubr.f32.mxu0 %v2210_v24 }
 0x4db   : > { %5161 = vmatmul.mubr.f32.gmra.mrb[102].mxu0 %v2211_v32 }
 0x4dc   : > { %5163 = vmatprep.mubr.f32.mxu0 %v2212_v39 }
 0x4df   : > { %5164 = vmatmul.mubr.f32.gmra.mrb[104].mxu0 %v2213_v3 }
 0x4e0   : > { %5174 = vmatprep.mubr.msk.f32.mxu0 %vm1283_vm1, %v6607_v45  ;;  %v8106_v45 = vld [vmem:[#allocation4_spill] sm:$0xff] }
 0x4e3   : > { %5175 = vmatmul.mubr.msk.f32.vlgmr.msra.gmra.mrb[106].mxu0 %vm1283_vm1, %v6612_v49  ;;  %v8107_v49 = vld [vmem:[#allocation5_spill] sm:$0xff] }
 0x4e4   : > { %5177 = vmatprep.mubr.msk.f32.mxu0 %vm1283_vm1, %v6618_v54  ;;  %v8108_v54 = vld [vmem:[#allocation6_spill] sm:$0xff] }
 0x4e7   : > { %5178 = vmatmul.mubr.msk.f32.gmra.mrb[108].mxu0 %vm1283_vm1, %v6624_v59  ;;  %v8109_v59 = vld [vmem:[#allocation7_spill] sm:$0xff] }
 0x4e8   : > { %5180 = vmatprep.mubr.msk.f32.mxu0 %vm1283_vm1, %v6630_v0  ;;  %v8110_v0 = vld [vmem:[#allocation8_spill] sm:$0xff] }
 0x4eb   : > { %5181 = vmatmul.mubr.msk.f32.gmra.mrb[110].mxu0 %vm1283_vm1, %v6636_v7  ;;  %v8111_v7 = vld [vmem:[#allocation9_spill] sm:$0xff] }
 0x4ec   : > { %5183 = vmatprep.mubr.msk.f32.mxu0 %vm1283_vm1, %v6642_v12  ;;  %v8112_v12 = vld [vmem:[#allocation10_spill] sm:$0xff] }
 0x4ef   : > { %5184 = vmatmul.mubr.msk.f32.gmra.mrb[112].mxu0 %vm1283_vm1, %v6648_v17  ;;  %v8113_v17 = vld [vmem:[#allocation11_spill] sm:$0xff] }
 0x4f0   : > { %5186 = vmatprep.mubr.msk.f32.mxu0 %vm1283_vm1, %v6654_v22  ;;  %v8114_v22 = vld [vmem:[#allocation12_spill] sm:$0xff] }
 0x4f3   : > { %5187 = vmatmul.mubr.msk.f32.gmra.mrb[114].mxu0 %vm1283_vm1, %v6660_v27  ;;  %v8115_v27 = vld [vmem:[#allocation13_spill] sm:$0xff] }
 0x4f4   : > { %5189 = vmatprep.mubr.msk.f32.mxu0 %vm1283_vm1, %v6666_v33  ;;  %v8116_v33 = vld [vmem:[#allocation14_spill] sm:$0xff] }
 0x4f7   : > { %5190 = vmatmul.mubr.msk.f32.gmra.mrb[116].mxu0 %vm1283_vm1, %v6672_v38  ;;  %v8117_v38 = vld [vmem:[#allocation15_spill] sm:$0xff] }
 0x4f8   : > { %5192 = vmatprep.mubr.msk.f32.mxu0 %vm1283_vm1, %v6678_v46  ;;  %v8118_v46 = vld [vmem:[#allocation2_spill] sm:$0xff] }
 0x4fb   : > { %5193 = vmatmul.mubr.msk.f32.gmra.mrb[118].mxu0 %vm1283_vm1, %v6684_v52  ;;  %v2409_v52 = vsub.s32 2, %v8118_v46 }
 0x4fc   : > { %5195 = vmatprep.mubr.msk.f32.mxu0 %vm1283_vm1, %v6779_v48 }
 0x4ff   : > { %5196 = vmatmul.mubr.msk.f32.gmra.mrb[120].mxu0 %vm1283_vm1, %v6789_v62 }
 0x500   : > { %5198 = vmatprep.mubr.msk.f32.mxu0 %vm1283_vm1, %v6695_v2  ;;  %v2558_v2 = vsub.s32 5, %v8118_v46 }
 0x503   : > { %5199 = vmatmul.mubr.msk.f32.gmra.mrb[122].mxu0 %vm1283_vm1, %v6700_v8  ;;  %v5938_v8 = vld [vmem:[%s8006_s8 + $0xc8] sm:$0xff] }
 0x504   : > { %5201 = vmatprep.mubr.msk.f32.mxu0 %vm1283_vm1, %v6706_v14  ;;  %v7186_v14 = vrot.slane %v5938_v8, %v2409_v52  ;;  %v7188_v48 = vrot.slane %v5938_v8, %v2558_v2 }
 0x507   : > { %5202 = vmatmul.mubr.msk.f32.gmra.mrb[124].mxu0 %vm1283_vm1, %v8105_v6 }
 0x508   : > { %5204 = vmatprep.mubr.msk.f32.mxu0 %vm1283_vm1, %v8106_v45 }
 0x50b   : > { %5205 = vmatmul.mubr.msk.f32.gmra.mrb[126].mxu0 %vm1283_vm1, %v8107_v49 }
 0x50c   : > { %5207 = vmatprep.mubr.msk.f32.mxu0 %vm1283_vm1, %v8108_v54 }
 0x50f   : > { %5208 = vmatmul.mubr.msk.f32.gmra.mrb[128].mxu0 %vm1283_vm1, %v8109_v59 }
 0x510   : > { %5210 = vmatprep.mubr.msk.f32.mxu0 %vm1283_vm1, %v8110_v0 }
 0x513   : > { %5211 = vmatmul.mubr.msk.f32.gmra.mrb[130].mxu0 %vm1283_vm1, %v8111_v7 }
 0x514   : > { %5213 = vmatprep.mubr.msk.f32.mxu0 %vm1283_vm1, %v8112_v12 }
 0x517   : > { %5214 = vmatmul.mubr.msk.f32.gmra.mrb[132].mxu0 %vm1283_vm1, %v8113_v17 }
 0x518   : > { %5216 = vmatprep.mubr.msk.f32.mxu0 %vm1283_vm1, %v8114_v22 }
 0x51b   : > { %5217 = vmatmul.mubr.msk.f32.gmra.mrb[134].mxu0 %vm1283_vm1, %v8115_v27 }
 0x51c   : > { %5219 = vmatprep.mubr.msk.f32.mxu0 %vm1283_vm1, %v8116_v33 }
 0x51f   : > { %5220 = vmatmul.mubr.msk.f32.gmra.mrb[136].mxu0 %vm1283_vm1, %v8117_v38 }
 0x596   : > { %v5144_v51 = vpop.f32.mrb[90].mxu0 }
 0x597   : > { %v2483_v62 = vadd.f32 %v5144_v51, %v7186_v14  ;;  %v2477_v35 = vpop.f32.mrb[91].mxu0 }
 0x598   : > { %v2478_v55 = vadd.f32 %v2477_v35, %v7186_v14 }
 0x599   : > { %v2561_v30 = vmul.f32 %v7188_v48, %v2483_v62 }
 0x59a   : > { %v5147_v11 = vpop.f32.mrb[92].mxu0  ;;  %v2560_v5 = vmul.f32 %v7188_v48, %v2478_v55 }
 0x59b   : > { %v2493_v28 = vadd.f32 %v5147_v11, %v7186_v14  ;;  %v2487_v25 = vpop.f32.mrb[93].mxu0  ;;  %v2579_v9 = vsel %vm817_vm0, %v2561_v30, 0.0 }
 0x59c   : > { %v2488_v44 = vadd.f32 %v2487_v25, %v7186_v14  ;;  %2580 = vadd.xlane.f32.xlu1 %v2579_v9  ;;  %v2576_v37 = vsel %vm817_vm0, %v2560_v5, 0.0 }
 0x59d   : > { %2577 = vadd.xlane.f32.xlu0 %v2576_v37  ;;  %v2563_v13 = vmul.f32 %v7188_v48, %v2493_v28 }
 0x59e   : > { %v5150_v56 = vpop.f32.mrb[94].mxu0  ;;  %v2562_v61 = vmul.f32 %v7188_v48, %v2488_v44 }
 0x59f   : > { %v2503_v21 = vadd.f32 %v5150_v56, %v7186_v14  ;;  %v2497_v41 = vpop.f32.mrb[95].mxu0  ;;  %v2585_v10 = vsel %vm817_vm0, %v2563_v13, 0.0 }
 0x5a0   : > { %v2498_v15 = vadd.f32 %v2497_v41, %v7186_v14  ;;  %2586 = vadd.xlane.f32.xlu1 %v2585_v10  ;;  %v2582_v19 = vsel %vm817_vm0, %v2562_v61, 0.0 }
 0x5a1   : > { %2583 = vadd.xlane.f32.xlu0 %v2582_v19  ;;  %v2565_v18 = vmul.f32 %v7188_v48, %v2503_v21 }
 0x5a2   : > { %v5153_v29 = vpop.f32.mrb[96].mxu0  ;;  %v2564_v57 = vmul.f32 %v7188_v48, %v2498_v15 }
 0x5a3   : > { %v2513_v1 = vadd.f32 %v5153_v29, %v7186_v14  ;;  %v2507_v36 = vpop.f32.mrb[97].mxu0  ;;  %v2591_v53 = vsel %vm817_vm0, %v2565_v18, 0.0 }
 0x5a4   : > { %v2508_v60 = vadd.f32 %v2507_v36, %v7186_v14  ;;  %2592 = vadd.xlane.f32.xlu1 %v2591_v53  ;;  %v2588_v23 = vsel %vm817_vm0, %v2564_v57, 0.0 }
 0x5a5   : > { %2589 = vadd.xlane.f32.xlu0 %v2588_v23  ;;  %v2567_v58 = vmul.f32 %v7188_v48, %v2513_v1 }
 0x5a6   : > { %v5156_v40 = vpop.f32.mrb[98].mxu0  ;;  %v2566_v34 = vmul.f32 %v7188_v48, %v2508_v60 }
 0x5a7   : > { %v2523_v50 = vadd.f32 %v5156_v40, %v7186_v14  ;;  %v2517_v20 = vpop.f32.mrb[99].mxu0  ;;  %v2597_v26 = vsel %vm817_vm0, %v2567_v58, 0.0 }
 0x5a8   : > { %v2518_v4 = vadd.f32 %v2517_v20, %v7186_v14  ;;  %2598 = vadd.xlane.f32.xlu1 %v2597_v26  ;;  %v2594_v42 = vsel %vm817_vm0, %v2566_v34, 0.0 }
 0x5a9   : > { %2595 = vadd.xlane.f32.xlu0 %v2594_v42  ;;  %v2569_v47 = vmul.f32 %v7188_v48, %v2523_v50 }
 0x5aa   : > { %v5159_v63 = vpop.f32.mrb[100].mxu0  ;;  %v2568_v31 = vmul.f32 %v7188_v48, %v2518_v4 }
 0x5ab   : > { %v2533_v43 = vadd.f32 %v5159_v63, %v7186_v14  ;;  %v2527_v24 = vpop.f32.mrb[101].mxu0  ;;  %v2603_v32 = vsel %vm817_vm0, %v2569_v47, 0.0 }
 0x5ac   : > { %v2528_v39 = vadd.f32 %v2527_v24, %v7186_v14  ;;  %2604 = vadd.xlane.f32.xlu1 %v2603_v32  ;;  %v2600_v3 = vsel %vm817_vm0, %v2568_v31, 0.0 }
 0x5ad   : > { %2601 = vadd.xlane.f32.xlu0 %v2600_v3  ;;  %v2571_v6 = vmul.f32 %v7188_v48, %v2533_v43 }
 0x5ae   : > { %v5162_v45 = vpop.f32.mrb[102].mxu0  ;;  %v2570_v49 = vmul.f32 %v7188_v48, %v2528_v39 }
 0x5af   : > { %v2543_v54 = vadd.f32 %v5162_v45, %v7186_v14  ;;  %v2537_v59 = vpop.f32.mrb[103].mxu0  ;;  %v2609_v0 = vsel %vm817_vm0, %v2571_v6, 0.0 }
 0x5b0   : > { %v2538_v7 = vadd.f32 %v2537_v59, %v7186_v14  ;;  %2610 = vadd.xlane.f32.xlu1 %v2609_v0  ;;  %v2606_v12 = vsel %vm817_vm0, %v2570_v49, 0.0 }
 0x5b1   : > { %2607 = vadd.xlane.f32.xlu0 %v2606_v12  ;;  %v2573_v17 = vmul.f32 %v7188_v48, %v2543_v54  ;;  %v8119_v12 = vld [vmem:[#allocation18_spill] sm:$0xff] }
 0x5b2   : > { %v5165_v22 = vpop.f32.mrb[104].mxu0  ;;  %v2572_v27 = vmul.f32 %v7188_v48, %v2538_v7 }
 0x5b3   : > { %v2553_v33 = vadd.f32 %v5165_v22, %v7186_v14  ;;  %v2547_v38 = vpop.f32.mrb[105].mxu0  ;;  %v2615_v52 = vsel %vm817_vm0, %v2573_v17, 0.0  ;;  %v8120_v22 = vld [vmem:[#allocation17_spill] sm:$0xff] }
 0x5b4   : > { %v2548_v2 = vadd.f32 %v2547_v38, %v7186_v14  ;;  %2616 = vadd.xlane.f32.xlu1 %v2615_v52  ;;  %v2612_v8 = vsel %vm817_vm0, %v2572_v27, 0.0  ;;  %v8121_v38 = vld [vmem:[#allocation16_spill] sm:$0xff] }
 0x5b5   : > { %2613 = vadd.xlane.f32.xlu0 %v2612_v8  ;;  %v2575_v51 = vmul.f32 %v7188_v48, %v2553_v33 }
 0x5b6   : > { %v5176_v62 = vpop.f32.mrb[106].mxu0  ;;  %v2574_v35 = vmul.f32 %v7188_v48, %v2548_v2  ;;  %v5939_v2 = vld [vmem:[%s6334_s15 + $0x8] sm:$0xff] }
 0x5b7   : > { %v3203_v55 = vpop.f32.mrb[107].mxu0  ;;  %v2621_v30 = vsel %vm817_vm0, %v2575_v51, 0.0 }
 0x5b8   : > { %v5495_v11 = vpack.c.bf16 %v5176_v62, %v3203_v55  ;;  %2622 = vadd.xlane.f32.xlu1 %v2621_v30  ;;  %v2618_v5 = vsel %vm817_vm0, %v2574_v35, 0.0  ;;  %v8122_v55 = vld [vmem:[#allocation22_spill] sm:$0xff] }
 0x5b9   : > { %2619 = vadd.xlane.f32.xlu0 %v2618_v5 }
 0x5ba   : > { %v5179_v28 = vpop.f32.mrb[108].mxu0  ;;  %5496 = vmatpush1.bf16.msra.mxu0 %v5495_v11  ;;  %v8123_v11 = vld [vmem:[#allocation21_spill] sm:$0xff] }
 0x5bb   : > { %v3213_v14 = vpop.f32.mrb[109].mxu0  ;;  %5497 = vmatprep.subr.bf16.mxu0 %v8104_v16 }
 0x5bc   : > { %v5498_v25 = vpack.c.bf16 %v5179_v28, %v3213_v14  ;;  %v8124_v28 = vld [vmem:[#allocation20_spill] sm:$0xff] }
 0x5be   : > { %v5182_v9 = vpop.f32.mrb[110].mxu0  ;;  %5499 = vmatpush1.bf16.msra.mxu0 %v5498_v25  ;;  %v8125_v25 = vld [vmem:[#allocation19_spill] sm:$0xff] }
 0x5bf   : > { %v3223_v44 = vpop.f32.mrb[111].mxu0  ;;  %5500 = vmatprep.subr.bf16.mxu0 %v8104_v16 }
 0x5c0   : > { %v5501_v48 = vpack.c.bf16 %v5182_v9, %v3223_v44 }
 0x5c2   : > { %v5185_v37 = vpop.f32.mrb[112].mxu0  ;;  %5502 = vmatpush1.bf16.msra.mxu0 %v5501_v48 }
 0x5c3   : > { %v3233_v13 = vpop.f32.mrb[113].mxu0  ;;  %5503 = vmatprep.subr.bf16.mxu0 %v8104_v16 }
 0x5c4   : > { %v5504_v56 = vpack.c.bf16 %v5185_v37, %v3233_v13  ;;  %v8126_v13 = vld [vmem:[#allocation26_spill] sm:$0xff] }
 0x5c6   : > { %v5188_v61 = vpop.f32.mrb[114].mxu0  ;;  %5505 = vmatpush1.bf16.msra.mxu0 %v5504_v56 }
 0x5c7   : > { %v3243_v21 = vpop.f32.mrb[115].mxu0  ;;  %5506 = vmatprep.subr.bf16.mxu0 %v8104_v16 }
 0x5c8   : > { %v5507_v41 = vpack.c.bf16 %v5188_v61, %v3243_v21  ;;  %v8127_v61 = vld [vmem:[#allocation25_spill] sm:$0xff] }
 0x5ca   : > { %v5191_v10 = vpop.f32.mrb[116].mxu0  ;;  %5508 = vmatpush1.bf16.msra.mxu0 %v5507_v41 }
 0x5cb   : > { %v3253_v15 = vpop.f32.mrb[117].mxu0  ;;  %5509 = vmatprep.subr.bf16.mxu0 %v8104_v16 }
 0x5cc   : > { %v5510_v19 = vpack.c.bf16 %v5191_v10, %v3253_v15  ;;  %v8128_v10 = vld [vmem:[#allocation24_spill] sm:$0xff] }
 0x5ce   : > { %v5194_v18 = vpop.f32.mrb[118].mxu0  ;;  %5511 = vmatpush1.bf16.msra.mxu0 %v5510_v19  ;;  %v8129_v19 = vld [vmem:[#allocation23_spill] sm:$0xff] }
 0x5cf   : > { %v3263_v29 = vpop.f32.mrb[119].mxu0  ;;  %5512 = vmatprep.subr.bf16.mxu0 %v8104_v16 }
 0x5d0   : > { %v5513_v57 = vpack.c.bf16 %v5194_v18, %v3263_v29 }
 0x5d2   : > { %v5197_v1 = vpop.f32.mrb[120].mxu0  ;;  %5514 = vmatpush1.bf16.msra.mxu0 %v5513_v57 }
 0x5d3   : > { %v3273_v36 = vpop.f32.mrb[121].mxu0  ;;  %5515 = vmatprep.subr.bf16.mxu0 %v8104_v16 }
 0x5d4   : > { %v5516_v53 = vpack.c.bf16 %v5197_v1, %v3273_v36  ;;  %v8130_v36 = vld [vmem:[#allocation30_spill] sm:$0xff] }
 0x5d6   : > { %v5200_v60 = vpop.f32.mrb[122].mxu0  ;;  %5517 = vmatpush1.bf16.msra.mxu0 %v5516_v53 }
 0x5d7   : > { %v3283_v23 = vpop.f32.mrb[123].mxu0  ;;  %5518 = vmatprep.subr.bf16.mxu0 %v8104_v16 }
 0x5d8   : > { %v5519_v58 = vpack.c.bf16 %v5200_v60, %v3283_v23  ;;  %v8131_v60 = vld [vmem:[#allocation29_spill] sm:$0xff] }
 0x5da   : > { %v5203_v40 = vpop.f32.mrb[124].mxu0  ;;  %5520 = vmatpush1.bf16.msra.mxu0 %v5519_v58 }
 0x5db   : > { %v3293_v34 = vpop.f32.mrb[125].mxu0  ;;  %5521 = vmatprep.subr.bf16.mxu0 %v8104_v16 }
 0x5dc   : > { %v5522_v50 = vpack.c.bf16 %v5203_v40, %v3293_v34  ;;  %v8132_v40 = vld [vmem:[#allocation28_spill] sm:$0xff] }
 0x5de   : > { %v5206_v20 = vpop.f32.mrb[126].mxu0  ;;  %5523 = vmatpush1.bf16.msra.mxu0 %v5522_v50  ;;  %v8133_v50 = vld [vmem:[#allocation27_spill] sm:$0xff] }
 0x5df   : > { %v3303_v26 = vpop.f32.mrb[127].mxu0  ;;  %5524 = vmatprep.subr.bf16.mxu0 %v8104_v16 }
 0x5e0   : > { %v5525_v4 = vpack.c.bf16 %v5206_v20, %v3303_v26 }
 0x5e2   : > { %v5209_v42 = vpop.f32.mrb[128].mxu0  ;;  %5526 = vmatpush1.bf16.msra.mxu0 %v5525_v4 }
 0x5e3   : > { %v3313_v47 = vpop.f32.mrb[129].mxu0  ;;  %5527 = vmatprep.subr.bf16.mxu0 %v8104_v16 }
 0x5e4   : > { %v5528_v63 = vpack.c.bf16 %v5209_v42, %v3313_v47  ;;  %v8134_v47 = vld [vmem:[#allocation34_spill] sm:$0xff] }
 0x5e6   : > { %v5212_v31 = vpop.f32.mrb[130].mxu0  ;;  %5529 = vmatpush1.bf16.msra.mxu0 %v5528_v63 }
 0x5e7   : > { %v3323_v43 = vpop.f32.mrb[131].mxu0  ;;  %5530 = vmatprep.subr.bf16.mxu0 %v8104_v16 }
 0x5e8   : > { %v5531_v24 = vpack.c.bf16 %v5212_v31, %v3323_v43  ;;  %v8135_v31 = vld [vmem:[#allocation33_spill] sm:$0xff] }
 0x5ea   : > { %v5215_v32 = vpop.f32.mrb[132].mxu0  ;;  %5532 = vmatpush1.bf16.msra.mxu0 %v5531_v24 }
 0x5eb   : > { %v3333_v39 = vpop.f32.mrb[133].mxu0  ;;  %5533 = vmatprep.subr.bf16.mxu0 %v8104_v16 }
 0x5ec   : > { %v5534_v3 = vpack.c.bf16 %v5215_v32, %v3333_v39  ;;  %v8136_v32 = vld [vmem:[#allocation32_spill] sm:$0xff] }
 0x5ee   : > { %v5218_v6 = vpop.f32.mrb[134].mxu0  ;;  %5535 = vmatpush1.bf16.msra.mxu0 %v5534_v3  ;;  %v8137_v3 = vld [vmem:[#allocation31_spill] sm:$0xff] }
 0x5ef   : > { %v3343_v45 = vpop.f32.mrb[135].mxu0  ;;  %5536 = vmatprep.subr.bf16.mxu0 %v8104_v16 }
 0x5f0   : > { %v5537_v49 = vpack.c.bf16 %v5218_v6, %v3343_v45 }
 0x5f2   : > { %v5221_v54 = vpop.f32.mrb[136].mxu0  ;;  %5538 = vmatpush1.bf16.msra.mxu0 %v5537_v49 }
 0x5f3   : > { %v3353_v59 = vpop.f32.mrb[137].mxu0  ;;  %5539 = vmatprep.subr.bf16.mxu0 %v8104_v16 }
 0x5f4   : > { %v5540_v0 = vpack.c.bf16 %v5221_v54, %v3353_v59  ;;  %v8138_v59 = vld [vmem:[#allocation38_spill] sm:$0xff] }
 0x5f6   : > { %5541 = vmatpush1.bf16.msra.mxu0 %v5540_v0 }
 0x629   : > { %v2581_v7 = vpop.xlane.xlu1 %2580 }
 0x62a   : > { %v2626_v17 = vmul.f32 %v8119_v12, %v2581_v7  ;;  %v2627_v27 = vmul.f32 %v8120_v22, %v2581_v7  ;;  %v2578_v33 = vpop.xlane.xlu0 %2577  ;;  %v8139_v7 = vld [vmem:[#allocation37_spill] sm:$0xff]  ;;  %v8140_v22 = vld [vmem:[#allocation36_spill] sm:$0xff] }
 0x62b   : > { %v2624_v52 = vmul.f32 %v8121_v38, %v2578_v33  ;;  %v2625_v8 = vmul.f32 %v5939_v2, %v2578_v33  ;;  %v8141_v33 = vld [vmem:[#allocation35_spill] sm:$0xff] }
 0x62d   : > { %v5454_v51 = vpack.c.bf16 %v2627_v27, %v2625_v8  ;;  %v5456_v62 = vpack.c.bf16 %v2626_v17, %v2624_v52  ;;  %v2587_v35 = vpop.xlane.xlu1 %2586 }
 0x62e   : > { %v2630_v30 = vmul.f32 %v8122_v55, %v2587_v35  ;;  %v2631_v5 = vmul.f32 %v8123_v11, %v2587_v35  ;;  %v2584_v16 = vpop.xlane.xlu0 %2583  ;;  %v5941_v35 = vld [vmem:[%s6334_s15 + $0xd8] sm:$0xff]  ;;  %v8142_v11 = vld [vmem:[#allocation40_spill] sm:$0xff] }
 0x62f   : > { %v2628_v14 = vmul.f32 %v8124_v28, %v2584_v16  ;;  %v2629_v9 = vmul.f32 %v8125_v25, %v2584_v16  ;;  %5455 = vmatprep.subr.bf16.mxu1 %v5454_v51  ;;  %v5940_v51 = vld [vmem:[%s6334_s15 + $0xd0] sm:$0xff]  ;;  %v8143_v16 = vld [vmem:[#allocation39_spill] sm:$0xff] }
 0x630   : > { %5457 = vmatpush1.bf16.msra.mxu1 %v5456_v62 }
 0x631   : > { %v5458_v44 = vpack.c.bf16 %v2631_v5, %v2629_v9  ;;  %v5460_v48 = vpack.c.bf16 %v2630_v30, %v2628_v14  ;;  %v2593_v37 = vpop.xlane.xlu1 %2592 }
 0x632   : > { %v2634_v56 = vmul.f32 %v8126_v13, %v2593_v37  ;;  %v2635_v21 = vmul.f32 %v8127_v61, %v2593_v37  ;;  %v2590_v41 = vpop.xlane.xlu0 %2589  ;;  %v5943_v37 = vld [vmem:[%s6334_s15 + $0xf8] sm:$0xff]  ;;  %v5944_v61 = vld [vmem:[%s6334_s15 + $0xe0] sm:$0xff] }
 0x633   : > { %v2632_v15 = vmul.f32 %v8128_v10, %v2590_v41  ;;  %v2633_v18 = vmul.f32 %v8129_v19, %v2590_v41  ;;  %5459 = vmatprep.subr.bf16.mxu1 %v5458_v44  ;;  %v5942_v44 = vld [vmem:[%s6334_s15 + $0xf0] sm:$0xff]  ;;  %v5945_v41 = vld [vmem:[%s6334_s15 + $0xe8] sm:$0xff]  ;;  %s7898_s15 = scalar_lea.vmem %s8007_s9, %s6212_s27 }
 0x634   : > { %5461 = vmatpush1.bf16.msra.mxu1 %v5460_v48 }
 0x635   : > { %v5462_v29 = vpack.c.bf16 %v2635_v21, %v2633_v18  ;;  %v5464_v57 = vpack.c.bf16 %v2634_v56, %v2632_v15  ;;  %v2599_v1 = vpop.xlane.xlu1 %2598  ;;  %v5946_v18 = vld [vmem:[%s6375_s18] sm:$0xff] }
 0x636   : > { %v2638_v53 = vmul.f32 %v8130_v36, %v2599_v1  ;;  %v2639_v23 = vmul.f32 %v8131_v60, %v2599_v1  ;;  %v2596_v58 = vpop.xlane.xlu0 %2595  ;;  %v5948_v1 = vld [vmem:[%s6375_s18 + $0x10] sm:$0xff]  ;;  %v5949_v36 = vld [vmem:[%s6375_s18 + $0x18] sm:$0xff]  ;;  %v5951_v60 = vld [vmem:[%s6375_s18 + $0x28] sm:$0xff] }
 0x637   : > { %v2636_v34 = vmul.f32 %v8132_v40, %v2596_v58  ;;  %v2637_v20 = vmul.f32 %v8133_v50, %v2596_v58  ;;  %5463 = vmatprep.subr.bf16.mxu1 %v5462_v29  ;;  %v8144_v29 = vmov 0.0   ;;  %v5953_v58 = vld [vmem:[%s6375_s18 + $0x38] sm:$0xff]  ;;  %v5954_v40 = vld [vmem:[%s6375_s18 + $0x40] sm:$0xff]  ;;  %v5956_v50 = vld [vmem:[%s6375_s18 + $0x50] sm:$0xff] }
 0x638   : > { %5465 = vmatpush1.bf16.msra.mxu1 %v5464_v57  ;;  %v5947_v57 = vld [vmem:[%s6375_s18 + $0x8] sm:$0xff] }
 0x639   : > { %v5466_v26 = vpack.c.bf16 %v2639_v23, %v2637_v20  ;;  %v5468_v4 = vpack.c.bf16 %v2638_v53, %v2636_v34  ;;  %v2605_v42 = vpop.xlane.xlu1 %2604  ;;  %v5950_v53 = vld [vmem:[%s6375_s18 + $0x20] sm:$0xff]  ;;  %v5952_v23 = vld [vmem:[%s6375_s18 + $0x30] sm:$0xff]  ;;  %v5955_v34 = vld [vmem:[%s6375_s18 + $0x48] sm:$0xff] }
 0x63a   : > { %v2642_v63 = vmul.f32 %v8134_v47, %v2605_v42  ;;  %v2643_v43 = vmul.f32 %v8135_v31, %v2605_v42  ;;  %v2602_v24 = vpop.xlane.xlu0 %2601  ;;  %v5957_v20 = vld [vmem:[%s6375_s18 + $0x58] sm:$0xff]  ;;  %v5960_v42 = vld [vmem:[%s6375_s18 + $0x70] sm:$0xff]  ;;  %v5963_v31 = vld [vmem:[%s6375_s18 + $0x88] sm:$0xff] }
 0x63b   : > { %v2640_v39 = vmul.f32 %v8136_v32, %v2602_v24  ;;  %v2641_v6 = vmul.f32 %v8137_v3, %v2602_v24  ;;  %5467 = vmatprep.subr.bf16.mxu1 %v5466_v26  ;;  %v5958_v26 = vld [vmem:[%s6375_s18 + $0x60] sm:$0xff]  ;;  %v5961_v47 = vld [vmem:[%s6375_s18 + $0x78] sm:$0xff]  ;;  %v5968_v3 = vld [vmem:[%s6375_s18 + $0xb0] sm:$0xff] }
 0x63c   : > { %5469 = vmatpush1.bf16.msra.mxu1 %v5468_v4  ;;  %v5959_v4 = vld [vmem:[%s6375_s18 + $0x68] sm:$0xff]  ;;  %v5965_v24 = vld [vmem:[%s6375_s18 + $0x98] sm:$0xff]  ;;  %v5966_v32 = vld [vmem:[%s6375_s18 + $0xa0] sm:$0xff] }
 0x63d   : > { %v5470_v45 = vpack.c.bf16 %v2643_v43, %v2641_v6  ;;  %v5472_v49 = vpack.c.bf16 %v2642_v63, %v2640_v39  ;;  %v2611_v54 = vpop.xlane.xlu1 %2610  ;;  %v5962_v63 = vld [vmem:[%s6375_s18 + $0x80] sm:$0xff]  ;;  %v5964_v43 = vld [vmem:[%s6375_s18 + $0x90] sm:$0xff]  ;;  %v5967_v39 = vld [vmem:[%s6375_s18 + $0xa8] sm:$0xff] }
 0x63e   : > { %v2646_v0 = vmul.f32 %v8138_v59, %v2611_v54  ;;  %v2647_v12 = vmul.f32 %v8139_v7, %v2611_v54  ;;  %v2608_v17 = vpop.xlane.xlu0 %2607  ;;  %v5969_v6 = vld [vmem:[%s6375_s18 + $0xb8] sm:$0xff]  ;;  %v5972_v54 = vld [vmem:[%s6375_s18 + $0xd0] sm:$0xff]  ;;  %v5975_v7 = vld [vmem:[%s6375_s18 + $0xe8] sm:$0xff] }
 0x63f   : > { %v2644_v27 = vmul.f32 %v8140_v22, %v2608_v17  ;;  %v2645_v38 = vmul.f32 %v8141_v33, %v2608_v17  ;;  %5471 = vmatprep.subr.bf16.mxu1 %v5470_v45  ;;  %v5970_v45 = vld [vmem:[%s6375_s18 + $0xc0] sm:$0xff]  ;;  %v5973_v59 = vld [vmem:[%s6375_s18 + $0xd8] sm:$0xff] }
 0x640   : > { %5473 = vmatpush1.bf16.msra.mxu1 %v5472_v49  ;;  %v5971_v49 = vld [vmem:[%s6375_s18 + $0xc8] sm:$0xff]  ;;  %v5977_v17 = vld [vmem:[%s6375_s18 + $0xf8] sm:$0xff] }
 0x641   : > { %v5474_v52 = vpack.c.bf16 %v2647_v12, %v2645_v38  ;;  %v5476_v2 = vpack.c.bf16 %v2646_v0, %v2644_v27  ;;  %v2617_v8 = vpop.xlane.xlu1 %2616  ;;  %v5974_v0 = vld [vmem:[%s6375_s18 + $0xe0] sm:$0xff]  ;;  %v5976_v12 = vld [vmem:[%s6375_s18 + $0xf0] sm:$0xff] }
 0x642   : > { %v2650_v62 = vmul.f32 %v5940_v51, %v2617_v8  ;;  %v2651_v55 = vmul.f32 %v5941_v35, %v2617_v8  ;;  %v2614_v30 = vpop.xlane.xlu0 %2613  ;;  %v5978_v27 = vld [vmem:[%s6461_s22] sm:$0xff]  ;;  %v780_v8 = vld [vmem:[%s8006_s8 + $0x48] sm:$0xff]  ;;  %v781_v51 = vld [vmem:[%s8006_s8 + $0x50] sm:$0xff] }
 0x643   : > { %v2648_v5 = vmul.f32 %v8142_v11, %v2614_v30  ;;  %v2649_v28 = vmul.f32 %v8143_v16, %v2614_v30  ;;  %5475 = vmatprep.subr.bf16.mxu1 %v5474_v52  ;;  %v5979_v52 = vld [vmem:[%s6461_s22 + $0x8] sm:$0xff]  ;;  %v5542_v11 = vpack.c.bf16 %v781_v51, %v780_v8  ;;  %v5981_v16 = vld [vmem:[%s6466_s28] sm:$0xff]  ;;  %v5998_v8 = vld [vmem:[%s6461_s22 + $0x50] sm:$0xff] }
 0x644   : > { %5477 = vmatpush1.bf16.msra.mxu1 %v5476_v2  ;;  %v5980_v35 = vld [vmem:[%s6466_s28 + $0x8] sm:$0xff] }
 0x645   : > { %v5478_v14 = vpack.c.bf16 %v2651_v55, %v2649_v28  ;;  %v5480_v25 = vpack.c.bf16 %v2650_v62, %v2648_v5  ;;  %v2623_v9 = vpop.xlane.xlu1 %2622  ;;  %v782_v62 = vld [vmem:[%s8006_s8 + $0x58] sm:$0xff]  ;;  %v783_v5 = vld [vmem:[%s8006_s8 + $0x60] sm:$0xff] }
 0x646   : > { %v2654_v48 = vmul.f32 %v5942_v44, %v2623_v9  ;;  %v2655_v13 = vmul.f32 %v5943_v37, %v2623_v9  ;;  %v2620_v56 = vpop.xlane.xlu0 %2619  ;;  %v5546_v44 = vpack.c.bf16 %v783_v5, %v782_v62  ;;  %v785_v37 = vld [vmem:[%s8006_s8 + $0x70] sm:$0xff]  ;;  %v6000_v5 = vld [vmem:[%s6466_s28 + $0x58] sm:$0xff] }
 0x647   : > { %v2652_v21 = vmul.f32 %v5944_v61, %v2620_v56  ;;  %v2653_v10 = vmul.f32 %v5945_v41, %v2620_v56  ;;  %5479 = vmatprep.subr.bf16.mxu1 %v5478_v14  ;;  %v5982_v14 = vld [vmem:[%s6461_s22 + $0x10] sm:$0xff]  ;;  %v5984_v61 = vld [vmem:[%s6466_s28 + $0x18] sm:$0xff] }
 0x648   : > { %5481 = vmatpush1.bf16.msra.mxu1 %v5480_v25 }
 0x649   : > { %v5482_v15 = vpack.c.bf16 %v2655_v13, %v2653_v10  ;;  %v5484_v19 = vpack.c.bf16 %v2654_v48, %v2652_v21  ;;  %v784_v48 = vld [vmem:[%s8006_s8 + $0x68] sm:$0xff]  ;;  %v5983_v13 = vld [vmem:[%s6461_s22 + $0x18] sm:$0xff] }
 0x64a   : > { %v5550_v10 = vpack.c.bf16 %v785_v37, %v784_v48 }
 0x64b   : > { %5483 = vmatprep.subr.bf16.mxu1 %v5482_v15  ;;  %v5985_v15 = vld [vmem:[%s6466_s28 + $0x10] sm:$0xff] }
 0x64c   : > { %5485 = vmatpush1.bf16.msra.mxu1 %v5484_v19 }
 0x64d   : > { %5543 = vmatprep.subr.bf16.mxu1 %v5542_v11 }
 0x64f   : > { %2721 = vmatmul.mubr.f32.vlgmr.msra.gmra.mrb[118].mxu1 %v5946_v18  ;;  %v5986_v18 = vld [vmem:[%s6461_s22 + $0x20] sm:$0xff] }
 0x650   : > { %2726 = vmatprep.mubr.f32.mxu1 %v8144_v29  ;;  %5545 = vmatpush3.bf16.msra.mxu1 %v5542_v11 }
 0x651   : > { %5547 = vmatprep.subr.bf16.mxu1 %v5546_v44 }
 0x653   : > { %2727 = vmatmul.mubr.f32.gmra.mrb[120].mxu1 %v5947_v57 }
 0x654   : > { %2732 = vmatprep.mubr.f32.mxu1 %v8144_v29  ;;  %5549 = vmatpush3.bf16.msra.mxu1 %v5546_v44  ;;  %v6002_v44 = vld [vmem:[%s6461_s22 + $0x60] sm:$0xff] }
 0x655   : > { %5551 = vmatprep.subr.bf16.mxu1 %v5550_v10 }
 0x657   : > { %2733 = vmatmul.mubr.f32.gmra.mrb[122].mxu1 %v5948_v1  ;;  %v786_v1 = vld [vmem:[%s8006_s8 + $0x78] sm:$0xff] }
 0x658   : > { %2738 = vmatprep.mubr.f32.mxu1 %v8144_v29  ;;  %5553 = vmatpush3.bf16.msra.mxu1 %v5550_v10  ;;  %v6005_v10 = vld [vmem:[%s6466_s28 + $0x60] sm:$0xff] }
 0x65b   : > { %2739 = vmatmul.mubr.f32.gmra.mrb[124].mxu1 %v5949_v36  ;;  %v787_v36 = vld [vmem:[%s8006_s8 + $0x80] sm:$0xff] }
 0x65c   : > { %2744 = vmatprep.mubr.f32.mxu1 %v8144_v29 }
 0x65f   : > { %2745 = vmatmul.mubr.f32.gmra.mrb[126].mxu1 %v5950_v53  ;;  %v5987_v53 = vld [vmem:[%s6461_s22 + $0x28] sm:$0xff] }
 0x660   : > { %2750 = vmatprep.mubr.f32.mxu1 %v8144_v29 }
 0x663   : > { %2751 = vmatmul.mubr.f32.gmra.mrb[128].mxu1 %v5951_v60 }
 0x664   : > { %2756 = vmatprep.mubr.f32.mxu1 %v8144_v29 }
 0x667   : > { %2757 = vmatmul.mubr.f32.gmra.mrb[130].mxu1 %v5952_v23  ;;  %v5988_v23 = vld [vmem:[%s6466_s28 + $0x28] sm:$0xff] }
 0x668   : > { %2762 = vmatprep.mubr.f32.mxu1 %v8144_v29 }
 0x66b   : > { %2763 = vmatmul.mubr.f32.gmra.mrb[132].mxu1 %v5953_v58 }
 0x66c   : > { %2768 = vmatprep.mubr.f32.mxu1 %v8144_v29 }
 0x66f   : > { %2769 = vmatmul.mubr.f32.gmra.mrb[134].mxu1 %v5954_v40 }
 0x670   : > { %2774 = vmatprep.mubr.f32.mxu1 %v8144_v29 }
 0x673   : > { %2775 = vmatmul.mubr.f32.gmra.mrb[136].mxu1 %v5955_v34  ;;  %v5554_v34 = vpack.c.bf16 %v787_v36, %v786_v1  ;;  %v6008_v36 = vld [vmem:[%s6466_s28 + $0x78] sm:$0xff] }
 0x674   : > { %2780 = vmatprep.mubr.f32.mxu1 %v8144_v29 }
 0x675   : > { %5555 = vmatprep.subr.bf16.mxu1 %v5554_v34 }
 0x676   : > { %5557 = vmatpush3.bf16.msra.mxu1 %v5554_v34 }
 0x677   : > { %2781 = vmatmul.mubr.f32.gmra.mrb[138].mxu1 %v5956_v50  ;;  %v5989_v50 = vld [vmem:[%s6466_s28 + $0x20] sm:$0xff] }
 0x678   : > { %2786 = vmatprep.mubr.f32.mxu1 %v8144_v29 }
 0x67b   : > { %2787 = vmatmul.mubr.f32.gmra.mrb[140].mxu1 %v5957_v20 }
 0x67c   : > { %2792 = vmatprep.mubr.f32.mxu1 %v8144_v29 }
 0x67f   : > { %2793 = vmatmul.mubr.f32.gmra.mrb[142].mxu1 %v5958_v26  ;;  %v5990_v26 = vld [vmem:[%s6461_s22 + $0x30] sm:$0xff] }
 0x680   : > { %2798 = vmatprep.mubr.f32.mxu1 %v8144_v29 }
 0x683   : > { %2799 = vmatmul.mubr.f32.gmra.mrb[144].mxu1 %v5959_v4 }
 0x684   : > { %2804 = vmatprep.mubr.f32.mxu1 %v8144_v29 }
 0x687   : > { %2805 = vmatmul.mubr.f32.gmra.mrb[146].mxu1 %v5960_v42 }
 0x688   : > { %2810 = vmatprep.mubr.f32.mxu1 %v8144_v29 }
 0x68b   : > { %2811 = vmatmul.mubr.f32.gmra.mrb[148].mxu1 %v5961_v47  ;;  %v788_v47 = vld [vmem:[%s8006_s8 + $0x88] sm:$0xff] }
 0x68c   : > { %2816 = vmatprep.mubr.f32.mxu1 %v8144_v29 }
 0x68f   : > { %2817 = vmatmul.mubr.f32.gmra.mrb[150].mxu1 %v5962_v63  ;;  %v789_v63 = vld [vmem:[%s8006_s8 + $0x90] sm:$0xff] }
 0x690   : > { %2822 = vmatprep.mubr.f32.mxu1 %v8144_v29 }
 0x693   : > { %2823 = vmatmul.mubr.f32.gmra.mrb[152].mxu1 %v5963_v31  ;;  %v5991_v31 = vld [vmem:[%s6461_s22 + $0x38] sm:$0xff] }
 0x694   : > { %2828 = vmatprep.mubr.f32.mxu1 %v8144_v29 }
 0x697   : > { %2829 = vmatmul.mubr.f32.gmra.mrb[154].mxu1 %v5964_v43 }
 0x698   : > { %2834 = vmatprep.mubr.f32.mxu1 %v8144_v29 }
 0x69b   : > { %2835 = vmatmul.mubr.f32.gmra.mrb[156].mxu1 %v5965_v24  ;;  %v5992_v24 = vld [vmem:[%s6466_s28 + $0x38] sm:$0xff] }
 0x69c   : > { %2840 = vmatprep.mubr.f32.mxu1 %v8144_v29 }
 0x69f   : > { %2841 = vmatmul.mubr.f32.gmra.mrb[158].mxu1 %v5966_v32 }
 0x6a0   : > { %2846 = vmatprep.mubr.f32.mxu1 %v8144_v29 }
 0x6a3   : > { %2847 = vmatmul.mubr.f32.gmra.mrb[160].mxu1 %v5967_v39 }
 0x6a4   : > { %2852 = vmatprep.mubr.f32.mxu1 %v8144_v29 }
 0x6a7   : > { %2853 = vmatmul.mubr.f32.gmra.mrb[162].mxu1 %v5968_v3  ;;  %v5558_v3 = vpack.c.bf16 %v789_v63, %v788_v47  ;;  %v6013_v63 = vld [vmem:[%s6466_s28 + $0x80] sm:$0xff] }
 0x6a8   : > { %2858 = vmatprep.mubr.f32.mxu1 %v8144_v29 }
 0x6a9   : > { %5559 = vmatprep.subr.bf16.mxu1 %v5558_v3 }
 0x6aa   : > { %5561 = vmatpush3.bf16.msra.mxu1 %v5558_v3 }
 0x6ab   : > { %2859 = vmatmul.mubr.f32.gmra.mrb[164].mxu1 %v5969_v6  ;;  %v5993_v6 = vld [vmem:[%s6466_s28 + $0x30] sm:$0xff] }
 0x6ac   : > { %2864 = vmatprep.mubr.f32.mxu1 %v8144_v29 }
 0x6af   : > { %2865 = vmatmul.mubr.f32.gmra.mrb[166].mxu1 %v5970_v45 }
 0x6b0   : > { %2870 = vmatprep.mubr.f32.mxu1 %v8144_v29 }
 0x6b3   : > { %2871 = vmatmul.mubr.f32.gmra.mrb[168].mxu1 %v5971_v49  ;;  %v5994_v49 = vld [vmem:[%s6461_s22 + $0x40] sm:$0xff] }
 0x6b4   : > { %2876 = vmatprep.mubr.f32.mxu1 %v8144_v29 }
 0x6b7   : > { %2877 = vmatmul.mubr.f32.gmra.mrb[170].mxu1 %v5972_v54 }
 0x6b8   : > { %2882 = vmatprep.mubr.f32.mxu1 %v8144_v29 }
 0x6bb   : > { %2883 = vmatmul.mubr.f32.gmra.mrb[172].mxu1 %v5973_v59 }
 0x6bc   : > { %2888 = vmatprep.mubr.f32.mxu1 %v8144_v29 }
 0x6bf   : > { %2889 = vmatmul.mubr.f32.gmra.mrb[174].mxu1 %v5974_v0  ;;  %v790_v0 = vld [vmem:[%s8006_s8 + $0x98] sm:$0xff] }
 0x6c0   : > { %2894 = vmatprep.mubr.f32.mxu1 %v8144_v29 }
 0x6c3   : > { %2895 = vmatmul.mubr.f32.gmra.mrb[176].mxu1 %v5975_v7  ;;  %v791_v7 = vld [vmem:[%s8006_s8 + $0xa0] sm:$0xff] }
 0x6c4   : > { %2900 = vmatprep.mubr.f32.mxu1 %v8144_v29 }
 0x6c7   : > { %2901 = vmatmul.mubr.f32.gmra.mrb[178].mxu1 %v5976_v12  ;;  %v5995_v12 = vld [vmem:[%s6461_s22 + $0x48] sm:$0xff] }
 0x6c8   : > { %2906 = vmatprep.mubr.f32.mxu1 %v8144_v29 }
 0x6cb   : > { %2907 = vmatmul.mubr.f32.gmra.mrb[180].mxu1 %v5977_v17 }
 0x722   : > { %v2722_v22 = vpop.f32.mrb[118].mxu1 }
 0x723   : > { %v2913_v33 = vmul.f32 %v5978_v27, %v2722_v22  ;;  %v2724_v38 = vpop.f32.mrb[119].mxu1  ;;  %v5996_v22 = vld [vmem:[%s6466_s28 + $0x48] sm:$0xff] }
 0x724   : > { %v2914_v2 = vmul.f32 %v5979_v52, %v2724_v38  ;;  %v5562_v38 = vpack.c.bf16 %v791_v7, %v790_v0  ;;  %v5997_v52 = vld [vmem:[%s6466_s28 + $0x40] sm:$0xff] }
 0x725   : > { %v2977_v28 = vadd.f32 %v5981_v16, %v2913_v33  ;;  %v6018_v0 = vld [vmem:[%s6461_s22 + $0xa0] sm:$0xff] }
 0x726   : > { %v2978_v55 = vadd.f32 %v5980_v35, %v2914_v2  ;;  %v2728_v30 = vpop.f32.mrb[120].mxu1  ;;  %v792_v35 = vld [vmem:[%s8006_s8 + $0xa8] sm:$0xff]  ;;  %5563 = vmatprep.subr.bf16.mxu1 %v5562_v38 }
 0x727   : > { %v2915_v25 = vmul.f32 %v5982_v14, %v2728_v30  ;;  %v2730_v9 = vpop.f32.mrb[121].mxu1  ;;  %v5999_v30 = vld [vmem:[%s6461_s22 + $0x58] sm:$0xff]  ;;  %5565 = vmatpush3.bf16.msra.mxu1 %v5562_v38 }
 0x728   : > { %v2916_v56 = vmul.f32 %v5983_v13, %v2730_v9  ;;  %3430 = vmatprep.mubr.f32.mxu0 %v2978_v55  ;;  %v793_v55 = vld [vmem:[%s8006_s8 + $0xb0] sm:$0xff]  ;;  %v6003_v13 = vld [vmem:[%s6461_s22 + $0x68] sm:$0xff] }
 0x729   : > { %3431 = vmatmul.mubr.f32.vlgmr.msra.gmra.mrb[138].mxu0 %v2977_v28  ;;  %v2979_v19 = vadd.f32 %v5985_v15, %v2915_v25  ;;  %v5566_v14 = vpack.c.bf16 %v793_v55, %v792_v35  ;;  %v6001_v25 = vld [vmem:[%s6466_s28 + $0x50] sm:$0xff]  ;;  %v6023_v35 = vld [vmem:[%s6461_s22 + $0xb8] sm:$0xff] }
 0x72a   : > { %v2980_v21 = vadd.f32 %v5984_v61, %v2916_v56  ;;  %v2734_v41 = vpop.f32.mrb[122].mxu1  ;;  %v6004_v61 = vld [vmem:[%s6466_s28 + $0x68] sm:$0xff] }
 0x72b   : > { %v2917_v29 = vmul.f32 %v5986_v18, %v2734_v41  ;;  %v2736_v57 = vpop.f32.mrb[123].mxu1  ;;  %5567 = vmatprep.subr.bf16.mxu1 %v5566_v14 }
 0x72c   : > { %v2918_v60 = vmul.f32 %v5987_v53, %v2736_v57  ;;  %3435 = vmatprep.mubr.f32.mxu0 %v2980_v21  ;;  %v6007_v57 = vld [vmem:[%s6461_s22 + $0x78] sm:$0xff]  ;;  %5569 = vmatpush3.bf16.msra.mxu1 %v5566_v14  ;;  %v6026_v14 = vld [vmem:[%s6461_s22 + $0xc0] sm:$0xff] }
 0x72d   : > { %3436 = vmatmul.mubr.f32.gmra.mrb[140].mxu0 %v2979_v19  ;;  %v2981_v20 = vadd.f32 %v5989_v50, %v2917_v29  ;;  %v6006_v19 = vld [vmem:[%s6461_s22 + $0x70] sm:$0xff] }
 0x72e   : > { %v2982_v58 = vadd.f32 %v5988_v23, %v2918_v60  ;;  %v2740_v40 = vpop.f32.mrb[124].mxu1  ;;  %v6009_v23 = vld [vmem:[%s6466_s28 + $0x70] sm:$0xff] }
 0x72f   : > { %v2919_v4 = vmul.f32 %v5990_v26, %v2740_v40  ;;  %v2742_v42 = vpop.f32.mrb[125].mxu1  ;;  %v6010_v40 = vld [vmem:[%s6461_s22 + $0x80] sm:$0xff] }
 0x730   : > { %v2920_v43 = vmul.f32 %v5991_v31, %v2742_v42  ;;  %3440 = vmatprep.mubr.f32.mxu0 %v2982_v58 }
 0x731   : > { %3441 = vmatmul.mubr.f32.gmra.mrb[142].mxu0 %v2981_v20  ;;  %v2983_v45 = vadd.f32 %v5993_v6, %v2919_v4  ;;  %v6011_v20 = vld [vmem:[%s6461_s22 + $0x88] sm:$0xff]  ;;  %v6016_v6 = vld [vmem:[%s6466_s28 + $0x98] sm:$0xff] }
 0x732   : > { %v2984_v32 = vadd.f32 %v5992_v24, %v2920_v43  ;;  %v2746_v39 = vpop.f32.mrb[126].mxu1  ;;  %v6012_v4 = vld [vmem:[%s6466_s28 + $0x88] sm:$0xff]  ;;  %v6014_v43 = vld [vmem:[%s6461_s22 + $0x90] sm:$0xff] }
 0x733   : > { %v2921_v54 = vmul.f32 %v5994_v49, %v2746_v39  ;;  %v2748_v59 = vpop.f32.mrb[127].mxu1  ;;  %v6015_v39 = vld [vmem:[%s6461_s22 + $0x98] sm:$0xff] }
 0x734   : > { %v2922_v17 = vmul.f32 %v5995_v12, %v2748_v59  ;;  %3445 = vmatprep.mubr.f32.mxu0 %v2984_v32 }
 0x735   : > { %3446 = vmatmul.mubr.f32.gmra.mrb[144].mxu0 %v2983_v45  ;;  %v2985_v2 = vadd.f32 %v5997_v52, %v2921_v54  ;;  %v6017_v54 = vld [vmem:[%s6466_s28 + $0x90] sm:$0xff]  ;;  %v6021_v52 = vld [vmem:[%s6466_s28 + $0xa0] sm:$0xff] }
 0x736   : > { %v2986_v27 = vadd.f32 %v5996_v22, %v2922_v17  ;;  %v2752_v33 = vpop.f32.mrb[128].mxu1  ;;  %v6019_v17 = vld [vmem:[%s6461_s22 + $0xa8] sm:$0xff] }
 0x737   : > { %v2923_v51 = vmul.f32 %v5998_v8, %v2752_v33  ;;  %v2754_v62 = vpop.f32.mrb[129].mxu1  ;;  %v6022_v8 = vld [vmem:[%s6461_s22 + $0xb0] sm:$0xff] }
 0x738   : > { %v2924_v11 = vmul.f32 %v5999_v30, %v2754_v62  ;;  %3450 = vmatprep.mubr.f32.mxu0 %v2986_v27  ;;  %v6020_v27 = vld [vmem:[%s6466_s28 + $0xa8] sm:$0xff]  ;;  %v6024_v30 = vld [vmem:[%s6466_s28 + $0xb8] sm:$0xff] }
 0x739   : > { %3451 = vmatmul.mubr.f32.gmra.mrb[146].mxu0 %v2985_v2  ;;  %v2987_v9 = vadd.f32 %v6001_v25, %v2923_v51 }
 0x73a   : > { %v2988_v16 = vadd.f32 %v6000_v5, %v2924_v11  ;;  %v2758_v28 = vpop.f32.mrb[130].mxu1 }
 0x73b   : > { %v2925_v48 = vmul.f32 %v6002_v44, %v2758_v28  ;;  %v2760_v37 = vpop.f32.mrb[131].mxu1  ;;  %v6027_v44 = vld [vmem:[%s6461_s22 + $0xc8] sm:$0xff] }
 0x73c   : > { %v2926_v56 = vmul.f32 %v6003_v13, %v2760_v37  ;;  %3455 = vmatprep.mubr.f32.mxu0 %v2988_v16  ;;  %v6025_v16 = vld [vmem:[%s6466_s28 + $0xb0] sm:$0xff]  ;;  %v6028_v37 = vld [vmem:[%s6466_s28 + $0xc8] sm:$0xff] }
 0x73d   : > { %3456 = vmatmul.mubr.f32.gmra.mrb[148].mxu0 %v2987_v9  ;;  %v2989_v15 = vadd.f32 %v6005_v10, %v2925_v48 }
 0x73e   : > { %v2990_v21 = vadd.f32 %v6004_v61, %v2926_v56  ;;  %v2764_v41 = vpop.f32.mrb[132].mxu1  ;;  %v6029_v61 = vld [vmem:[%s6466_s28 + $0xc0] sm:$0xff] }
 0x73f   : > { %v2927_v18 = vmul.f32 %v6006_v19, %v2764_v41  ;;  %v2766_v29 = vpop.f32.mrb[133].mxu1  ;;  %v6030_v41 = vld [vmem:[%s6461_s22 + $0xd0] sm:$0xff]  ;;  %v6031_v19 = vld [vmem:[%s6461_s22 + $0xd8] sm:$0xff] }
 0x740   : > { %v2928_v1 = vmul.f32 %v6007_v57, %v2766_v29  ;;  %3460 = vmatprep.mubr.f32.mxu0 %v2990_v21  ;;  %v6032_v29 = vld [vmem:[%s6466_s28 + $0xd8] sm:$0xff] }
 0x741   : > { %3461 = vmatmul.mubr.f32.gmra.mrb[150].mxu0 %v2989_v15  ;;  %v2991_v58 = vadd.f32 %v6009_v23, %v2927_v18 }
 0x742   : > { %v2992_v53 = vadd.f32 %v6008_v36, %v2928_v1  ;;  %v2770_v60 = vpop.f32.mrb[134].mxu1  ;;  %v6033_v36 = vld [vmem:[%s6466_s28 + $0xd0] sm:$0xff] }
 0x743   : > { %v2929_v34 = vmul.f32 %v6010_v40, %v2770_v60  ;;  %v2772_v50 = vpop.f32.mrb[135].mxu1  ;;  %v6034_v60 = vld [vmem:[%s6461_s22 + $0xe0] sm:$0xff]  ;;  %v6035_v40 = vld [vmem:[%s6461_s22 + $0xe8] sm:$0xff] }
 0x744   : > { %v2930_v26 = vmul.f32 %v6011_v20, %v2772_v50  ;;  %3465 = vmatprep.mubr.f32.mxu0 %v2992_v53  ;;  %v6036_v50 = vld [vmem:[%s6466_s28 + $0xe8] sm:$0xff] }
 0x745   : > { %3466 = vmatmul.mubr.f32.gmra.mrb[152].mxu0 %v2991_v58  ;;  %v2993_v31 = vadd.f32 %v6013_v63, %v2929_v34 }
 0x746   : > { %v2994_v42 = vadd.f32 %v6012_v4, %v2930_v26  ;;  %v2776_v47 = vpop.f32.mrb[136].mxu1  ;;  %v6037_v4 = vld [vmem:[%s6466_s28 + $0xe0] sm:$0xff] }
 0x747   : > { %v2931_v24 = vmul.f32 %v6014_v43, %v2776_v47  ;;  %v2778_v32 = vpop.f32.mrb[137].mxu1  ;;  %v6038_v47 = vld [vmem:[%s6461_s22 + $0xf0] sm:$0xff]  ;;  %v6039_v43 = vld [vmem:[%s6461_s22 + $0xf8] sm:$0xff] }
 0x748   : > { %v2932_v3 = vmul.f32 %v6015_v39, %v2778_v32  ;;  %3470 = vmatprep.mubr.f32.mxu0 %v2994_v42  ;;  %v6040_v32 = vld [vmem:[%s6466_s28 + $0xf8] sm:$0xff] }
 0x749   : > { %3471 = vmatmul.mubr.f32.gmra.mrb[154].mxu0 %v2993_v31  ;;  %v2995_v59 = vadd.f32 %v6017_v54, %v2931_v24 }
 0x74a   : > { %v2996_v45 = vadd.f32 %v6016_v6, %v2932_v3  ;;  %v2782_v49 = vpop.f32.mrb[138].mxu1  ;;  %v6041_v6 = vld [vmem:[%s6466_s28 + $0xf0] sm:$0xff] }
 0x74b   : > { %v2933_v7 = vmul.f32 %v6018_v0, %v2782_v49  ;;  %v2784_v12 = vpop.f32.mrb[139].mxu1  ;;  %v6042_v49 = vld [vmem:[%s6461_s22 + $0x100] sm:$0xff]  ;;  %v6043_v0 = vld [vmem:[%s6461_s22 + $0x108] sm:$0xff] }
 0x74c   : > { %v2934_v22 = vmul.f32 %v6019_v17, %v2784_v12  ;;  %3475 = vmatprep.mubr.f32.mxu0 %v2996_v45  ;;  %v6044_v12 = vld [vmem:[%s6466_s28 + $0x108] sm:$0xff] }
 0x74d   : > { %3476 = vmatmul.mubr.f32.gmra.mrb[156].mxu0 %v2995_v59  ;;  %v2997_v2 = vadd.f32 %v6021_v52, %v2933_v7 }
 0x74e   : > { %v2998_v33 = vadd.f32 %v6020_v27, %v2934_v22  ;;  %v2788_v38 = vpop.f32.mrb[140].mxu1  ;;  %v6045_v27 = vld [vmem:[%s6466_s28 + $0x100] sm:$0xff] }
 0x74f   : > { %v2935_v51 = vmul.f32 %v6022_v8, %v2788_v38  ;;  %v2790_v62 = vpop.f32.mrb[141].mxu1  ;;  %v6046_v38 = vld [vmem:[%s6461_s22 + $0x110] sm:$0xff]  ;;  %v6047_v8 = vld [vmem:[%s6461_s22 + $0x118] sm:$0xff] }
 0x750   : > { %v2936_v55 = vmul.f32 %v6023_v35, %v2790_v62  ;;  %3480 = vmatprep.mubr.f32.mxu0 %v2998_v33  ;;  %v6048_v62 = vld [vmem:[%s6466_s28 + $0x118] sm:$0xff] }
 0x751   : > { %3481 = vmatmul.mubr.f32.gmra.mrb[158].mxu0 %v2997_v2  ;;  %v2999_v28 = vadd.f32 %v6025_v16, %v2935_v51 }
 0x752   : > { %v3000_v11 = vadd.f32 %v6024_v30, %v2936_v55  ;;  %v2794_v5 = vpop.f32.mrb[142].mxu1  ;;  %v6049_v30 = vld [vmem:[%s6466_s28 + $0x110] sm:$0xff] }
 0x753   : > { %v2937_v25 = vmul.f32 %v6026_v14, %v2794_v5  ;;  %v2796_v9 = vpop.f32.mrb[143].mxu1  ;;  %v6050_v5 = vld [vmem:[%s6461_s22 + $0x120] sm:$0xff]  ;;  %v6051_v14 = vld [vmem:[%s6461_s22 + $0x128] sm:$0xff] }
 0x754   : > { %v2938_v48 = vmul.f32 %v6027_v44, %v2796_v9  ;;  %3485 = vmatprep.mubr.f32.mxu0 %v3000_v11  ;;  %v6052_v9 = vld [vmem:[%s6466_s28 + $0x128] sm:$0xff] }
 0x755   : > { %3486 = vmatmul.mubr.f32.gmra.mrb[160].mxu0 %v2999_v28  ;;  %v3001_v21 = vadd.f32 %v6029_v61, %v2937_v25 }
 0x756   : > { %v3002_v13 = vadd.f32 %v6028_v37, %v2938_v48  ;;  %v2800_v56 = vpop.f32.mrb[144].mxu1  ;;  %v6053_v37 = vld [vmem:[%s6466_s28 + $0x120] sm:$0xff] }
 0x757   : > { %v2939_v10 = vmul.f32 %v6030_v41, %v2800_v56  ;;  %v2802_v15 = vpop.f32.mrb[145].mxu1  ;;  %v6054_v56 = vld [vmem:[%s6461_s22 + $0x130] sm:$0xff]  ;;  %v6055_v41 = vld [vmem:[%s6461_s22 + $0x138] sm:$0xff] }
 0x758   : > { %v2940_v18 = vmul.f32 %v6031_v19, %v2802_v15  ;;  %3490 = vmatprep.mubr.f32.mxu0 %v3002_v13  ;;  %v6056_v15 = vld [vmem:[%s6466_s28 + $0x138] sm:$0xff] }
 0x759   : > { %3491 = vmatmul.mubr.f32.gmra.mrb[162].mxu0 %v3001_v21  ;;  %v3003_v53 = vadd.f32 %v6033_v36, %v2939_v10 }
 0x75a   : > { %v3004_v57 = vadd.f32 %v6032_v29, %v2940_v18  ;;  %v2806_v1 = vpop.f32.mrb[146].mxu1  ;;  %v6057_v29 = vld [vmem:[%s6466_s28 + $0x130] sm:$0xff] }
 0x75b   : > { %v2941_v23 = vmul.f32 %v6034_v60, %v2806_v1  ;;  %v2808_v58 = vpop.f32.mrb[147].mxu1  ;;  %v6058_v1 = vld [vmem:[%s6461_s22 + $0x140] sm:$0xff]  ;;  %v6059_v60 = vld [vmem:[%s6461_s22 + $0x148] sm:$0xff] }
 0x75c   : > { %v2942_v34 = vmul.f32 %v6035_v40, %v2808_v58  ;;  %3495 = vmatprep.mubr.f32.mxu0 %v3004_v57  ;;  %v6060_v58 = vld [vmem:[%s6466_s28 + $0x148] sm:$0xff] }
 0x75d   : > { %3496 = vmatmul.mubr.f32.gmra.mrb[164].mxu0 %v3003_v53  ;;  %v3005_v42 = vadd.f32 %v6037_v4, %v2941_v23 }
 0x75e   : > { %v3006_v20 = vadd.f32 %v6036_v50, %v2942_v34  ;;  %v2812_v26 = vpop.f32.mrb[148].mxu1  ;;  %v6061_v50 = vld [vmem:[%s6466_s28 + $0x140] sm:$0xff] }
 0x75f   : > { %v2943_v63 = vmul.f32 %v6038_v47, %v2812_v26  ;;  %v2814_v31 = vpop.f32.mrb[149].mxu1  ;;  %v6062_v26 = vld [vmem:[%s6461_s22 + $0x150] sm:$0xff]  ;;  %v6063_v47 = vld [vmem:[%s6461_s22 + $0x158] sm:$0xff] }
 0x760   : > { %v2944_v24 = vmul.f32 %v6039_v43, %v2814_v31  ;;  %3500 = vmatprep.mubr.f32.mxu0 %v3006_v20  ;;  %v6064_v31 = vld [vmem:[%s6466_s28 + $0x158] sm:$0xff] }
 0x761   : > { %3501 = vmatmul.mubr.f32.gmra.mrb[166].mxu0 %v3005_v42  ;;  %v3007_v45 = vadd.f32 %v6041_v6, %v2943_v63 }
 0x762   : > { %v3008_v39 = vadd.f32 %v6040_v32, %v2944_v24  ;;  %v2818_v3 = vpop.f32.mrb[150].mxu1  ;;  %v6065_v32 = vld [vmem:[%s6466_s28 + $0x150] sm:$0xff] }
 0x763   : > { %v2945_v54 = vmul.f32 %v6042_v49, %v2818_v3  ;;  %v2820_v59 = vpop.f32.mrb[151].mxu1  ;;  %v6066_v3 = vld [vmem:[%s6461_s22 + $0x160] sm:$0xff]  ;;  %v6067_v49 = vld [vmem:[%s6461_s22 + $0x168] sm:$0xff] }
 0x764   : > { %v2946_v7 = vmul.f32 %v6043_v0, %v2820_v59  ;;  %3505 = vmatprep.mubr.f32.mxu0 %v3008_v39  ;;  %v794_v59 = vld [vmem:[%s8006_s8 + $0xb8] sm:$0xff]  ;;  %v795_v0 = vld [vmem:[%s8006_s8 + $0xc0] sm:$0xff] }
 0x765   : > { %3506 = vmatmul.mubr.f32.gmra.mrb[168].mxu0 %v3007_v45  ;;  %v3009_v33 = vadd.f32 %v6045_v27, %v2945_v54  ;;  %v6069_v27 = vld [vmem:[%s6466_s28 + $0x160] sm:$0xff] }
 0x766   : > { %v3010_v17 = vadd.f32 %v6044_v12, %v2946_v7  ;;  %v2824_v22 = vpop.f32.mrb[152].mxu1  ;;  %v6068_v7 = vld [vmem:[%s6466_s28 + $0x168] sm:$0xff] }
 0x767   : > { %v2947_v52 = vmul.f32 %v6046_v38, %v2824_v22  ;;  %v2826_v2 = vpop.f32.mrb[153].mxu1  ;;  %v5570_v22 = vpack.c.bf16 %v795_v0, %v794_v59  ;;  %v6070_v38 = vld [vmem:[%s6461_s22 + $0x170] sm:$0xff]  ;;  %v6092_v59 = vld [vmem:[%s6466_s28 + $0x1c8] sm:$0xff] }
 0x768   : > { %v2948_v51 = vmul.f32 %v6047_v8, %v2826_v2  ;;  %3510 = vmatprep.mubr.f32.mxu0 %v3010_v17  ;;  %v6071_v8 = vld [vmem:[%s6461_s22 + $0x178] sm:$0xff] }
 0x769   : > { %3511 = vmatmul.mubr.f32.gmra.mrb[170].mxu0 %v3009_v33  ;;  %v3011_v11 = vadd.f32 %v6049_v30, %v2947_v52  ;;  %5571 = vmatprep.subr.bf16.mxu1 %v5570_v22  ;;  %v6073_v30 = vld [vmem:[%s6466_s28 + $0x170] sm:$0xff] }
 0x76a   : > { %v3012_v35 = vadd.f32 %v6048_v62, %v2948_v51  ;;  %v2830_v55 = vpop.f32.mrb[154].mxu1  ;;  %5573 = vmatpush3.bf16.msra.mxu1 %v5570_v22  ;;  %v6072_v62 = vld [vmem:[%s6466_s28 + $0x178] sm:$0xff]  ;;  %v6094_v22 = vld [vmem:[%s6461_s22 + $0x1d0] sm:$0xff] }
 0x76b   : > { %v2949_v16 = vmul.f32 %v6050_v5, %v2830_v55  ;;  %v2832_v28 = vpop.f32.mrb[155].mxu1  ;;  %v6074_v5 = vld [vmem:[%s6461_s22 + $0x180] sm:$0xff] }
 0x76c   : > { %v2950_v25 = vmul.f32 %v6051_v14, %v2832_v28  ;;  %3515 = vmatprep.mubr.f32.mxu0 %v3012_v35  ;;  %v6075_v14 = vld [vmem:[%s6461_s22 + $0x188] sm:$0xff] }
 0x76d   : > { %3516 = vmatmul.mubr.f32.gmra.mrb[172].mxu0 %v3011_v11  ;;  %v3013_v13 = vadd.f32 %v6053_v37, %v2949_v16  ;;  %v6077_v37 = vld [vmem:[%s6466_s28 + $0x180] sm:$0xff] }
 0x76e   : > { %v3014_v44 = vadd.f32 %v6052_v9, %v2950_v25  ;;  %v2836_v48 = vpop.f32.mrb[156].mxu1  ;;  %v6076_v9 = vld [vmem:[%s6466_s28 + $0x188] sm:$0xff] }
 0x76f   : > { %v2951_v61 = vmul.f32 %v6054_v56, %v2836_v48  ;;  %v2838_v21 = vpop.f32.mrb[157].mxu1  ;;  %v6078_v56 = vld [vmem:[%s6461_s22 + $0x190] sm:$0xff] }
 0x770   : > { %v2952_v10 = vmul.f32 %v6055_v41, %v2838_v21  ;;  %3520 = vmatprep.mubr.f32.mxu0 %v3014_v44  ;;  %v6079_v41 = vld [vmem:[%s6461_s22 + $0x198] sm:$0xff] }
 0x771   : > { %3521 = vmatmul.mubr.f32.gmra.mrb[174].mxu0 %v3013_v13  ;;  %v3015_v57 = vadd.f32 %v6057_v29, %v2951_v61  ;;  %v6081_v29 = vld [vmem:[%s6466_s28 + $0x190] sm:$0xff] }
 0x772   : > { %v3016_v19 = vadd.f32 %v6056_v15, %v2952_v10  ;;  %v2842_v18 = vpop.f32.mrb[158].mxu1  ;;  %v6080_v15 = vld [vmem:[%s6466_s28 + $0x198] sm:$0xff] }
 0x773   : > { %v2953_v36 = vmul.f32 %v6058_v1, %v2842_v18  ;;  %v2844_v53 = vpop.f32.mrb[159].mxu1  ;;  %v6082_v1 = vld [vmem:[%s6461_s22 + $0x1a0] sm:$0xff] }
 0x774   : > { %v2954_v23 = vmul.f32 %v6059_v60, %v2844_v53  ;;  %3525 = vmatprep.mubr.f32.mxu0 %v3016_v19  ;;  %v6083_v60 = vld [vmem:[%s6461_s22 + $0x1a8] sm:$0xff] }
 0x775   : > { %3526 = vmatmul.mubr.f32.gmra.mrb[176].mxu0 %v3015_v57  ;;  %v3017_v20 = vadd.f32 %v6061_v50, %v2953_v36  ;;  %v6085_v50 = vld [vmem:[%s6466_s28 + $0x1a0] sm:$0xff] }
 0x776   : > { %v3018_v40 = vadd.f32 %v6060_v58, %v2954_v23  ;;  %v2848_v34 = vpop.f32.mrb[160].mxu1  ;;  %v6084_v58 = vld [vmem:[%s6466_s28 + $0x1a8] sm:$0xff] }
 0x777   : > { %v2955_v4 = vmul.f32 %v6062_v26, %v2848_v34  ;;  %v2850_v42 = vpop.f32.mrb[161].mxu1  ;;  %v6086_v26 = vld [vmem:[%s6461_s22 + $0x1b0] sm:$0xff] }
 0x778   : > { %v2956_v63 = vmul.f32 %v6063_v47, %v2850_v42  ;;  %3530 = vmatprep.mubr.f32.mxu0 %v3018_v40  ;;  %v6087_v47 = vld [vmem:[%s6461_s22 + $0x1b8] sm:$0xff] }
 0x779   : > { %3531 = vmatmul.mubr.f32.gmra.mrb[178].mxu0 %v3017_v20  ;;  %v3019_v39 = vadd.f32 %v6065_v32, %v2955_v4  ;;  %v6089_v32 = vld [vmem:[%s6466_s28 + $0x1b0] sm:$0xff] }
 0x77a   : > { %v3020_v43 = vadd.f32 %v6064_v31, %v2956_v63  ;;  %v2854_v24 = vpop.f32.mrb[162].mxu1  ;;  %v6088_v31 = vld [vmem:[%s6466_s28 + $0x1b8] sm:$0xff] }
 0x77b   : > { %v2957_v6 = vmul.f32 %v6066_v3, %v2854_v24  ;;  %v2856_v45 = vpop.f32.mrb[163].mxu1  ;;  %v6090_v3 = vld [vmem:[%s6461_s22 + $0x1c0] sm:$0xff] }
 0x77c   : > { %v2958_v54 = vmul.f32 %v6067_v49, %v2856_v45  ;;  %3535 = vmatprep.mubr.f32.mxu0 %v3020_v43  ;;  %v6091_v49 = vld [vmem:[%s6461_s22 + $0x1c8] sm:$0xff] }
 0x77d   : > { %3536 = vmatmul.mubr.f32.gmra.mrb[180].mxu0 %v3019_v39  ;;  %v3021_v33 = vadd.f32 %v6069_v27, %v2957_v6 }
 0x77e   : > { %v3022_v12 = vadd.f32 %v6068_v7, %v2958_v54  ;;  %v2860_v17 = vpop.f32.mrb[164].mxu1 }
 0x77f   : > { %v2959_v52 = vmul.f32 %v6070_v38, %v2860_v17  ;;  %v2862_v2 = vpop.f32.mrb[165].mxu1  ;;  %v6095_v38 = vld [vmem:[%s6461_s22 + $0x1d8] sm:$0xff] }
 0x780   : > { %v2960_v51 = vmul.f32 %v6071_v8, %v2862_v2  ;;  %3540 = vmatprep.mubr.f32.mxu0 %v3022_v12  ;;  %v6093_v12 = vld [vmem:[%s6466_s28 + $0x1c0] sm:$0xff]  ;;  %v6096_v2 = vld [vmem:[%s6466_s28 + $0x1d8] sm:$0xff] }
 0x781   : > { %3541 = vmatmul.mubr.f32.gmra.mrb[182].mxu0 %v3021_v33  ;;  %v3023_v11 = vadd.f32 %v6073_v30, %v2959_v52 }
 0x782   : > { %v3024_v35 = vadd.f32 %v6072_v62, %v2960_v51  ;;  %v2866_v55 = vpop.f32.mrb[166].mxu1  ;;  %v6097_v62 = vld [vmem:[%s6466_s28 + $0x1d0] sm:$0xff] }
 0x783   : > { %v2961_v16 = vmul.f32 %v6074_v5, %v2866_v55  ;;  %v2868_v28 = vpop.f32.mrb[167].mxu1  ;;  %v6098_v55 = vld [vmem:[%s6461_s22 + $0x1e0] sm:$0xff]  ;;  %v6099_v5 = vld [vmem:[%s6461_s22 + $0x1e8] sm:$0xff] }
 0x784   : > { %v2962_v25 = vmul.f32 %v6075_v14, %v2868_v28  ;;  %3545 = vmatprep.mubr.f32.mxu0 %v3024_v35  ;;  %v6100_v28 = vld [vmem:[%s6466_s28 + $0x1e8] sm:$0xff] }
 0x785   : > { %3546 = vmatmul.mubr.f32.gmra.mrb[184].mxu0 %v3023_v11  ;;  %v3025_v13 = vadd.f32 %v6077_v37, %v2961_v16 }
 0x786   : > { %v3026_v44 = vadd.f32 %v6076_v9, %v2962_v25  ;;  %v2872_v48 = vpop.f32.mrb[168].mxu1  ;;  %v6101_v9 = vld [vmem:[%s6466_s28 + $0x1e0] sm:$0xff] }
 0x787   : > { %v2963_v61 = vmul.f32 %v6078_v56, %v2872_v48  ;;  %v2874_v21 = vpop.f32.mrb[169].mxu1  ;;  %v6102_v48 = vld [vmem:[%s6461_s22 + $0x1f0] sm:$0xff]  ;;  %v6103_v56 = vld [vmem:[%s6461_s22 + $0x1f8] sm:$0xff] }
 0x788   : > { %v2964_v10 = vmul.f32 %v6079_v41, %v2874_v21  ;;  %3550 = vmatprep.mubr.f32.mxu0 %v3026_v44  ;;  %v6104_v21 = vld [vmem:[%s6466_s28 + $0x1f8] sm:$0xff] }
 0x789   : > { %3551 = vmatmul.mubr.f32.gmra.mrb[186].mxu0 %v3025_v13  ;;  %v3027_v57 = vadd.f32 %v6081_v29, %v2963_v61 }
 0x78a   : > { %v3028_v19 = vadd.f32 %v6080_v15, %v2964_v10  ;;  %v2878_v18 = vpop.f32.mrb[170].mxu1  ;;  %v6105_v10 = vld [vmem:[%s6466_s28 + $0x1f0] sm:$0xff] }
 0x78b   : > { %v2965_v36 = vmul.f32 %v6082_v1, %v2878_v18  ;;  %v2880_v53 = vpop.f32.mrb[171].mxu1  ;;  %v7528_v18 = vld [vmem:[%s8006_s8 + $0xc8] sm:$0xff] }
 0x78c   : > { %v2966_v23 = vmul.f32 %v6083_v60, %v2880_v53  ;;  %3555 = vmatprep.mubr.f32.mxu0 %v3028_v19  ;;  %v3364_v19 = vsub.s32 4, %v8118_v46 }
 0x78d   : > { %3556 = vmatmul.mubr.f32.gmra.mrb[188].mxu0 %v3027_v57  ;;  %v3029_v20 = vadd.f32 %v6085_v50, %v2965_v36 }
 0x78e   : > { %v3030_v40 = vadd.f32 %v6084_v58, %v2966_v23  ;;  %v2884_v34 = vpop.f32.mrb[172].mxu1  ;;  %v7531_v29 = vrot.slane %v7528_v18, %v3364_v19 }
 0x78f   : > { %v2967_v4 = vmul.f32 %v6086_v26, %v2884_v34  ;;  %v2886_v42 = vpop.f32.mrb[173].mxu1 }
 0x790   : > { %v2968_v63 = vmul.f32 %v6087_v47, %v2886_v42  ;;  %3560 = vmatprep.mubr.f32.mxu0 %v3030_v40 }
 0x791   : > { %3561 = vmatmul.mubr.f32.gmra.mrb[190].mxu0 %v3029_v20  ;;  %v3031_v39 = vadd.f32 %v6089_v32, %v2967_v4 }
 0x792   : > { %v3032_v43 = vadd.f32 %v6088_v31, %v2968_v63  ;;  %v2890_v24 = vpop.f32.mrb[174].mxu1 }
 0x793   : > { %v2969_v6 = vmul.f32 %v6090_v3, %v2890_v24  ;;  %v2892_v45 = vpop.f32.mrb[175].mxu1 }
 0x794   : > { %v2970_v54 = vmul.f32 %v6091_v49, %v2892_v45  ;;  %3565 = vmatprep.mubr.f32.mxu0 %v3032_v43 }
 0x795   : > { %3566 = vmatmul.mubr.f32.gmra.mrb[192].mxu0 %v3031_v39  ;;  %v3033_v17 = vadd.f32 %v6093_v12, %v2969_v6 }
 0x796   : > { %v3034_v0 = vadd.f32 %v6092_v59, %v2970_v54  ;;  %v2896_v7 = vpop.f32.mrb[176].mxu1 }
 0x797   : > { %v2971_v27 = vmul.f32 %v6094_v22, %v2896_v7  ;;  %v2898_v33 = vpop.f32.mrb[177].mxu1 }
 0x798   : > { %v2972_v52 = vmul.f32 %v6095_v38, %v2898_v33  ;;  %3570 = vmatprep.mubr.f32.mxu0 %v3034_v0 }
 0x799   : > { %3571 = vmatmul.mubr.f32.gmra.mrb[194].mxu0 %v3033_v17  ;;  %v3035_v35 = vadd.f32 %v6097_v62, %v2971_v27 }
 0x79a   : > { %v3036_v8 = vadd.f32 %v6096_v2, %v2972_v52  ;;  %v2902_v51 = vpop.f32.mrb[178].mxu1 }
 0x79b   : > { %v2973_v30 = vmul.f32 %v6098_v55, %v2902_v51  ;;  %v2904_v11 = vpop.f32.mrb[179].mxu1 }
 0x79c   : > { %v2974_v16 = vmul.f32 %v6099_v5, %v2904_v11  ;;  %3575 = vmatprep.mubr.f32.mxu0 %v3036_v8 }
 0x79d   : > { %3576 = vmatmul.mubr.f32.gmra.mrb[196].mxu0 %v3035_v35  ;;  %v3037_v44 = vadd.f32 %v6101_v9, %v2973_v30 }
 0x79e   : > { %v3038_v14 = vadd.f32 %v6100_v28, %v2974_v16  ;;  %v2908_v25 = vpop.f32.mrb[180].mxu1 }
 0x79f   : > { %v2975_v37 = vmul.f32 %v6102_v48, %v2908_v25  ;;  %v2910_v13 = vpop.f32.mrb[181].mxu1 }
 0x7a0   : > { %v2976_v61 = vmul.f32 %v6103_v56, %v2910_v13  ;;  %3580 = vmatprep.mubr.f32.mxu0 %v3038_v14 }
 0x7a1   : > { %3581 = vmatmul.mubr.f32.gmra.mrb[198].mxu0 %v3037_v44  ;;  %v3039_v15 = vadd.f32 %v6105_v10, %v2975_v37 }
 0x7a2   : > { %v3040_v41 = vadd.f32 %v6104_v21, %v2976_v61 }
 0x7a4   : > { %3585 = vmatprep.mubr.f32.mxu0 %v3040_v41 }
 0x7a5   : > { %3586 = vmatmul.mubr.f32.gmra.mrb[200].mxu0 %v3039_v15 }
 0x7fc   : > { %v3432_v57 = vpop.f32.mrb[138].mxu0 }
 0x7fd   : > { %v7534_v1 = vadd.f32 %v3432_v57, %v7531_v29  ;;  %v3434_v36 = vpop.f32.mrb[139].mxu0 }
 0x7ff   : > { %5254 = vmatprep.mubr.f32.mxu1 %v7534_v1  ;;  %v3591_v53 = vmul.f32 %v7534_v1, %v7534_v1 }
 0x800   : > { %v3437_v60 = vpop.f32.mrb[140].mxu0 }
 0x801   : > { %v7540_v23 = vadd.f32 %v3437_v60, %v7531_v29  ;;  %v3439_v58 = vpop.f32.mrb[141].mxu0  ;;  %3623 = vadd.xlane.f32.xlu0 %v3591_v53 }
 0x803   : > { %5255 = vmatmul.mubr.f32.vlgmr.msra.gmra.mrb[182].mxu1 %v7540_v23  ;;  %v3592_v40 = vmul.f32 %v7540_v23, %v7540_v23 }
 0x804   : > { %v3442_v34 = vpop.f32.mrb[142].mxu0 }
 0x805   : > { %v7546_v50 = vadd.f32 %v3442_v34, %v7531_v29  ;;  %v3444_v20 = vpop.f32.mrb[143].mxu0  ;;  %3625 = vadd.xlane.f32.xlu1 %v3592_v40 }
 0x807   : > { %5257 = vmatprep.mubr.f32.mxu1 %v7546_v50  ;;  %v3593_v26 = vmul.f32 %v7546_v50, %v7546_v50 }
 0x808   : > { %v3447_v4 = vpop.f32.mrb[144].mxu0 }
 0x809   : > { %v7552_v42 = vadd.f32 %v3447_v4, %v7531_v29  ;;  %v3449_v47 = vpop.f32.mrb[145].mxu0  ;;  %3627 = vadd.xlane.f32.xlu0 %v3593_v26 }
 0x80b   : > { %5258 = vmatmul.mubr.f32.gmra.mrb[184].mxu1 %v7552_v42  ;;  %v3594_v63 = vmul.f32 %v7552_v42, %v7552_v42 }
 0x80c   : > { %v3452_v31 = vpop.f32.mrb[146].mxu0 }
 0x80d   : > { %v7558_v43 = vadd.f32 %v3452_v31, %v7531_v29  ;;  %v3454_v24 = vpop.f32.mrb[147].mxu0  ;;  %3629 = vadd.xlane.f32.xlu1 %v3594_v63 }
 0x80f   : > { %5260 = vmatprep.mubr.f32.mxu1 %v7558_v43  ;;  %v3595_v32 = vmul.f32 %v7558_v43, %v7558_v43 }
 0x810   : > { %v3457_v39 = vpop.f32.mrb[148].mxu0 }
 0x811   : > { %v7564_v3 = vadd.f32 %v3457_v39, %v7531_v29  ;;  %v3459_v6 = vpop.f32.mrb[149].mxu0  ;;  %3631 = vadd.xlane.f32.xlu0 %v3595_v32 }
 0x813   : > { %5261 = vmatmul.mubr.f32.gmra.mrb[186].mxu1 %v7564_v3  ;;  %v3596_v45 = vmul.f32 %v7564_v3, %v7564_v3 }
 0x814   : > { %v3462_v49 = vpop.f32.mrb[150].mxu0 }
 0x815   : > { %v7570_v54 = vadd.f32 %v3462_v49, %v7531_v29  ;;  %v3464_v59 = vpop.f32.mrb[151].mxu0  ;;  %3633 = vadd.xlane.f32.xlu1 %v3596_v45 }
 0x817   : > { %5263 = vmatprep.mubr.f32.mxu1 %v7570_v54  ;;  %v3597_v0 = vmul.f32 %v7570_v54, %v7570_v54 }
 0x818   : > { %v3467_v7 = vpop.f32.mrb[152].mxu0 }
 0x819   : > { %v7576_v12 = vadd.f32 %v3467_v7, %v7531_v29  ;;  %v3469_v17 = vpop.f32.mrb[153].mxu0  ;;  %3635 = vadd.xlane.f32.xlu0 %v3597_v0 }
 0x81b   : > { %5264 = vmatmul.mubr.f32.gmra.mrb[188].mxu1 %v7576_v12  ;;  %v3598_v22 = vmul.f32 %v7576_v12, %v7576_v12 }
 0x81c   : > { %v3472_v27 = vpop.f32.mrb[154].mxu0 }
 0x81d   : > { %v7582_v33 = vadd.f32 %v3472_v27, %v7531_v29  ;;  %v3474_v38 = vpop.f32.mrb[155].mxu0  ;;  %3637 = vadd.xlane.f32.xlu1 %v3598_v22 }
 0x81f   : > { %5266 = vmatprep.mubr.f32.mxu1 %v7582_v33  ;;  %v3599_v52 = vmul.f32 %v7582_v33, %v7582_v33 }
 0x820   : > { %v3477_v2 = vpop.f32.mrb[156].mxu0 }
 0x821   : > { %v7588_v8 = vadd.f32 %v3477_v2, %v7531_v29  ;;  %v3479_v51 = vpop.f32.mrb[157].mxu0  ;;  %3639 = vadd.xlane.f32.xlu0 %v3599_v52 }
 0x823   : > { %5267 = vmatmul.mubr.f32.gmra.mrb[190].mxu1 %v7588_v8  ;;  %v3600_v62 = vmul.f32 %v7588_v8, %v7588_v8 }
 0x824   : > { %v3482_v35 = vpop.f32.mrb[158].mxu0 }
 0x825   : > { %v7594_v55 = vadd.f32 %v3482_v35, %v7531_v29  ;;  %v3484_v30 = vpop.f32.mrb[159].mxu0  ;;  %3641 = vadd.xlane.f32.xlu1 %v3600_v62 }
 0x827   : > { %5269 = vmatprep.mubr.f32.mxu1 %v7594_v55  ;;  %v3601_v11 = vmul.f32 %v7594_v55, %v7594_v55 }
 0x828   : > { %v3487_v5 = vpop.f32.mrb[160].mxu0 }
 0x829   : > { %v7600_v16 = vadd.f32 %v3487_v5, %v7531_v29  ;;  %v3489_v28 = vpop.f32.mrb[161].mxu0  ;;  %3643 = vadd.xlane.f32.xlu0 %v3601_v11 }
 0x82b   : > { %5270 = vmatmul.mubr.f32.gmra.mrb[192].mxu1 %v7600_v16  ;;  %v3602_v14 = vmul.f32 %v7600_v16, %v7600_v16 }
 0x82c   : > { %v3492_v25 = vpop.f32.mrb[162].mxu0 }
 0x82d   : > { %v7606_v9 = vadd.f32 %v3492_v25, %v7531_v29  ;;  %v3494_v44 = vpop.f32.mrb[163].mxu0  ;;  %3645 = vadd.xlane.f32.xlu1 %v3602_v14 }
 0x82f   : > { %5272 = vmatprep.mubr.f32.mxu1 %v7606_v9  ;;  %v3603_v48 = vmul.f32 %v7606_v9, %v7606_v9 }
 0x830   : > { %v3497_v37 = vpop.f32.mrb[164].mxu0 }
 0x831   : > { %v7612_v13 = vadd.f32 %v3497_v37, %v7531_v29  ;;  %v3499_v56 = vpop.f32.mrb[165].mxu0  ;;  %3647 = vadd.xlane.f32.xlu0 %v3603_v48 }
 0x833   : > { %5273 = vmatmul.mubr.f32.gmra.mrb[194].mxu1 %v7612_v13  ;;  %v3604_v61 = vmul.f32 %v7612_v13, %v7612_v13 }
 0x834   : > { %v3502_v21 = vpop.f32.mrb[166].mxu0 }
 0x835   : > { %v7618_v41 = vadd.f32 %v3502_v21, %v7531_v29  ;;  %v3504_v10 = vpop.f32.mrb[167].mxu0  ;;  %3649 = vadd.xlane.f32.xlu1 %v3604_v61 }
 0x837   : > { %5275 = vmatprep.mubr.f32.mxu1 %v7618_v41  ;;  %v3605_v15 = vmul.f32 %v7618_v41, %v7618_v41 }
 0x838   : > { %v3507_v19 = vpop.f32.mrb[168].mxu0 }
 0x839   : > { %v7624_v57 = vadd.f32 %v3507_v19, %v7531_v29  ;;  %v3509_v36 = vpop.f32.mrb[169].mxu0  ;;  %3651 = vadd.xlane.f32.xlu0 %v3605_v15 }
 0x83b   : > { %5276 = vmatmul.mubr.f32.gmra.mrb[196].mxu1 %v7624_v57  ;;  %v3606_v53 = vmul.f32 %v7624_v57, %v7624_v57 }
 0x83c   : > { %v3512_v60 = vpop.f32.mrb[170].mxu0 }
 0x83d   : > { %v7630_v58 = vadd.f32 %v3512_v60, %v7531_v29  ;;  %v3514_v40 = vpop.f32.mrb[171].mxu0  ;;  %3653 = vadd.xlane.f32.xlu1 %v3606_v53 }
 0x83f   : > { %5278 = vmatprep.mubr.f32.mxu1 %v7630_v58  ;;  %v3607_v34 = vmul.f32 %v7630_v58, %v7630_v58 }
 0x840   : > { %v3517_v20 = vpop.f32.mrb[172].mxu0 }
 0x841   : > { %v7636_v26 = vadd.f32 %v3517_v20, %v7531_v29  ;;  %v3519_v4 = vpop.f32.mrb[173].mxu0  ;;  %3655 = vadd.xlane.f32.xlu0 %v3607_v34 }
 0x843   : > { %5279 = vmatmul.mubr.f32.gmra.mrb[198].mxu1 %v7636_v26  ;;  %v3608_v47 = vmul.f32 %v7636_v26, %v7636_v26 }
 0x844   : > { %v3522_v63 = vpop.f32.mrb[174].mxu0 }
 0x845   : > { %v7642_v31 = vadd.f32 %v3522_v63, %v7531_v29  ;;  %v3524_v24 = vpop.f32.mrb[175].mxu0  ;;  %3657 = vadd.xlane.f32.xlu1 %v3608_v47 }
 0x847   : > { %5281 = vmatprep.mubr.f32.mxu1 %v7642_v31  ;;  %v3609_v32 = vmul.f32 %v7642_v31, %v7642_v31 }
 0x848   : > { %v3527_v39 = vpop.f32.mrb[176].mxu0 }
 0x849   : > { %v7648_v6 = vadd.f32 %v3527_v39, %v7531_v29  ;;  %v3529_v45 = vpop.f32.mrb[177].mxu0  ;;  %3659 = vadd.xlane.f32.xlu0 %v3609_v32 }
 0x84b   : > { %5282 = vmatmul.mubr.f32.gmra.mrb[200].mxu1 %v7648_v6  ;;  %v3610_v49 = vmul.f32 %v7648_v6, %v7648_v6 }
 0x84c   : > { %v3532_v59 = vpop.f32.mrb[178].mxu0 }
 0x84d   : > { %v7654_v0 = vadd.f32 %v3532_v59, %v7531_v29  ;;  %v3534_v7 = vpop.f32.mrb[179].mxu0  ;;  %3661 = vadd.xlane.f32.xlu1 %v3610_v49 }
 0x84f   : > { %5284 = vmatprep.mubr.f32.mxu1 %v7654_v0  ;;  %v3611_v17 = vmul.f32 %v7654_v0, %v7654_v0 }
 0x850   : > { %v3537_v22 = vpop.f32.mrb[180].mxu0 }
 0x851   : > { %v7660_v27 = vadd.f32 %v3537_v22, %v7531_v29  ;;  %v3539_v38 = vpop.f32.mrb[181].mxu0  ;;  %3663 = vadd.xlane.f32.xlu0 %v3611_v17 }
 0x853   : > { %5285 = vmatmul.mubr.f32.gmra.mrb[202].mxu1 %v7660_v27  ;;  %v3612_v52 = vmul.f32 %v7660_v27, %v7660_v27 }
 0x854   : > { %v3542_v2 = vpop.f32.mrb[182].mxu0 }
 0x855   : > { %v7666_v51 = vadd.f32 %v3542_v2, %v7531_v29  ;;  %v3544_v62 = vpop.f32.mrb[183].mxu0  ;;  %3665 = vadd.xlane.f32.xlu1 %v3612_v52 }
 0x856   : > { %v3946_v62 = vsub.s32 6, %v8118_v46 }
 0x857   : > { %8145 = vst [vmem:[#allocation3_spill] sm:$0xff] %v7666_v51  ;;  %5287 = vmatprep.mubr.f32.mxu1 %v7666_v51  ;;  %v3613_v35 = vmul.f32 %v7666_v51, %v7666_v51 }
 0x858   : > { %v3547_v30 = vpop.f32.mrb[184].mxu0 }
 0x859   : > { %v7672_v11 = vadd.f32 %v3547_v30, %v7531_v29  ;;  %v3549_v5 = vpop.f32.mrb[185].mxu0  ;;  %3667 = vadd.xlane.f32.xlu0 %v3613_v35  ;;  %v7727_v35 = vrot.slane %v7528_v18, %v3946_v62 }
 0x85b   : > { %8146 = vst [vmem:[#allocation4_spill] sm:$0xff] %v7672_v11  ;;  %5288 = vmatmul.mubr.f32.gmra.mrb[204].mxu1 %v7672_v11  ;;  %v3614_v28 = vmul.f32 %v7672_v11, %v7672_v11 }
 0x85c   : > { %v3552_v14 = vpop.f32.mrb[186].mxu0 }
 0x85d   : > { %v7678_v25 = vadd.f32 %v3552_v14, %v7531_v29  ;;  %v3554_v44 = vpop.f32.mrb[187].mxu0  ;;  %3669 = vadd.xlane.f32.xlu1 %v3614_v28 }
 0x85f   : > { %8147 = vst [vmem:[#allocation5_spill] sm:$0xff] %v7678_v25  ;;  %5290 = vmatprep.mubr.f32.mxu1 %v7678_v25  ;;  %v3615_v48 = vmul.f32 %v7678_v25, %v7678_v25 }
 0x860   : > { %v3557_v37 = vpop.f32.mrb[188].mxu0 }
 0x861   : > { %v7684_v56 = vadd.f32 %v3557_v37, %v7531_v29  ;;  %v3559_v61 = vpop.f32.mrb[189].mxu0  ;;  %3671 = vadd.xlane.f32.xlu0 %v3615_v48 }
 0x863   : > { %8148 = vst [vmem:[#allocation6_spill] sm:$0xff] %v7684_v56  ;;  %5291 = vmatmul.mubr.f32.gmra.mrb[206].mxu1 %v7684_v56  ;;  %v3616_v21 = vmul.f32 %v7684_v56, %v7684_v56 }
 0x864   : > { %v3562_v10 = vpop.f32.mrb[190].mxu0 }
 0x865   : > { %v7690_v15 = vadd.f32 %v3562_v10, %v7531_v29  ;;  %v3564_v19 = vpop.f32.mrb[191].mxu0  ;;  %3673 = vadd.xlane.f32.xlu1 %v3616_v21 }
 0x867   : > { %8149 = vst [vmem:[#allocation7_spill] sm:$0xff] %v7690_v15  ;;  %5293 = vmatprep.mubr.f32.mxu1 %v7690_v15  ;;  %v3617_v36 = vmul.f32 %v7690_v15, %v7690_v15 }
 0x868   : > { %v3567_v53 = vpop.f32.mrb[192].mxu0 }
 0x869   : > { %v7696_v60 = vadd.f32 %v3567_v53, %v7531_v29  ;;  %v3569_v40 = vpop.f32.mrb[193].mxu0  ;;  %3675 = vadd.xlane.f32.xlu0 %v3617_v36 }
 0x86b   : > { %8150 = vst [vmem:[#allocation8_spill] sm:$0xff] %v7696_v60  ;;  %5294 = vmatmul.mubr.f32.gmra.mrb[208].mxu1 %v7696_v60  ;;  %v3618_v34 = vmul.f32 %v7696_v60, %v7696_v60 }
 0x86c   : > { %v3572_v20 = vpop.f32.mrb[194].mxu0 }
 0x86d   : > { %v7702_v4 = vadd.f32 %v3572_v20, %v7531_v29  ;;  %v3574_v47 = vpop.f32.mrb[195].mxu0  ;;  %3677 = vadd.xlane.f32.xlu1 %v3618_v34 }
 0x86f   : > { %8151 = vst [vmem:[#allocation9_spill] sm:$0xff] %v7702_v4  ;;  %5296 = vmatprep.mubr.f32.mxu1 %v7702_v4  ;;  %v3619_v63 = vmul.f32 %v7702_v4, %v7702_v4 }
 0x870   : > { %v3577_v24 = vpop.f32.mrb[196].mxu0 }
 0x871   : > { %v7708_v32 = vadd.f32 %v3577_v24, %v7531_v29  ;;  %v3579_v39 = vpop.f32.mrb[197].mxu0  ;;  %3679 = vadd.xlane.f32.xlu0 %v3619_v63 }
 0x873   : > { %8152 = vst [vmem:[#allocation10_spill] sm:$0xff] %v7708_v32  ;;  %5297 = vmatmul.mubr.f32.gmra.mrb[210].mxu1 %v7708_v32  ;;  %v3620_v45 = vmul.f32 %v7708_v32, %v7708_v32 }
 0x874   : > { %v3582_v49 = vpop.f32.mrb[198].mxu0 }
 0x875   : > { %v7714_v59 = vadd.f32 %v3582_v49, %v7531_v29  ;;  %v3584_v7 = vpop.f32.mrb[199].mxu0  ;;  %3681 = vadd.xlane.f32.xlu1 %v3620_v45 }
 0x877   : > { %8153 = vst [vmem:[#allocation11_spill] sm:$0xff] %v7714_v59  ;;  %5299 = vmatprep.mubr.f32.mxu1 %v7714_v59  ;;  %v3621_v17 = vmul.f32 %v7714_v59, %v7714_v59 }
 0x878   : > { %v3587_v22 = vpop.f32.mrb[200].mxu0 }
 0x879   : > { %v7720_v38 = vadd.f32 %v3587_v22, %v7531_v29  ;;  %v3589_v52 = vpop.f32.mrb[201].mxu0  ;;  %3683 = vadd.xlane.f32.xlu0 %v3621_v17 }
 0x87b   : > { %8154 = vst [vmem:[#allocation12_spill] sm:$0xff] %v7720_v38  ;;  %5300 = vmatmul.mubr.f32.gmra.mrb[212].mxu1 %v7720_v38  ;;  %v3622_v2 = vmul.f32 %v7720_v38, %v7720_v38 }
 0x87d   : > { %3685 = vadd.xlane.f32.xlu1 %v3622_v2 }
 0x88e   : > { %v3624_v28 = vpop.xlane.xlu0 %3623 }
 0x892   : > { %v3626_v30 = vpop.xlane.xlu1 %3625 }
 0x896   : > { %v3628_v40 = vpop.xlane.xlu0 %3627 }
 0x89a   : > { %v3630_v36 = vpop.xlane.xlu1 %3629 }
 0x8a2   : > { %v3634_v62 = vpop.xlane.xlu1 %3633 }
 0x8d6   : > { %v5256_v5 = vpop.f32.mrb[182].mxu1 }
 0x8d7   : > { %v3913_v14 = vsub.f32 %v3626_v30, %v5256_v5  ;;  %v3753_v44 = vpop.f32.mrb[183].mxu1  ;;  %v3632_v5 = vpop.xlane.xlu0 %3631 }
 0x8d8   : > { %v3912_v29 = vsub.f32 %v3624_v28, %v3753_v44 }
 0x8d9   : > { %v3949_v48 = vadd.f32 %v7727_v35, %v3913_v14 }
 0x8da   : > { %v3948_v37 = vadd.f32 %v7727_v35, %v3912_v29 }
 0x8db   : > { %v3981_v61 = vmax.f32 %v3949_v48, 0.0 }
 0x8dc   : > { %v3980_v21 = vmax.f32 %v3948_v37, 0.0 }
 0x8dd   : > { %v4013_v10 = vmul.f32 5.0, %v3981_v61 }
 0x8de   : > { %v4012_v19 = vmul.f32 5.0, %v3980_v21  ;;  %v5259_v53 = vpop.f32.mrb[184].mxu1 }
 0x8df   : > { %v4045_v34 = vadd.f32 1.0, %v4013_v10  ;;  %v3915_v20 = vsub.f32 %v3630_v36, %v5259_v53  ;;  %v3763_v47 = vpop.f32.mrb[185].mxu1 }
 0x8e0   : > { %v4044_v63 = vadd.f32 1.0, %v4012_v19  ;;  %v3914_v24 = vsub.f32 %v3628_v40, %v3763_v47  ;;  %v3638_v47 = vpop.xlane.xlu1 %3637 }
 0x8e1   : > { %v4077_v39 = vadd.f32 1e-08, %v4045_v34  ;;  %v3951_v45 = vadd.f32 %v7727_v35, %v3915_v20 }
 0x8e2   : > { %v4076_v49 = vadd.f32 1e-08, %v4044_v63  ;;  %v3950_v7 = vadd.f32 %v7727_v35, %v3914_v24  ;;  %v3636_v24 = vpop.xlane.xlu0 %3635 }
 0x8e3   : > { %5602 = vrcp.f32 %v4077_v39  ;;  %v3983_v17 = vmax.f32 %v3951_v45, 0.0 }
 0x8e4   : > { %5604 = vrcp.f32 %v4076_v49  ;;  %v3982_v22 = vmax.f32 %v3950_v7, 0.0 }
 0x8e5   : > { %v4015_v52 = vmul.f32 5.0, %v3983_v17 }
 0x8e6   : > { %v4014_v2 = vmul.f32 5.0, %v3982_v22  ;;  %v5262_v30 = vpop.f32.mrb[186].mxu1 }
 0x8e7   : > { %v4047_v28 = vadd.f32 1.0, %v4015_v52  ;;  %v3917_v14 = vsub.f32 %v3634_v62, %v5262_v30  ;;  %v3773_v44 = vpop.f32.mrb[187].mxu1 }
 0x8e8   : > { %v4046_v29 = vadd.f32 1.0, %v4014_v2  ;;  %v3916_v48 = vsub.f32 %v3632_v5, %v3773_v44 }
 0x8e9   : > { %v4079_v37 = vadd.f32 1e-08, %v4047_v28  ;;  %v3953_v61 = vadd.f32 %v7727_v35, %v3917_v14 }
 0x8ea   : > { %v4078_v21 = vadd.f32 1e-08, %v4046_v29  ;;  %v3952_v10 = vadd.f32 %v7727_v35, %v3916_v48  ;;  %v3642_v48 = vpop.xlane.xlu1 %3641 }
 0x8eb   : > { %5606 = vrcp.f32 %v4079_v37  ;;  %v3985_v19 = vmax.f32 %v3953_v61, 0.0  ;;  %v3640_v61 = vpop.xlane.xlu0 %3639 }
 0x8ec   : > { %5608 = vrcp.f32 %v4078_v21  ;;  %v3984_v36 = vmax.f32 %v3952_v10, 0.0 }
 0x8ed   : > { %v5603_v53 = vpop.eup %5602  ;;  %v4017_v40 = vmul.f32 5.0, %v3985_v19 }
 0x8ee   : > { %v5605_v34 = vpop.eup %5604  ;;  %5610 = vlog2.f32 %v5603_v53  ;;  %v4016_v20 = vmul.f32 5.0, %v3984_v36  ;;  %v5265_v63 = vpop.f32.mrb[188].mxu1 }
 0x8ef   : > { %5612 = vlog2.f32 %v5605_v34  ;;  %v4049_v39 = vadd.f32 1.0, %v4017_v40  ;;  %v3919_v45 = vsub.f32 %v3638_v47, %v5265_v63  ;;  %v3783_v49 = vpop.f32.mrb[189].mxu1 }
 0x8f0   : > { %v4048_v7 = vadd.f32 1.0, %v4016_v20  ;;  %v3918_v17 = vsub.f32 %v3636_v24, %v3783_v49 }
 0x8f1   : > { %v4081_v22 = vadd.f32 1e-08, %v4049_v39  ;;  %v3955_v52 = vadd.f32 %v7727_v35, %v3919_v45 }
 0x8f2   : > { %v4080_v2 = vadd.f32 1e-08, %v4048_v7  ;;  %v3954_v62 = vadd.f32 %v7727_v35, %v3918_v17 }
 0x8f3   : > { %5614 = vrcp.f32 %v4081_v22  ;;  %v3987_v30 = vmax.f32 %v3955_v52, 0.0 }
 0x8f4   : > { %5616 = vrcp.f32 %v4080_v2  ;;  %v3986_v5 = vmax.f32 %v3954_v62, 0.0 }
 0x8f5   : > { %v5607_v28 = vpop.eup %5606  ;;  %v4019_v14 = vmul.f32 5.0, %v3987_v30 }
 0x8f6   : > { %v5609_v44 = vpop.eup %5608  ;;  %5618 = vlog2.f32 %v5607_v28  ;;  %v4018_v29 = vmul.f32 5.0, %v3986_v5  ;;  %v5268_v37 = vpop.f32.mrb[190].mxu1 }
 0x8f7   : > { %5620 = vlog2.f32 %v5609_v44  ;;  %v4051_v21 = vadd.f32 1.0, %v4019_v14  ;;  %v3921_v10 = vsub.f32 %v3642_v48, %v5268_v37  ;;  %v3793_v19 = vpop.f32.mrb[191].mxu1  ;;  %v3646_v14 = vpop.xlane.xlu1 %3645 }
 0x8f8   : > { %v5611_v36 = vpop.eup %5610  ;;  %v4050_v53 = vadd.f32 1.0, %v4018_v29  ;;  %v3920_v40 = vsub.f32 %v3640_v61, %v3793_v19  ;;  %v3644_v29 = vpop.xlane.xlu0 %3643 }
 0x8f9   : > { %v5613_v34 = vpop.eup %5612  ;;  %v4143_v20 = vmul.f32 0.6931472, %v5611_v36  ;;  %v4083_v47 = vadd.f32 1e-08, %v4051_v21  ;;  %v3957_v63 = vadd.f32 %v7727_v35, %v3921_v10 }
 0x8fa   : > { %v4141_v24 = vmul.f32 0.6931472, %v5613_v34  ;;  %v4082_v39 = vadd.f32 1e-08, %v4050_v53  ;;  %v3956_v45 = vadd.f32 %v7727_v35, %v3920_v40 }
 0x8fb   : > { %v4205_v49 = vmul.f32 1.2, %v4143_v20  ;;  %5622 = vrcp.f32 %v4083_v47  ;;  %v3989_v7 = vmax.f32 %v3957_v63, 0.0  ;;  %v4302_v20 = vsub.s32 7, %v8118_v46 }
 0x8fc   : > { %v4204_v17 = vmul.f32 1.2, %v4141_v24  ;;  %5624 = vrcp.f32 %v4082_v39  ;;  %v3988_v22 = vmax.f32 %v3956_v45, 0.0 }
 0x8fd   : > { %v5615_v52 = vpop.eup %5614  ;;  %v4238_v2 = vmul.f32 1.442695, %v4205_v49  ;;  %v4021_v62 = vmul.f32 5.0, %v3989_v7 }
 0x8fe   : > { %v5617_v30 = vpop.eup %5616  ;;  %v4236_v5 = vmul.f32 1.442695, %v4204_v17  ;;  %5626 = vlog2.f32 %v5615_v52  ;;  %v4020_v28 = vmul.f32 5.0, %v3988_v22  ;;  %v5271_v44 = vpop.f32.mrb[192].mxu1 }
 0x8ff   : > { %5628 = vpow2.f32 %v4238_v2  ;;  %v4053_v48 = vadd.f32 1.0, %v4021_v62  ;;  %v3923_v37 = vsub.f32 %v3646_v14, %v5271_v44  ;;  %v3803_v61 = vpop.f32.mrb[193].mxu1  ;;  %v7743_v62 = vrot.slane %v7528_v18, %v4302_v20  ;;  %v3648_v14 = vpop.xlane.xlu0 %3647 }
 0x900   : > { %v5619_v21 = vpop.eup %5618  ;;  %5630 = vpow2.f32 %v4236_v5  ;;  %v4052_v10 = vadd.f32 1.0, %v4020_v28  ;;  %v3922_v19 = vsub.f32 %v3644_v29, %v3803_v61  ;;  %v3650_v5 = vpop.xlane.xlu1 %3649 }
 0x901   : > { %v5621_v36 = vpop.eup %5620  ;;  %v4147_v53 = vmul.f32 0.6931472, %v5619_v21  ;;  %5632 = vlog2.f32 %v5617_v30  ;;  %v4085_v40 = vadd.f32 1e-08, %v4053_v48  ;;  %v3959_v34 = vadd.f32 %v7727_v35, %v3923_v37 }
 0x902   : > { %v4145_v47 = vmul.f32 0.6931472, %v5621_v36  ;;  %v4084_v63 = vadd.f32 1e-08, %v4052_v10  ;;  %v3958_v24 = vadd.f32 %v7727_v35, %v3922_v19 }
 0x903   : > { %v4207_v39 = vmul.f32 1.2, %v4147_v53  ;;  %5634 = vrcp.f32 %v4085_v40  ;;  %v3991_v45 = vmax.f32 %v3959_v34, 0.0 }
 0x904   : > { %v4206_v49 = vmul.f32 1.2, %v4145_v47  ;;  %5636 = vrcp.f32 %v4084_v63  ;;  %v3990_v7 = vmax.f32 %v3958_v24, 0.0 }
 0x905   : > { %v5623_v17 = vpop.eup %5622  ;;  %v4242_v22 = vmul.f32 1.442695, %v4207_v39  ;;  %v4023_v52 = vmul.f32 5.0, %v3991_v45 }
 0x906   : > { %v5625_v2 = vpop.eup %5624  ;;  %v4240_v30 = vmul.f32 1.442695, %v4206_v49  ;;  %5638 = vlog2.f32 %v5623_v17  ;;  %v4022_v46 = vmul.f32 5.0, %v3990_v7  ;;  %v5274_v28 = vpop.f32.mrb[194].mxu1 }
 0x907   : > { %5640 = vpow2.f32 %v4242_v22  ;;  %v4055_v44 = vadd.f32 1.0, %v4023_v52  ;;  %v3925_v29 = vsub.f32 %v3650_v5, %v5274_v28  ;;  %v3813_v48 = vpop.f32.mrb[195].mxu1  ;;  %v3652_v28 = vpop.xlane.xlu0 %3651 }
 0x908   : > { %v5627_v37 = vpop.eup %5626  ;;  %5642 = vpow2.f32 %v4240_v30  ;;  %v4054_v61 = vadd.f32 1.0, %v4022_v46  ;;  %v3924_v21 = vsub.f32 %v3648_v14, %v3813_v48  ;;  %v3654_v46 = vpop.xlane.xlu1 %3653 }
 0x909   : > { %v5629_v10 = vpop.eup %5628  ;;  %v4151_v19 = vmul.f32 0.6931472, %v5627_v37  ;;  %5644 = vlog2.f32 %v5625_v2  ;;  %v4087_v36 = vadd.f32 1e-08, %v4055_v44  ;;  %v3961_v18 = vadd.f32 %v7727_v35, %v3925_v29 }
 0x90a   : > { %v5631_v53 = vpop.eup %5630  ;;  %v4086_v40 = vadd.f32 1e-08, %v4054_v61  ;;  %v3960_v34 = vadd.f32 %v7727_v35, %v3924_v21  ;;  %v7748_v20 = vmul.f32 %v5629_v10, %v7743_v62 }
 0x90b   : > { %v5633_v47 = vpop.eup %5632  ;;  %v4209_v63 = vmul.f32 1.2, %v4151_v19  ;;  %5646 = vrcp.f32 %v4087_v36  ;;  %v3993_v24 = vmax.f32 %v3961_v18, 0.0  ;;  %v7751_v39 = vmul.f32 %v5631_v53, %v7743_v62 }
 0x90c   : > { %v4149_v45 = vmul.f32 0.6931472, %v5633_v47  ;;  %5648 = vrcp.f32 %v4086_v40  ;;  %v3992_v49 = vmax.f32 %v3960_v34, 0.0  ;;  %4338 = vadd.xlane.f32.xlu1 %v7748_v20 }
 0x90d   : > { %v5635_v7 = vpop.eup %5634  ;;  %v4246_v17 = vmul.f32 1.442695, %v4209_v63  ;;  %v4025_v22 = vmul.f32 5.0, %v3993_v24  ;;  %4336 = vadd.xlane.f32.xlu0 %v7751_v39 }
 0x90e   : > { %v5637_v52 = vpop.eup %5636  ;;  %v4208_v2 = vmul.f32 1.2, %v4149_v45  ;;  %5650 = vlog2.f32 %v5635_v7  ;;  %v4024_v30 = vmul.f32 5.0, %v3992_v49  ;;  %v5277_v5 = vpop.f32.mrb[196].mxu1 }
 0x90f   : > { %5652 = vpow2.f32 %v4246_v17  ;;  %v4057_v14 = vadd.f32 1.0, %v4025_v22  ;;  %v3927_v44 = vsub.f32 %v3654_v46, %v5277_v5  ;;  %v3823_v29 = vpop.f32.mrb[197].mxu1 }
 0x910   : > { %v5639_v48 = vpop.eup %5638  ;;  %v4244_v37 = vmul.f32 1.442695, %v4208_v2  ;;  %5654 = vlog2.f32 %v5637_v52  ;;  %v4056_v61 = vadd.f32 1.0, %v4024_v30  ;;  %v3926_v21 = vsub.f32 %v3652_v28, %v3823_v29  ;;  %v3658_v28 = vpop.xlane.xlu1 %3657 }
 0x911   : > { %v5641_v10 = vpop.eup %5640  ;;  %v4155_v19 = vmul.f32 0.6931472, %v5639_v48  ;;  %v4089_v36 = vadd.f32 1e-08, %v4057_v14  ;;  %v3963_v18 = vadd.f32 %v7727_v35, %v3927_v44  ;;  %v3656_v44 = vpop.xlane.xlu0 %3655 }
 0x912   : > { %v5643_v53 = vpop.eup %5642  ;;  %5656 = vpow2.f32 %v4244_v37  ;;  %v4088_v40 = vadd.f32 1e-08, %v4056_v61  ;;  %v3962_v34 = vadd.f32 %v7727_v35, %v3926_v21  ;;  %v7758_v47 = vmul.f32 %v5641_v10, %v7743_v62 }
 0x913   : > { %v5645_v63 = vpop.eup %5644  ;;  %v4211_v24 = vmul.f32 1.2, %v4155_v19  ;;  %5658 = vrcp.f32 %v4089_v36  ;;  %v3995_v45 = vmax.f32 %v3963_v18, 0.0  ;;  %v7761_v49 = vmul.f32 %v5643_v53, %v7743_v62 }
 0x914   : > { %v4153_v7 = vmul.f32 0.6931472, %v5645_v63  ;;  %5660 = vrcp.f32 %v4088_v40  ;;  %v3994_v17 = vmax.f32 %v3962_v34, 0.0  ;;  %4342 = vadd.xlane.f32.xlu1 %v7758_v47 }
 0x915   : > { %v5647_v22 = vpop.eup %5646  ;;  %v4250_v52 = vmul.f32 1.442695, %v4211_v24  ;;  %v4027_v2 = vmul.f32 5.0, %v3995_v45  ;;  %4340 = vadd.xlane.f32.xlu0 %v7761_v49 }
 0x916   : > { %v5649_v30 = vpop.eup %5648  ;;  %v4210_v46 = vmul.f32 1.2, %v4153_v7  ;;  %5662 = vlog2.f32 %v5647_v22  ;;  %v4026_v5 = vmul.f32 5.0, %v3994_v17  ;;  %v5280_v14 = vpop.f32.mrb[198].mxu1 }
 0x917   : > { %5664 = vpow2.f32 %v4250_v52  ;;  %v4059_v29 = vadd.f32 1.0, %v4027_v2  ;;  %v3929_v48 = vsub.f32 %v3658_v28, %v5280_v14  ;;  %v3833_v37 = vpop.f32.mrb[199].mxu1 }
 0x918   : > { %v5651_v61 = vpop.eup %5650  ;;  %v4248_v21 = vmul.f32 1.442695, %v4210_v46  ;;  %5666 = vlog2.f32 %v5649_v30  ;;  %v4058_v10 = vadd.f32 1.0, %v4026_v5  ;;  %v3928_v19 = vsub.f32 %v3656_v44, %v3833_v37 }
 0x919   : > { %v5653_v36 = vpop.eup %5652  ;;  %v4159_v18 = vmul.f32 0.6931472, %v5651_v61  ;;  %v4091_v53 = vadd.f32 1e-08, %v4059_v29  ;;  %v3965_v40 = vadd.f32 %v7727_v35, %v3929_v48  ;;  %v3662_v48 = vpop.xlane.xlu1 %3661 }
 0x91a   : > { %v5655_v34 = vpop.eup %5654  ;;  %5668 = vpow2.f32 %v4248_v21  ;;  %v4090_v63 = vadd.f32 1e-08, %v4058_v10  ;;  %v3964_v24 = vadd.f32 %v7727_v35, %v3928_v19  ;;  %v7768_v45 = vmul.f32 %v5653_v36, %v7743_v62  ;;  %v3660_v21 = vpop.xlane.xlu0 %3659 }
 0x91b   : > { %v4213_v7 = vmul.f32 1.2, %v4159_v18  ;;  %v4157_v17 = vmul.f32 0.6931472, %v5655_v34  ;;  %5670 = vrcp.f32 %v4091_v53  ;;  %v3997_v22 = vmax.f32 %v3965_v40, 0.0 }
 0x91c   : > { %v5657_v52 = vpop.eup %5656  ;;  %5672 = vrcp.f32 %v4090_v63  ;;  %v3996_v2 = vmax.f32 %v3964_v24, 0.0  ;;  %4346 = vadd.xlane.f32.xlu1 %v7768_v45 }
 0x91d   : > { %v5659_v30 = vpop.eup %5658  ;;  %v4254_v46 = vmul.f32 1.442695, %v4213_v7  ;;  %v4212_v5 = vmul.f32 1.2, %v4157_v17  ;;  %v4029_v28 = vmul.f32 5.0, %v3997_v22  ;;  %v7772_v14 = vmul.f32 %v5657_v52, %v7743_v62 }
 0x91e   : > { %v5661_v44 = vpop.eup %5660  ;;  %5674 = vlog2.f32 %v5659_v30  ;;  %v4028_v29 = vmul.f32 5.0, %v3996_v2  ;;  %v5283_v37 = vpop.f32.mrb[200].mxu1 }
 0x91f   : > { %5676 = vpow2.f32 %v4254_v46  ;;  %v4252_v61 = vmul.f32 1.442695, %v4212_v5  ;;  %v4061_v10 = vadd.f32 1.0, %v4029_v28  ;;  %4344 = vadd.xlane.f32.xlu0 %v7772_v14  ;;  %v3931_v19 = vsub.f32 %v3662_v48, %v5283_v37  ;;  %v3843_v36 = vpop.f32.mrb[201].mxu1 }
 0x920   : > { %v5663_v18 = vpop.eup %5662  ;;  %5678 = vlog2.f32 %v5661_v44  ;;  %v4060_v53 = vadd.f32 1.0, %v4028_v29  ;;  %v3930_v40 = vsub.f32 %v3660_v21, %v3843_v36  ;;  %v3666_v36 = vpop.xlane.xlu1 %3665 }
 0x921   : > { %v5665_v34 = vpop.eup %5664  ;;  %5680 = vpow2.f32 %v4252_v61  ;;  %v4163_v63 = vmul.f32 0.6931472, %v5663_v18  ;;  %v4093_v24 = vadd.f32 1e-08, %v4061_v10  ;;  %v3967_v7 = vadd.f32 %v7727_v35, %v3931_v19 }
 0x922   : > { %v5667_v17 = vpop.eup %5666  ;;  %v4092_v22 = vadd.f32 1e-08, %v4060_v53  ;;  %v3966_v52 = vadd.f32 %v7727_v35, %v3930_v40  ;;  %v7778_v2 = vmul.f32 %v5665_v34, %v7743_v62  ;;  %v3664_v40 = vpop.xlane.xlu0 %3663 }
 0x923   : > { %v4215_v30 = vmul.f32 1.2, %v4163_v63  ;;  %v4161_v46 = vmul.f32 0.6931472, %v5667_v17  ;;  %5682 = vrcp.f32 %v4093_v24  ;;  %v3999_v5 = vmax.f32 %v3967_v7, 0.0 }
 0x924   : > { %v5669_v28 = vpop.eup %5668  ;;  %5684 = vrcp.f32 %v4092_v22  ;;  %v3998_v44 = vmax.f32 %v3966_v52, 0.0  ;;  %4350 = vadd.xlane.f32.xlu1 %v7778_v2 }
 0x925   : > { %v5671_v29 = vpop.eup %5670  ;;  %v4258_v48 = vmul.f32 1.442695, %v4215_v30  ;;  %v4214_v37 = vmul.f32 1.2, %v4161_v46  ;;  %v4031_v61 = vmul.f32 5.0, %v3999_v5  ;;  %v7782_v21 = vmul.f32 %v5669_v28, %v7743_v62 }
 0x926   : > { %v5673_v10 = vpop.eup %5672  ;;  %5686 = vlog2.f32 %v5671_v29  ;;  %v4030_v19 = vmul.f32 5.0, %v3998_v44  ;;  %v5286_v18 = vpop.f32.mrb[202].mxu1 }
 0x927   : > { %5688 = vpow2.f32 %v4258_v48  ;;  %v4256_v53 = vmul.f32 1.442695, %v4214_v37  ;;  %v4063_v34 = vadd.f32 1.0, %v4031_v61  ;;  %4348 = vadd.xlane.f32.xlu0 %v7782_v21  ;;  %v3933_v63 = vsub.f32 %v3666_v36, %v5286_v18  ;;  %v3853_v24 = vpop.f32.mrb[203].mxu1 }
 0x928   : > { %v5675_v7 = vpop.eup %5674  ;;  %5690 = vlog2.f32 %v5673_v10  ;;  %v4062_v17 = vadd.f32 1.0, %v4030_v19  ;;  %v3932_v22 = vsub.f32 %v3664_v40, %v3853_v24 }
 0x929   : > { %v5677_v52 = vpop.eup %5676  ;;  %5692 = vpow2.f32 %v4256_v53  ;;  %v4167_v30 = vmul.f32 0.6931472, %v5675_v7  ;;  %v4095_v46 = vadd.f32 1e-08, %v4063_v34  ;;  %v3969_v5 = vadd.f32 %v7727_v35, %v3933_v63 }
 0x92a   : > { %v5679_v28 = vpop.eup %5678  ;;  %v4094_v44 = vadd.f32 1e-08, %v4062_v17  ;;  %v3968_v29 = vadd.f32 %v7727_v35, %v3932_v22  ;;  %v7788_v48 = vmul.f32 %v5677_v52, %v7743_v62  ;;  %v3670_v17 = vpop.xlane.xlu1 %3669 }
 0x92b   : > { %v5681_v37 = vpop.eup %5680  ;;  %v4217_v61 = vmul.f32 1.2, %v4167_v30  ;;  %v4165_v36 = vmul.f32 0.6931472, %v5679_v28  ;;  %5694 = vrcp.f32 %v4095_v46  ;;  %v4001_v10 = vmax.f32 %v3969_v5, 0.0  ;;  %v3668_v30 = vpop.xlane.xlu0 %3667 }
 0x92c   : > { %5696 = vrcp.f32 %v4094_v44  ;;  %v4000_v19 = vmax.f32 %v3968_v29, 0.0  ;;  %4354 = vadd.xlane.f32.xlu1 %v7788_v48  ;;  %v7792_v18 = vmul.f32 %v5681_v37, %v7743_v62 }
 0x92d   : > { %v5683_v53 = vpop.eup %5682  ;;  %v4262_v40 = vmul.f32 1.442695, %v4217_v61  ;;  %v4216_v34 = vmul.f32 1.2, %v4165_v36  ;;  %v4033_v63 = vmul.f32 5.0, %v4001_v10 }
 0x92e   : > { %v5685_v24 = vpop.eup %5684  ;;  %5698 = vlog2.f32 %v5683_v53  ;;  %v4032_v7 = vmul.f32 5.0, %v4000_v19  ;;  %4352 = vadd.xlane.f32.xlu0 %v7792_v18  ;;  %v5289_v22 = vpop.f32.mrb[204].mxu1 }
 0x92f   : > { %5700 = vpow2.f32 %v4262_v40  ;;  %v4260_v52 = vmul.f32 1.442695, %v4216_v34  ;;  %v4065_v46 = vadd.f32 1.0, %v4033_v63  ;;  %v3935_v5 = vsub.f32 %v3670_v17, %v5289_v22  ;;  %v3863_v28 = vpop.f32.mrb[205].mxu1 }
 0x930   : > { %v5687_v44 = vpop.eup %5686  ;;  %5702 = vlog2.f32 %v5685_v24  ;;  %v4064_v29 = vadd.f32 1.0, %v4032_v7  ;;  %v3934_v37 = vsub.f32 %v3668_v30, %v3863_v28 }
 0x931   : > { %v5689_v61 = vpop.eup %5688  ;;  %5704 = vpow2.f32 %v4260_v52  ;;  %v4171_v36 = vmul.f32 0.6931472, %v5687_v44  ;;  %v4097_v10 = vadd.f32 1e-08, %v4065_v46  ;;  %v3971_v19 = vadd.f32 %v7727_v35, %v3935_v5 }
 0x932   : > { %v5691_v53 = vpop.eup %5690  ;;  %v4096_v59 = vadd.f32 1e-08, %v4064_v29  ;;  %v3970_v38 = vadd.f32 %v7727_v35, %v3934_v37  ;;  %v7798_v40 = vmul.f32 %v5689_v61, %v7743_v62  ;;  %v3674_v29 = vpop.xlane.xlu1 %3673 }
 0x933   : > { %v5693_v34 = vpop.eup %5692  ;;  %v4219_v63 = vmul.f32 1.2, %v4171_v36  ;;  %v4169_v17 = vmul.f32 0.6931472, %v5691_v53  ;;  %5706 = vrcp.f32 %v4097_v10  ;;  %v4003_v24 = vmax.f32 %v3971_v19, 0.0 }
 0x934   : > { %5708 = vrcp.f32 %v4096_v59  ;;  %v4002_v7 = vmax.f32 %v3970_v38, 0.0  ;;  %4358 = vadd.xlane.f32.xlu1 %v7798_v40  ;;  %v7802_v22 = vmul.f32 %v5693_v34, %v7743_v62  ;;  %v3672_v59 = vpop.xlane.xlu0 %3671 }
 0x935   : > { %v5695_v52 = vpop.eup %5694  ;;  %v4266_v30 = vmul.f32 1.442695, %v4219_v63  ;;  %v4218_v46 = vmul.f32 1.2, %v4169_v17  ;;  %v4035_v5 = vmul.f32 5.0, %v4003_v24 }
 0x936   : > { %v5697_v28 = vpop.eup %5696  ;;  %5710 = vlog2.f32 %v5695_v52  ;;  %v4034_v44 = vmul.f32 5.0, %v4002_v7  ;;  %4356 = vadd.xlane.f32.xlu0 %v7802_v22  ;;  %v5292_v37 = vpop.f32.mrb[206].mxu1 }
 0x937   : > { %5712 = vpow2.f32 %v4266_v30  ;;  %v4264_v61 = vmul.f32 1.442695, %v4218_v46  ;;  %v4067_v38 = vadd.f32 1.0, %v4035_v5  ;;  %v3937_v36 = vsub.f32 %v3674_v29, %v5292_v37  ;;  %v3873_v10 = vpop.f32.mrb[207].mxu1 }
 0x938   : > { %v5699_v19 = vpop.eup %5698  ;;  %5714 = vlog2.f32 %v5697_v28  ;;  %v4066_v53 = vadd.f32 1.0, %v4034_v44  ;;  %v3936_v34 = vsub.f32 %v3672_v59, %v3873_v10 }
 0x939   : > { %v5701_v63 = vpop.eup %5700  ;;  %5716 = vpow2.f32 %v4264_v61  ;;  %v4175_v17 = vmul.f32 0.6931472, %v5699_v19  ;;  %v4099_v24 = vadd.f32 1e-08, %v4067_v38  ;;  %v3973_v7 = vadd.f32 %v7727_v35, %v3937_v36 }
 0x93a   : > { %v5703_v52 = vpop.eup %5702  ;;  %v4098_v4 = vadd.f32 1e-08, %v4066_v53  ;;  %v3972_v32 = vadd.f32 %v7727_v35, %v3936_v34  ;;  %v7808_v30 = vmul.f32 %v5701_v63, %v7743_v62  ;;  %v3678_v53 = vpop.xlane.xlu1 %3677 }
 0x93b   : > { %v5705_v46 = vpop.eup %5704  ;;  %v4221_v5 = vmul.f32 1.2, %v4175_v17  ;;  %v4173_v29 = vmul.f32 0.6931472, %v5703_v52  ;;  %5718 = vrcp.f32 %v4099_v24  ;;  %v4005_v28 = vmax.f32 %v3973_v7, 0.0 }
 0x93c   : > { %5720 = vrcp.f32 %v4098_v4  ;;  %v4004_v44 = vmax.f32 %v3972_v32, 0.0  ;;  %4362 = vadd.xlane.f32.xlu1 %v7808_v30  ;;  %v7812_v37 = vmul.f32 %v5705_v46, %v7743_v62  ;;  %v3676_v4 = vpop.xlane.xlu0 %3675 }
 0x93d   : > { %v5707_v61 = vpop.eup %5706  ;;  %v4270_v59 = vmul.f32 1.442695, %v4221_v5  ;;  %v4220_v38 = vmul.f32 1.2, %v4173_v29  ;;  %v4037_v36 = vmul.f32 5.0, %v4005_v28 }
 0x93e   : > { %v5709_v10 = vpop.eup %5708  ;;  %5722 = vlog2.f32 %v5707_v61  ;;  %v4036_v19 = vmul.f32 5.0, %v4004_v44  ;;  %4360 = vadd.xlane.f32.xlu0 %v7812_v37  ;;  %v5295_v34 = vpop.f32.mrb[208].mxu1 }
 0x93f   : > { %5724 = vpow2.f32 %v4270_v59  ;;  %v4268_v63 = vmul.f32 1.442695, %v4220_v38  ;;  %v4069_v32 = vadd.f32 1.0, %v4037_v36  ;;  %v3939_v17 = vsub.f32 %v3678_v53, %v5295_v34  ;;  %v3883_v24 = vpop.f32.mrb[209].mxu1 }
 0x940   : > { %v5711_v7 = vpop.eup %5710  ;;  %5726 = vlog2.f32 %v5709_v10  ;;  %v4068_v52 = vadd.f32 1.0, %v4036_v19  ;;  %v3938_v46 = vsub.f32 %v3676_v4, %v3883_v24 }
 0x941   : > { %v5713_v5 = vpop.eup %5712  ;;  %5728 = vpow2.f32 %v4268_v63  ;;  %v4179_v29 = vmul.f32 0.6931472, %v5711_v7  ;;  %v4101_v28 = vadd.f32 1e-08, %v4069_v32  ;;  %v3975_v44 = vadd.f32 %v7727_v35, %v3939_v17 }
 0x942   : > { %v5715_v61 = vpop.eup %5714  ;;  %v4100_v15 = vadd.f32 1e-08, %v4068_v52  ;;  %v3974_v60 = vadd.f32 %v7727_v35, %v3938_v46  ;;  %v7818_v59 = vmul.f32 %v5713_v5, %v7743_v62  ;;  %v3682_v52 = vpop.xlane.xlu1 %3681 }
 0x943   : > { %v5717_v38 = vpop.eup %5716  ;;  %v4223_v36 = vmul.f32 1.2, %v4179_v29  ;;  %v4177_v53 = vmul.f32 0.6931472, %v5715_v61  ;;  %5730 = vrcp.f32 %v4101_v28  ;;  %v4007_v10 = vmax.f32 %v3975_v44, 0.0 }
 0x944   : > { %5732 = vrcp.f32 %v4100_v15  ;;  %v4006_v19 = vmax.f32 %v3974_v60, 0.0  ;;  %4366 = vadd.xlane.f32.xlu1 %v7818_v59  ;;  %v7822_v34 = vmul.f32 %v5717_v38, %v7743_v62  ;;  %v3680_v15 = vpop.xlane.xlu0 %3679 }
 0x945   : > { %v5719_v63 = vpop.eup %5718  ;;  %v4274_v4 = vmul.f32 1.442695, %v4223_v36  ;;  %v4222_v32 = vmul.f32 1.2, %v4177_v53  ;;  %v4039_v17 = vmul.f32 5.0, %v4007_v10 }
 0x946   : > { %v5721_v24 = vpop.eup %5720  ;;  %5734 = vlog2.f32 %v5719_v63  ;;  %v4038_v7 = vmul.f32 5.0, %v4006_v19  ;;  %4364 = vadd.xlane.f32.xlu0 %v7822_v34  ;;  %v5298_v46 = vpop.f32.mrb[210].mxu1 }
 0x947   : > { %5736 = vpow2.f32 %v4274_v4  ;;  %v4272_v5 = vmul.f32 1.442695, %v4222_v32  ;;  %v4071_v60 = vadd.f32 1.0, %v4039_v17  ;;  %v3941_v29 = vsub.f32 %v3682_v52, %v5298_v46  ;;  %v3893_v28 = vpop.f32.mrb[211].mxu1 }
 0x948   : > { %v5723_v44 = vpop.eup %5722  ;;  %5738 = vlog2.f32 %v5721_v24  ;;  %v4070_v61 = vadd.f32 1.0, %v4038_v7  ;;  %v3940_v38 = vsub.f32 %v3680_v15, %v3893_v28 }
 0x949   : > { %v5725_v36 = vpop.eup %5724  ;;  %5740 = vpow2.f32 %v4272_v5  ;;  %v4183_v53 = vmul.f32 0.6931472, %v5723_v44  ;;  %v4103_v10 = vadd.f32 1e-08, %v4071_v60  ;;  %v3977_v19 = vadd.f32 %v7727_v35, %v3941_v29 }
 0x94a   : > { %v5727_v63 = vpop.eup %5726  ;;  %v4102_v25 = vadd.f32 1e-08, %v4070_v61  ;;  %v3976_v56 = vadd.f32 %v7727_v35, %v3940_v38  ;;  %v7828_v4 = vmul.f32 %v5725_v36, %v7743_v62  ;;  %v3686_v61 = vpop.xlane.xlu1 %3685 }
 0x94b   : > { %v5729_v32 = vpop.eup %5728  ;;  %v4225_v17 = vmul.f32 1.2, %v4183_v53  ;;  %v4181_v52 = vmul.f32 0.6931472, %v5727_v63  ;;  %5742 = vrcp.f32 %v4103_v10  ;;  %v4009_v24 = vmax.f32 %v3977_v19, 0.0 }
 0x94c   : > { %5744 = vrcp.f32 %v4102_v25  ;;  %v4008_v7 = vmax.f32 %v3976_v56, 0.0  ;;  %4370 = vadd.xlane.f32.xlu1 %v7828_v4  ;;  %v7832_v46 = vmul.f32 %v5729_v32, %v7743_v62  ;;  %v3684_v25 = vpop.xlane.xlu0 %3683 }
 0x94d   : > { %v5731_v5 = vpop.eup %5730  ;;  %v4278_v15 = vmul.f32 1.442695, %v4225_v17  ;;  %v4224_v60 = vmul.f32 1.2, %v4181_v52  ;;  %v4041_v29 = vmul.f32 5.0, %v4009_v24 }
 0x94e   : > { %v5733_v28 = vpop.eup %5732  ;;  %5746 = vlog2.f32 %v5731_v5  ;;  %v4040_v44 = vmul.f32 5.0, %v4008_v7  ;;  %4368 = vadd.xlane.f32.xlu0 %v7832_v46  ;;  %v5301_v38 = vpop.f32.mrb[212].mxu1 }
 0x94f   : > { %5748 = vpow2.f32 %v4278_v15  ;;  %v4276_v36 = vmul.f32 1.442695, %v4224_v60  ;;  %v4073_v56 = vadd.f32 1.0, %v4041_v29  ;;  %v3943_v53 = vsub.f32 %v3686_v61, %v5301_v38  ;;  %v3903_v10 = vpop.f32.mrb[213].mxu1 }
 0x950   : > { %v5735_v19 = vpop.eup %5734  ;;  %5750 = vlog2.f32 %v5733_v28  ;;  %v4072_v63 = vadd.f32 1.0, %v4040_v44  ;;  %v3942_v32 = vsub.f32 %v3684_v25, %v3903_v10 }
 0x951   : > { %v5737_v17 = vpop.eup %5736  ;;  %5752 = vpow2.f32 %v4276_v36  ;;  %v4187_v52 = vmul.f32 0.6931472, %v5735_v19  ;;  %v4105_v24 = vadd.f32 1e-08, %v4073_v56  ;;  %v3979_v7 = vadd.f32 %v7727_v35, %v3943_v53 }
 0x952   : > { %v5739_v5 = vpop.eup %5738  ;;  %v4104_v51 = vadd.f32 1e-08, %v4072_v63  ;;  %v3978_v11 = vadd.f32 %v7727_v35, %v3942_v32  ;;  %v7838_v15 = vmul.f32 %v5737_v17, %v7743_v62 }
 0x953   : > { %v5741_v60 = vpop.eup %5740  ;;  %v4227_v29 = vmul.f32 1.2, %v4187_v52  ;;  %v4185_v61 = vmul.f32 0.6931472, %v5739_v5  ;;  %5754 = vrcp.f32 %v4105_v24  ;;  %v4011_v28 = vmax.f32 %v3979_v7, 0.0 }
 0x954   : > { %5756 = vrcp.f32 %v4104_v51  ;;  %v4010_v44 = vmax.f32 %v3978_v11, 0.0  ;;  %4374 = vadd.xlane.f32.xlu1 %v7838_v15  ;;  %v7842_v38 = vmul.f32 %v5741_v60, %v7743_v62 }
 0x955   : > { %v5743_v36 = vpop.eup %5742  ;;  %v4282_v25 = vmul.f32 1.442695, %v4227_v29  ;;  %v4226_v56 = vmul.f32 1.2, %v4185_v61  ;;  %v4043_v53 = vmul.f32 5.0, %v4011_v28 }
 0x956   : > { %v5745_v35 = vpop.eup %5744  ;;  %5758 = vlog2.f32 %v5743_v36  ;;  %v4042_v10 = vmul.f32 5.0, %v4010_v44  ;;  %4372 = vadd.xlane.f32.xlu0 %v7842_v38 }
 0x957   : > { %5760 = vpow2.f32 %v4282_v25  ;;  %v4280_v19 = vmul.f32 1.442695, %v4226_v56  ;;  %v4075_v63 = vadd.f32 1.0, %v4043_v53 }
 0x958   : > { %v5747_v32 = vpop.eup %5746  ;;  %5762 = vlog2.f32 %v5745_v35  ;;  %v4074_v51 = vadd.f32 1.0, %v4042_v10 }
 0x959   : > { %v5749_v11 = vpop.eup %5748  ;;  %5764 = vpow2.f32 %v4280_v19  ;;  %v4191_v17 = vmul.f32 0.6931472, %v5747_v32  ;;  %v4107_v52 = vadd.f32 1e-08, %v4075_v63 }
 0x95a   : > { %v5751_v24 = vpop.eup %5750  ;;  %v4106_v7 = vadd.f32 1e-08, %v4074_v51  ;;  %v7846_v5 = vmul.f32 %v5749_v11, %v7743_v62 }
 0x95b   : > { %v5753_v60 = vpop.eup %5752  ;;  %v4229_v29 = vmul.f32 1.2, %v4191_v17  ;;  %v4189_v61 = vmul.f32 0.6931472, %v5751_v24  ;;  %5766 = vrcp.f32 %v4107_v52 }
 0x95c   : > { %5768 = vrcp.f32 %v4106_v7  ;;  %4378 = vadd.xlane.f32.xlu1 %v7846_v5  ;;  %v7850_v28 = vmul.f32 %v5753_v60, %v7743_v62 }
 0x95d   : > { %v5755_v44 = vpop.eup %5754  ;;  %v4286_v36 = vmul.f32 1.442695, %v4229_v29  ;;  %v4228_v25 = vmul.f32 1.2, %v4189_v61 }
 0x95e   : > { %v5757_v56 = vpop.eup %5756  ;;  %5770 = vlog2.f32 %v5755_v44  ;;  %4376 = vadd.xlane.f32.xlu0 %v7850_v28 }
 0x95f   : > { %5772 = vpow2.f32 %v4286_v36  ;;  %v4284_v53 = vmul.f32 1.442695, %v4228_v25 }
 0x960   : > { %v5759_v35 = vpop.eup %5758  ;;  %5774 = vlog2.f32 %v5757_v56 }
 0x961   : > { %v5761_v10 = vpop.eup %5760  ;;  %5776 = vpow2.f32 %v4284_v53  ;;  %v4195_v19 = vmul.f32 0.6931472, %v5759_v35 }
 0x962   : > { %v5763_v63 = vpop.eup %5762  ;;  %v7854_v32 = vmul.f32 %v5761_v10, %v7743_v62 }
 0x963   : > { %v5765_v51 = vpop.eup %5764  ;;  %v4231_v11 = vmul.f32 1.2, %v4195_v19  ;;  %v4193_v17 = vmul.f32 0.6931472, %v5763_v63 }
 0x964   : > { %4382 = vadd.xlane.f32.xlu1 %v7854_v32  ;;  %v7858_v52 = vmul.f32 %v5765_v51, %v7743_v62 }
 0x965   : > { %v5767_v24 = vpop.eup %5766  ;;  %v4290_v7 = vmul.f32 1.442695, %v4231_v11  ;;  %v4230_v60 = vmul.f32 1.2, %v4193_v17 }
 0x966   : > { %v5769_v29 = vpop.eup %5768  ;;  %5778 = vlog2.f32 %v5767_v24  ;;  %4380 = vadd.xlane.f32.xlu0 %v7858_v52 }
 0x967   : > { %5780 = vpow2.f32 %v4290_v7  ;;  %v4288_v61 = vmul.f32 1.442695, %v4230_v60 }
 0x968   : > { %v5771_v44 = vpop.eup %5770  ;;  %5782 = vlog2.f32 %v5769_v29 }
 0x969   : > { %v5773_v36 = vpop.eup %5772  ;;  %5784 = vpow2.f32 %v4288_v61  ;;  %v4199_v25 = vmul.f32 0.6931472, %v5771_v44 }
 0x96a   : > { %v5775_v56 = vpop.eup %5774  ;;  %v7862_v53 = vmul.f32 %v5773_v36, %v7743_v62 }
 0x96b   : > { %v5777_v35 = vpop.eup %5776  ;;  %v4233_v10 = vmul.f32 1.2, %v4199_v25  ;;  %v4197_v19 = vmul.f32 0.6931472, %v5775_v56 }
 0x96c   : > { %4386 = vadd.xlane.f32.xlu1 %v7862_v53  ;;  %v7866_v63 = vmul.f32 %v5777_v35, %v7743_v62 }
 0x96d   : > { %v4294_v51 = vmul.f32 1.442695, %v4233_v10  ;;  %v4232_v11 = vmul.f32 1.2, %v4197_v19 }
 0x96e   : > { %4384 = vadd.xlane.f32.xlu0 %v7866_v63 }
 0x96f   : > { %5786 = vpow2.f32 %v4294_v51  ;;  %v4292_v17 = vmul.f32 1.442695, %v4232_v11 }
 0x970   : > { %v5779_v24 = vpop.eup %5778 }
 0x971   : > { %v5781_v7 = vpop.eup %5780  ;;  %5788 = vpow2.f32 %v4292_v17  ;;  %v4203_v60 = vmul.f32 0.6931472, %v5779_v24 }
 0x972   : > { %v5783_v29 = vpop.eup %5782  ;;  %v7870_v61 = vmul.f32 %v5781_v7, %v7743_v62 }
 0x973   : > { %v5785_v44 = vpop.eup %5784  ;;  %v4235_v36 = vmul.f32 1.2, %v4203_v60  ;;  %v4201_v25 = vmul.f32 0.6931472, %v5783_v29 }
 0x974   : > { %4390 = vadd.xlane.f32.xlu1 %v7870_v61  ;;  %v7874_v56 = vmul.f32 %v5785_v44, %v7743_v62 }
 0x975   : > { %v4298_v35 = vmul.f32 1.442695, %v4235_v36  ;;  %v4234_v10 = vmul.f32 1.2, %v4201_v25 }
 0x976   : > { %4388 = vadd.xlane.f32.xlu0 %v7874_v56 }
 0x977   : > { %5790 = vpow2.f32 %v4298_v35  ;;  %v4296_v19 = vmul.f32 1.442695, %v4234_v10 }
 0x979   : > { %v5787_v51 = vpop.eup %5786  ;;  %5792 = vpow2.f32 %v4296_v19 }
 0x97a   : > { %v7878_v11 = vmul.f32 %v5787_v51, %v7743_v62 }
 0x97b   : > { %v5789_v17 = vpop.eup %5788 }
 0x97c   : > { %4394 = vadd.xlane.f32.xlu1 %v7878_v11  ;;  %v7882_v24 = vmul.f32 %v5789_v17, %v7743_v62 }
 0x97e   : > { %4392 = vadd.xlane.f32.xlu0 %v7882_v24 }
 0x981   : > { %v5791_v7 = vpop.eup %5790 }
 0x982   : > { %v7886_v60 = vmul.f32 %v5791_v7, %v7743_v62 }
 0x983   : > { %v5793_v29 = vpop.eup %5792 }
 0x984   : > { %4398 = vadd.xlane.f32.xlu1 %v7886_v60  ;;  %v7890_v44 = vmul.f32 %v5793_v29, %v7743_v62 }
 0x986   : > { %4396 = vadd.xlane.f32.xlu0 %v7890_v44 }
 0x999   : > { %v4339_v36 = vpop.xlane.xlu1 %4338 }
 0x99a   : > { %5794 = vrcp.f32 %v4339_v36  ;;  %v4337_v25 = vpop.xlane.xlu0 %4336 }
 0x99b   : > { %5796 = vrcp.f32 %v4337_v25 }
 0x9a1   : > { %v4343_v35 = vpop.xlane.xlu1 %4342 }
 0x9a2   : > { %5798 = vrcp.f32 %v4343_v35  ;;  %v4341_v10 = vpop.xlane.xlu0 %4340 }
 0x9a3   : > { %5800 = vrcp.f32 %v4341_v10 }
 0x9a4   : > { %v5795_v19 = vpop.eup %5794 }
 0x9a5   : > { %v5797_v51 = vpop.eup %5796  ;;  %v4433_v17 = vmul.f32 %v5795_v19, %v7748_v20 }
 0x9a6   : > { %v4432_v62 = vmul.f32 %v5797_v51, %v7751_v39 }
 0x9a7   : > { %v4465_v7 = vadd.f32 %v4433_v17, %v7540_v23 }
 0x9a8   : > { %v4464_v29 = vadd.f32 %v4432_v62, %v7534_v1 }
 0x9a9   : > { %4497 = vst [vmem:[%s7898_s15 + $0x8] sm:$0xff] %v4465_v7  ;;  %v4347_v36 = vpop.xlane.xlu1 %4346 }
 0x9aa   : > { %4496 = vst [vmem:[%s7898_s15] sm:$0xff] %v4464_v29  ;;  %5802 = vrcp.f32 %v4347_v36 }
 0x9ac   : > { %v5799_v20 = vpop.eup %5798  ;;  %v4345_v25 = vpop.xlane.xlu0 %4344 }
 0x9ad   : > { %v5801_v35 = vpop.eup %5800  ;;  %v4435_v10 = vmul.f32 %v5799_v20, %v7758_v47  ;;  %5804 = vrcp.f32 %v4345_v25 }
 0x9ae   : > { %v4434_v19 = vmul.f32 %v5801_v35, %v7761_v49 }
 0x9af   : > { %v4467_v39 = vadd.f32 %v4435_v10, %v7552_v42 }
 0x9b0   : > { %v4466_v23 = vadd.f32 %v4434_v19, %v7546_v50 }
 0x9b1   : > { %4499 = vst [vmem:[%s7898_s15 + $0x18] sm:$0xff] %v4467_v39  ;;  %v4351_v51 = vpop.xlane.xlu1 %4350 }
 0x9b2   : > { %4498 = vst [vmem:[%s7898_s15 + $0x10] sm:$0xff] %v4466_v23  ;;  %5806 = vrcp.f32 %v4351_v51 }
 0x9b4   : > { %v5803_v1 = vpop.eup %5802  ;;  %v4349_v17 = vpop.xlane.xlu0 %4348 }
 0x9b5   : > { %v4437_v62 = vmul.f32 %v5803_v1, %v7768_v45  ;;  %5808 = vrcp.f32 %v4349_v17 }
 0x9b7   : > { %v5805_v47 = vpop.eup %5804  ;;  %v4469_v7 = vadd.f32 %v4437_v62, %v7564_v3 }
 0x9b8   : > { %v4436_v49 = vmul.f32 %v5805_v47, %v7772_v14 }
 0x9b9   : > { %4501 = vst [vmem:[%s7898_s15 + $0x28] sm:$0xff] %v4469_v7  ;;  %v4355_v42 = vpop.xlane.xlu1 %4354 }
 0x9ba   : > { %v4468_v50 = vadd.f32 %v4436_v49, %v7558_v43  ;;  %5810 = vrcp.f32 %v4355_v42 }
 0x9bb   : > { %v4353_v29 = vpop.xlane.xlu0 %4352 }
 0x9bc   : > { %v5807_v36 = vpop.eup %5806  ;;  %4500 = vst [vmem:[%s7898_s15 + $0x20] sm:$0xff] %v4468_v50  ;;  %5812 = vrcp.f32 %v4353_v29 }
 0x9bd   : > { %v4439_v20 = vmul.f32 %v5807_v36, %v7778_v2 }
 0x9bf   : > { %v5809_v45 = vpop.eup %5808  ;;  %v4471_v25 = vadd.f32 %v4439_v20, %v7576_v12 }
 0x9c0   : > { %v4438_v3 = vmul.f32 %v5809_v45, %v7782_v21 }
 0x9c1   : > { %4503 = vst [vmem:[%s7898_s15 + $0x38] sm:$0xff] %v4471_v25  ;;  %v4359_v14 = vpop.xlane.xlu1 %4358 }
 0x9c2   : > { %v4470_v35 = vadd.f32 %v4438_v3, %v7570_v54  ;;  %5814 = vrcp.f32 %v4359_v14 }
 0x9c3   : > { %v4357_v43 = vpop.xlane.xlu0 %4356 }
 0x9c4   : > { %v5811_v10 = vpop.eup %5810  ;;  %4502 = vst [vmem:[%s7898_s15 + $0x30] sm:$0xff] %v4470_v35  ;;  %5816 = vrcp.f32 %v4357_v43 }
 0x9c5   : > { %v4441_v19 = vmul.f32 %v5811_v10, %v7788_v48 }
 0x9c6   : > { %v5813_v2 = vpop.eup %5812 }
 0x9c7   : > { %v4473_v39 = vadd.f32 %v4441_v19, %v7588_v8  ;;  %v4440_v12 = vmul.f32 %v5813_v2, %v7792_v18 }
 0x9c9   : > { %4505 = vst [vmem:[%s7898_s15 + $0x48] sm:$0xff] %v4473_v39  ;;  %v4472_v21 = vadd.f32 %v4440_v12, %v7582_v33  ;;  %v4363_v23 = vpop.xlane.xlu1 %4362 }
 0x9ca   : > { %5818 = vrcp.f32 %v4363_v23 }
 0x9cb   : > { %4504 = vst [vmem:[%s7898_s15 + $0x40] sm:$0xff] %v4472_v21  ;;  %v4361_v54 = vpop.xlane.xlu0 %4360 }
 0x9cc   : > { %v5815_v51 = vpop.eup %5814  ;;  %5820 = vrcp.f32 %v4361_v54 }
 0x9cd   : > { %v4443_v1 = vmul.f32 %v5815_v51, %v7798_v40  ;;  %v8155_v51 = vld [vmem:[#allocation4_spill] sm:$0xff] }
 0x9ce   : > { %v5817_v48 = vpop.eup %5816 }
 0x9cf   : > { %v4475_v17 = vadd.f32 %v4443_v1, %v7600_v16  ;;  %v4442_v8 = vmul.f32 %v5817_v48, %v7802_v22 }
 0x9d1   : > { %4507 = vst [vmem:[%s7898_s15 + $0x58] sm:$0xff] %v4475_v17  ;;  %v4474_v18 = vadd.f32 %v4442_v8, %v7594_v55  ;;  %v4367_v62 = vpop.xlane.xlu1 %4366 }
 0x9d2   : > { %5822 = vrcp.f32 %v4367_v62  ;;  %v8157_v62 = vld [vmem:[#allocation6_spill] sm:$0xff] }
 0x9d3   : > { %4506 = vst [vmem:[%s7898_s15 + $0x50] sm:$0xff] %v4474_v18  ;;  %v4365_v33 = vpop.xlane.xlu0 %4364 }
 0x9d4   : > { %v5819_v47 = vpop.eup %5818  ;;  %5824 = vrcp.f32 %v4365_v33 }
 0x9d5   : > { %v4445_v7 = vmul.f32 %v5819_v47, %v7808_v30 }
 0x9d6   : > { %v5821_v40 = vpop.eup %5820 }
 0x9d7   : > { %v4477_v49 = vadd.f32 %v4445_v7, %v7612_v13  ;;  %v4444_v16 = vmul.f32 %v5821_v40, %v7812_v37 }
 0x9d9   : > { %4509 = vst [vmem:[%s7898_s15 + $0x68] sm:$0xff] %v4477_v49  ;;  %v4476_v22 = vadd.f32 %v4444_v16, %v7606_v9  ;;  %v4371_v42 = vpop.xlane.xlu1 %4370 }
 0x9da   : > { %5826 = vrcp.f32 %v4371_v42  ;;  %v8159_v42 = vld [vmem:[#allocation8_spill] sm:$0xff] }
 0x9db   : > { %4508 = vst [vmem:[%s7898_s15 + $0x60] sm:$0xff] %v4476_v22  ;;  %v4369_v55 = vpop.xlane.xlu0 %4368 }
 0x9dc   : > { %v5823_v50 = vpop.eup %5822  ;;  %5828 = vrcp.f32 %v4369_v55 }
 0x9dd   : > { %v4447_v29 = vmul.f32 %v5823_v50, %v7818_v59 }
 0x9de   : > { %v5825_v30 = vpop.eup %5824 }
 0x9df   : > { %v4479_v36 = vadd.f32 %v4447_v29, %v7624_v57  ;;  %v4446_v13 = vmul.f32 %v5825_v30, %v7822_v34 }
 0x9e1   : > { %4511 = vst [vmem:[%s7898_s15 + $0x78] sm:$0xff] %v4479_v36  ;;  %v4478_v37 = vadd.f32 %v4446_v13, %v7618_v41  ;;  %v4375_v20 = vpop.xlane.xlu1 %4374 }
 0x9e2   : > { %5830 = vrcp.f32 %v4375_v20  ;;  %v8161_v20 = vld [vmem:[#allocation10_spill] sm:$0xff] }
 0x9e3   : > { %4510 = vst [vmem:[%s7898_s15 + $0x70] sm:$0xff] %v4478_v37  ;;  %v4373_v9 = vpop.xlane.xlu0 %4372 }
 0x9e4   : > { %v5827_v45 = vpop.eup %5826  ;;  %5832 = vrcp.f32 %v4373_v9 }
 0x9e5   : > { %v4449_v25 = vmul.f32 %v5827_v45, %v7828_v4 }
 0x9e6   : > { %v5829_v59 = vpop.eup %5828 }
 0x9e7   : > { %v4481_v3 = vadd.f32 %v4449_v25, %v7636_v26  ;;  %v4448_v57 = vmul.f32 %v5829_v59, %v7832_v46 }
 0x9e9   : > { %4513 = vst [vmem:[%s7898_s15 + $0x88] sm:$0xff] %v4481_v3  ;;  %v4480_v34 = vadd.f32 %v4448_v57, %v7630_v58  ;;  %v4379_v14 = vpop.xlane.xlu1 %4378 }
 0x9ea   : > { %5834 = vrcp.f32 %v4379_v14 }
 0x9eb   : > { %4512 = vst [vmem:[%s7898_s15 + $0x80] sm:$0xff] %v4480_v34  ;;  %v4377_v41 = vpop.xlane.xlu0 %4376  ;;  %v8163_v34 = vld [vmem:[#allocation12_spill] sm:$0xff] }
 0x9ec   : > { %v5831_v35 = vpop.eup %5830  ;;  %5836 = vrcp.f32 %v4377_v41 }
 0x9ed   : > { %v4451_v43 = vmul.f32 %v5831_v35, %v7838_v15  ;;  %v8164_v35 = vld [vmem:[#allocation11_spill] sm:$0xff] }
 0x9ee   : > { %v5833_v4 = vpop.eup %5832 }
 0x9ef   : > { %v4483_v10 = vadd.f32 %v4451_v43, %v7648_v6  ;;  %v4450_v26 = vmul.f32 %v5833_v4, %v7842_v38 }
 0x9f1   : > { %4515 = vst [vmem:[%s7898_s15 + $0x98] sm:$0xff] %v4483_v10  ;;  %v4482_v46 = vadd.f32 %v4450_v26, %v7642_v31  ;;  %v4383_v19 = vpop.xlane.xlu1 %4382 }
 0x9f2   : > { %5838 = vrcp.f32 %v4383_v19 }
 0x9f3   : > { %4514 = vst [vmem:[%s7898_s15 + $0x90] sm:$0xff] %v4482_v46  ;;  %v4381_v58 = vpop.xlane.xlu0 %4380 }
 0x9f4   : > { %v5835_v2 = vpop.eup %5834  ;;  %5840 = vrcp.f32 %v4381_v58 }
 0x9f5   : > { %v4453_v39 = vmul.f32 %v5835_v2, %v7846_v5 }
 0x9f6   : > { %v5837_v15 = vpop.eup %5836 }
 0x9f7   : > { %v4485_v12 = vadd.f32 %v4453_v39, %v7660_v27  ;;  %v4452_v6 = vmul.f32 %v5837_v15, %v7850_v28  ;;  %v8156_v28 = vld [vmem:[#allocation3_spill] sm:$0xff] }
 0x9f9   : > { %4517 = vst [vmem:[%s7898_s15 + $0xa8] sm:$0xff] %v4485_v12  ;;  %v4484_v38 = vadd.f32 %v4452_v6, %v7654_v0  ;;  %v4387_v21 = vpop.xlane.xlu1 %4386 }
 0x9fa   : > { %5842 = vrcp.f32 %v4387_v21 }
 0x9fb   : > { %4516 = vst [vmem:[%s7898_s15 + $0xa0] sm:$0xff] %v4484_v38  ;;  %v4385_v31 = vpop.xlane.xlu0 %4384 }
 0x9fc   : > { %v5839_v23 = vpop.eup %5838  ;;  %5844 = vrcp.f32 %v4385_v31 }
 0x9fd   : > { %v4455_v54 = vmul.f32 %v5839_v23, %v7854_v32 }
 0x9fe   : > { %v5841_v5 = vpop.eup %5840 }
 0x9ff   : > { %v4487_v1 = vadd.f32 %v4455_v54, %v8155_v51  ;;  %v4454_v27 = vmul.f32 %v5841_v5, %v7858_v52  ;;  %v8158_v52 = vld [vmem:[#allocation5_spill] sm:$0xff] }
 0xa01   : > { %4519 = vst [vmem:[%s7898_s15 + $0xb8] sm:$0xff] %v4487_v1  ;;  %v4486_v48 = vadd.f32 %v4454_v27, %v8156_v28  ;;  %v4391_v17 = vpop.xlane.xlu1 %4390 }
 0xa02   : > { %5846 = vrcp.f32 %v4391_v17 }
 0xa03   : > { %4518 = vst [vmem:[%s7898_s15 + $0xb0] sm:$0xff] %v4486_v48  ;;  %v4389_v0 = vpop.xlane.xlu0 %4388 }
 0xa04   : > { %v5843_v8 = vpop.eup %5842  ;;  %5848 = vrcp.f32 %v4389_v0 }
 0xa05   : > { %v4457_v18 = vmul.f32 %v5843_v8, %v7862_v53 }
 0xa06   : > { %v5845_v32 = vpop.eup %5844 }
 0xa07   : > { %v4489_v33 = vadd.f32 %v4457_v18, %v8157_v62  ;;  %v4456_v47 = vmul.f32 %v5845_v32, %v7866_v63  ;;  %v8160_v63 = vld [vmem:[#allocation7_spill] sm:$0xff] }
 0xa09   : > { %4521 = vst [vmem:[%s7898_s15 + $0xc8] sm:$0xff] %v4489_v33  ;;  %v4488_v7 = vadd.f32 %v4456_v47, %v8158_v52  ;;  %v4395_v40 = vpop.xlane.xlu1 %4394 }
 0xa0a   : > { %5850 = vrcp.f32 %v4395_v40 }
 0xa0b   : > { %4520 = vst [vmem:[%s7898_s15 + $0xc0] sm:$0xff] %v4488_v7  ;;  %v4393_v49 = vpop.xlane.xlu0 %4392 }
 0xa0c   : > { %v5847_v16 = vpop.eup %5846  ;;  %5852 = vrcp.f32 %v4393_v49 }
 0xa0d   : > { %v4459_v22 = vmul.f32 %v5847_v16, %v7870_v61 }
 0xa0e   : > { %v5849_v53 = vpop.eup %5848 }
 0xa0f   : > { %v4491_v55 = vadd.f32 %v4459_v22, %v8159_v42  ;;  %v4458_v50 = vmul.f32 %v5849_v53, %v7874_v56  ;;  %v8162_v56 = vld [vmem:[#allocation9_spill] sm:$0xff] }
 0xa11   : > { %4523 = vst [vmem:[%s7898_s15 + $0xd8] sm:$0xff] %v4491_v55  ;;  %v4490_v29 = vadd.f32 %v4458_v50, %v8160_v63  ;;  %v4399_v30 = vpop.xlane.xlu1 %4398 }
 0xa12   : > { %5854 = vrcp.f32 %v4399_v30 }
 0xa13   : > { %4522 = vst [vmem:[%s7898_s15 + $0xd0] sm:$0xff] %v4490_v29  ;;  %v4397_v36 = vpop.xlane.xlu0 %4396 }
 0xa14   : > { %v5851_v13 = vpop.eup %5850  ;;  %5856 = vrcp.f32 %v4397_v36 }
 0xa15   : > { %v4461_v61 = vmul.f32 %v5851_v13, %v7878_v11 }
 0xa16   : > { %v5853_v37 = vpop.eup %5852 }
 0xa17   : > { %v4493_v9 = vadd.f32 %v4461_v61, %v8161_v20  ;;  %v4460_v45 = vmul.f32 %v5853_v37, %v7882_v24 }
 0xa19   : > { %4525 = vst [vmem:[%s7898_s15 + $0xe8] sm:$0xff] %v4493_v9  ;;  %v4492_v25 = vadd.f32 %v4460_v45, %v8162_v56 }
 0xa1b   : > { %4524 = vst [vmem:[%s7898_s15 + $0xe0] sm:$0xff] %v4492_v25 }
 0xa1c   : > { %v5855_v59 = vpop.eup %5854 }
 0xa1d   : > { %v4463_v3 = vmul.f32 %v5855_v59, %v7886_v60 }
 0xa1e   : > { %v5857_v57 = vpop.eup %5856 }
 0xa1f   : > { %v4495_v14 = vadd.f32 %v4463_v3, %v8163_v34  ;;  %v4462_v41 = vmul.f32 %v5857_v57, %v7890_v44 }
 0xa21   : > { %4527 = vst [vmem:[%s7898_s15 + $0xf8] sm:$0xff] %v4495_v14  ;;  %v4494_v11 = vadd.f32 %v4462_v41, %v8164_v35 }
 0xa23   : > { %4526 = vst [vmem:[%s7898_s15 + $0xf0] sm:$0xff] %v4494_v11 }
 0xa24 PF: > { %s19_s30 = sadd.s32 1, %s6113_s30  }
 0xa25   : > { %p16_p5 = scmp.ge.s32.totalorder %s19_s30, 4  }
 0xa27   :  { %18 = sbr.rel (!%p16_p5) target bundleno = 1 (0x1), region = 107 }

</bundles_post_ra>
